<compile_context>
chip_gen: v5e
topology: v5e:2x2
jax: 0.10.0
libtpu: 0.0.40
codegen_flags: <defaults>
</compile_context>

<pallas_src>
import numpy as np
import jax
import jax.numpy as jnp
from jax.experimental import pallas as pl
from jax.experimental.pallas import tpu as pltpu

MXU_INPUT_DTYPE = jnp.float32   # flip to jnp.bfloat16 for ~2x MXU / half DMA
EXTRA_DIM = 32                  # Kcs(9) + rotations(9) + Hinfs(9) = 27 -> 32


def _round_up(x, m):
    return (x + m - 1) // m * m


_VMEM_LIMIT = None


def _vmem_limit_bytes():
    """Generation-aware scoped-VMEM limit (v5e/v6e up to ~100MiB, v7x ~51MiB)."""
    global _VMEM_LIMIT
    if _VMEM_LIMIT is None:
        cap = 64 * 1024 * 1024
        try:
            cap = int(getattr(pltpu.get_tpu_info(), "vmem_capacity_bytes", cap))
        except Exception:
            pass
        _VMEM_LIMIT = min(100 * 1024 * 1024, (cap * 4) // 5)
    return _VMEM_LIMIT


def _geom(H, W, num_conv):
    """Flat-spatial geometry for the conv stack.

    Activations live in a zero-padded, row-major (H+2, W+2)-flattened layout.
    Layer-k's buffer carries a leading margin of (W_pad+1)*(num_conv-k) zero
    lanes; the margin shrinks by one conv shift per layer, so every layer's
    output is stored with a plain, lane-aligned offset-0 store."""
    W_pad, H_pad = W + 2, H + 2
    P = H_pad * W_pad
    shift = W_pad + 1
    M0 = shift * num_conv
    M1 = shift * (num_conv - 1)
    S_out = _round_up(M1 + P, 128)      # computed (lane-dense) width per layer
    S_buf = S_out + 128                 # + read margin for the 3x3 tap windows
    assert 2 * W_pad + 2 <= 128 and M0 + P <= S_buf
    return M0, S_out, S_buf


def _build_masks(H, W, num_conv, S_out):
    """Validity masks for the intermediate conv layers (one row per layer)."""
    W_pad, H_pad = W + 2, H + 2
    P = H_pad * W_pad
    shift = W_pad + 1
    m = np.zeros((max(1, num_conv - 1), S_out), np.float32)
    j = np.arange(S_out)
    for l in range(num_conv - 1):
        marg = shift * (num_conv - 1 - l)          # margin of layer-l's output
        p = j - marg
        r, c = p // W_pad, p % W_pad
        m[l] = ((p >= 0) & (p < P) & (r >= 1) & (r <= H)
                & (c >= 1) & (c <= W)).astype(np.float32)
    return jnp.asarray(m)


def _pick_tbr(B, per_roi_bytes, budget):
    cands = [c for c in (16, 8, 4, 2, 1)
             if B % c == 0 and 2 * c * per_roi_bytes <= budget]
    for c in cands:                     # prefer >= 4 grid steps (megacore balance)
        if B // c >= 4:
            return c
    return cands[0] if cands else 1


# ---------------------------------------------------------------------------
# Kernel 1: fused conv(3x3, pad=1) + bias + ReLU stack (im2col -> single GEMM)
# ---------------------------------------------------------------------------
def conv_stack(conv_params, x_pad, masks, *, conv_dim, num_conv, W,
               S_out, S_buf, tbr, vmem_limit):
    B, C0, _ = x_pad.shape
    W_pad = W + 2
    cins = [C0] + [conv_dim] * (num_conv - 1)
    max_cin = max(cins)
    tap_offsets = [dy * W_pad + dx for dy in range(3) for dx in range(3)]
    out_dtype = x_pad.dtype

    def kernel(x_ref, m_ref, *rest):
        wb = rest[:2 * num_conv]
        o_ref = rest[2 * num_conv]
        col_ref = rest[2 * num_conv + 1]
        s_refs = rest[2 * num_conv + 2:]

        if num_conv > 1:
            # Only the 128-lane read margin of the ping-pong buffers is
            # (re)zeroed - a few KB per step - so next-layer tap windows past
            # S_out read zeros.  Done every step so it is also correct when the
            # megacore splits the grid across cores.
            zeros_tail = jnp.zeros((conv_dim, S_buf - S_out), out_dtype)
            s_refs[0][:, S_out:S_buf] = zeros_tail
            s_refs[1][:, S_out:S_buf] = zeros_tail
            m_all = m_ref[...]

        for b in range(tbr):
            cur = None                      # None -> layer-0 input comes from x_ref[b]
            for l in range(num_conv):
                w_ref, b_ref = wb[2 * l], wb[2 * l + 1]
                cin = cins[l]
                # In-kernel im2col: each 3x3 tap is a contiguous lane window of
                # the flattened layout -> 9 slice copies, then ONE MXU GEMM
                # with K = 9*Cin.
                for t, off in enumerate(tap_offsets):
                    if cur is None:
                        col_ref[t * cin:(t + 1) * cin, :] = \
                            x_ref[b, :, pl.ds(off, S_out)]
                    else:
                        col_ref[t * cin:(t + 1) * cin, :] = \
                            cur[:, pl.ds(off, S_out)]
                acc = jnp.dot(w_ref[...], col_ref[0:9 * cin, :],
                              preferred_element_type=jnp.float32)
                y = jnp.maximum(acc + b_ref[...], 0.0)
                if l < num_conv - 1:
                    # Zero halo/garbage columns so the next layer sees proper
                    # conv padding; lane-aligned offset-0 store (no rotation).
                    y = y * m_all[l:l + 1, :]
                    nxt = s_refs[l % 2]
                    nxt[:, 0:S_out] = y.astype(out_dtype)
                    cur = nxt
                else:
                    # Unmasked: the folded fc1 weight has zero rows at every
                    # invalid column.  Lane-dense (S_out = k*128) full store.
                    o_ref[b, :, :] = y.astype(out_dtype)

    in_specs = [
        pl.BlockSpec((tbr, C0, S_buf), lambda i: (i, 0, 0)),
        pl.BlockSpec(masks.shape, lambda i: (0, 0)),
    ]
    args = [x_pad, masks]
    for (w, bias) in conv_params:
        in_specs.append(pl.BlockSpec(w.shape, lambda i: (0, 0)))
        in_specs.append(pl.BlockSpec(bias.shape, lambda i: (0, 0)))
        args += [w, bias]

    itemsize = jnp.dtype(out_dtype).itemsize
    flops = 2 * B * S_out * sum(9 * ci * conv_dim for ci in cins)
    bytes_accessed = int(
        x_pad.size * itemsize + masks.size * 4
        + B * conv_dim * S_out * itemsize
        + sum(int(w.size) * itemsize + int(bb.size) * 4
              for (w, bb) in conv_params))

    return pl.pallas_call(
        kernel,
        out_shape=jax.ShapeDtypeStruct((B, conv_dim, S_out), out_dtype),
        grid=(B // tbr,),
        in_specs=in_specs,
        out_specs=pl.BlockSpec((tbr, conv_dim, S_out), lambda i: (i, 0, 0)),
        scratch_shapes=[
            pltpu.VMEM((9 * max_cin, S_out), out_dtype),   # im2col staging
            pltpu.VMEM((conv_dim, S_buf), out_dtype),      # ping-pong activations
            pltpu.VMEM((conv_dim, S_buf), out_dtype),
        ],
        compiler_params=pltpu.CompilerParams(
            dimension_semantics=("parallel",),
            vmem_limit_bytes=vmem_limit),
        cost_estimate=pl.CostEstimate(flops=int(flops), transcendentals=0,
                                      bytes_accessed=bytes_accessed),
    )(*args)


# ---------------------------------------------------------------------------
# Kernel 2: K-tiled fc1 + remaining FCs (+ReLU) + 6DOF -> rotation matrix
# ---------------------------------------------------------------------------
def fc_rot_stack(fc_params, conv_feat, extras, *, vmem_limit):
    B, K = conv_feat.shape
    num_fc = len(fc_params)
    w0c, w0e, b0 = fc_params[0]
    fc_pad = int(w0c.shape[1])
    out_pad = int(fc_params[-1][0].shape[1])
    itemsize = jnp.dtype(conv_feat.dtype).itemsize

    # K tile: largest multiple of 128 dividing K (K is always a multiple of
    # 128), capped at 2048 so the streamed fc1 weight tiles stay small.
    tk = 128
    for cand in range(min(K, 2048), 0, -128):
        if K % cand == 0:
            tk = cand
            break
    # ROI tile: derived from the VMEM budget (double-buffered feat + w tiles).
    budget = vmem_limit // 2
    tb = B
    for cand in (512, 256, 128, 64, 32, 16, 8):
        if B % cand == 0 and 2 * (cand + fc_pad) * tk * itemsize <= budget:
            tb = cand
            break
    num_k = K // tk

    def kernel(feat_ref, extra_ref, *rest):
        w0_ref, we_ref, b0_ref = rest[0], rest[1], rest[2]
        hid = rest[3:3 + 2 * (num_fc - 1)]
        o_ref = rest[3 + 2 * (num_fc - 1)]
        acc_ref = rest[4 + 2 * (num_fc - 1)]
        kk = pl.program_id(1)

        @pl.when(kk == 0)
        def _():
            # Init the accumulator with the tiny Kcs/rotations/Hinfs side GEMM.
            acc_ref[...] = jnp.dot(extra_ref[...], we_ref[...],
                                   preferred_element_type=jnp.float32)

        acc_ref[...] += jnp.dot(feat_ref[...], w0_ref[...],
                                preferred_element_type=jnp.float32)

        @pl.when(kk == num_k - 1)
        def _():
            h = jnp.maximum(acc_ref[...] + b0_ref[...], 0.0)
            for l in range(num_fc - 1):
                w_r, b_r = hid[2 * l], hid[2 * l + 1]
                h = jnp.maximum(
                    jnp.dot(h.astype(w_r.dtype), w_r[...],
                            preferred_element_type=jnp.float32) + b_r[...],
                    0.0)
            # --- 6DOF -> rotation matrix (f32 Gram-Schmidt + cross product) ---
            a1, a2 = h[:, 0:3], h[:, 3:6]
            eps = jnp.float32(1e-12)                          # F.normalize eps
            n1 = jnp.sqrt(jnp.sum(a1 * a1, axis=-1, keepdims=True))
            b1 = a1 / jnp.maximum(n1, eps)
            proj = jnp.sum(b1 * a2, axis=-1, keepdims=True)
            u2 = a2 - proj * b1
            n2 = jnp.sqrt(jnp.sum(u2 * u2, axis=-1, keepdims=True))
            b2 = u2 / jnp.maximum(n2, eps)
            b1x, b1y, b1z = b1[:, 0:1], b1[:, 1:2], b1[:, 2:3]
            b2x, b2y, b2z = b2[:, 0:1], b2[:, 1:2], b2[:, 2:3]
            b3x = b1y * b2z - b1z * b2y
            b3y = b1z * b2x - b1x * b2z
            b3z = b1x * b2y - b1y * b2x
            # R = stack([b1, b2, b3], dim=-1) flattened row-major per ROI,
            # zero-padded to a lane-dense 128-wide store.
            r9 = jnp.concatenate(
                [b1x, b2x, b3x, b1y, b2y, b3y, b1z, b2z, b3z], axis=-1)
            o_ref[...] = jnp.concatenate(
                [r9, jnp.zeros((r9.shape[0], out_pad - 9), jnp.float32)],
                axis=-1)

    in_specs = [
        pl.BlockSpec((tb, tk), lambda i, k: (i, k)),          # conv features
        pl.BlockSpec((tb, EXTRA_DIM), lambda i, k: (i, 0)),   # extras
        pl.BlockSpec((tk, fc_pad), lambda i, k: (k, 0)),      # fc1 conv part (K-tiled)
        pl.BlockSpec(w0e.shape, lambda i, k: (0, 0)),         # fc1 extras part
        pl.BlockSpec(b0.shape, lambda i, k: (0, 0)),
    ]
    args = [conv_feat, extras, w0c, w0e, b0]
    for (w, bias) in fc_params[1:]:
        in_specs += [pl.BlockSpec(w.shape, lambda i, k: (0, 0)),
                     pl.BlockSpec(bias.shape, lambda i, k: (0, 0))]
        args += [w, bias]

    flops = 2 * B * (K * fc_pad + EXTRA_DIM * fc_pad
                     + sum(int(w.shape[0]) * int(w.shape[1])
                           for (w, _) in fc_params[1:]))
    bytes_accessed = int(
        conv_feat.size * itemsize + extras.size * 4 + B * out_pad * 4
        + (B // tb) * sum(int(a.size) * jnp.dtype(a.dtype).itemsize
                          for a in args[2:]))

    return pl.pallas_call(
        kernel,
        out_shape=jax.ShapeDtypeStruct((B, out_pad), jnp.float32),
        grid=(B // tb, num_k),
        in_specs=in_specs,
        out_specs=pl.BlockSpec((tb, out_pad), lambda i, k: (i, 0)),
        scratch_shapes=[pltpu.VMEM((tb, fc_pad), jnp.float32)],
        compiler_params=pltpu.CompilerParams(
            dimension_semantics=("parallel", "arbitrary"),
            vmem_limit_bytes=vmem_limit),
        cost_estimate=pl.CostEstimate(flops=int(flops), transcendentals=0,
                                      bytes_accessed=bytes_accessed),
    )(*args)


# ---------------------------------------------------------------------------
# Parameter construction (synthetic init; logical + kernel layouts)
# ---------------------------------------------------------------------------
def init_params(key, in_channels, H, W, num_conv, conv_dim, num_fc, fc_dim,
                num_output_params=6):
    assert num_conv >= 1 and num_fc >= 2
    _, S_out, _ = _geom(H, W, num_conv)
    W_pad = W + 2
    fc_pad = max(128, _round_up(fc_dim, 128))
    out_pad = 128

    logical = {"convs": [], "fcs": []}
    kparams = {"convs": [], "fcs": []}

    c_in = in_channels
    for _ in range(num_conv):
        key, kw, kb = jax.random.split(key, 3)
        w = jax.random.normal(kw, (conv_dim, c_in, 3, 3), jnp.float32) * 0.05
        b = jax.random.normal(kb, (conv_dim,), jnp.float32) * 0.05
        logical["convs"].append((w, b))
        # Kernel layout: (Cout, 9*Cin) tap-major (ky, kx, ci); bias (Cout, 1).
        wk = jnp.transpose(w, (0, 2, 3, 1)).reshape(conv_dim, 9 * c_in)
        kparams["convs"].append((wk.astype(MXU_INPUT_DTYPE),
                                 b.reshape(conv_dim, 1)))
        c_in = conv_dim

    # Interior (valid) positions of the margin-0 flat layout, raster (h, w).
    j_idx = np.array([(h + 1) * W_pad + (w + 1)
                      for h in range(H) for w in range(W)], dtype=np.int32)

    fc_in = conv_dim * H * W + 27
    for k in range(num_fc):
        out_dim = num_output_params if k == num_fc - 1 else fc_dim
        out_pad_k = out_pad if k == num_fc - 1 else fc_pad
        key, kw, kb = jax.random.split(key, 3)
        w = jax.random.normal(kw, (fc_in, out_dim), jnp.float32) * 0.05  # (in, out)
        b_scale = 0.5 if k == num_fc - 1 else 0.1
        b = jax.random.normal(kb, (out_dim,), jnp.float32) * b_scale
        logical["fcs"].append((w, b))
        bk = jnp.zeros((1, out_pad_k), jnp.float32).at[0, :out_dim].set(b)
        if k == 0:
            # Fold the NCHW flatten + flat-layout padding into the fc1 rows:
            # kernel row c*S_out + j <- logical row c*H*W + h*W + w for the
            # interior positions j; all other rows are zero.
            w_conv = jnp.zeros((conv_dim, S_out, out_pad_k), jnp.float32)
            w_conv = w_conv.at[:, j_idx, :out_dim].set(
                w[:conv_dim * H * W].reshape(conv_dim, H * W, out_dim))
            w_conv = w_conv.reshape(conv_dim * S_out, out_pad_k)
            w_extra = jnp.zeros((EXTRA_DIM, out_pad_k), jnp.float32)
            w_extra = w_extra.at[:27, :out_dim].set(w[conv_dim * H * W:])
            kparams["fcs"].append((w_conv.astype(MXU_INPUT_DTYPE),
                                   w_extra, bk))
        else:
            wkk = jnp.zeros((fc_pad, out_pad_k), jnp.float32)
            wkk = wkk.at[:fc_in, :out_dim].set(w)
            kparams["fcs"].append((wkk.astype(MXU_INPUT_DTYPE), bk))
        fc_in = out_dim
    return kparams, logical


# ---------------------------------------------------------------------------
# Forward pass
# ---------------------------------------------------------------------------
def _forward_impl(params, x, Kcs, rotations, Hinfs):
    B, C, H, W = x.shape
    num_conv = len(params["convs"])
    conv_dim = params["convs"][0][0].shape[0]
    M0, S_out, S_buf = _geom(H, W, num_conv)
    H_pad, W_pad = H + 2, W + 2
    P = H_pad * W_pad
    vmem_limit = _vmem_limit_bytes()
    itemsize = jnp.dtype(MXU_INPUT_DTYPE).itemsize

    # One-time layout glue: halo-pad the ROI features, flatten row-major, and
    # place the data behind the shrinking leading margin M0.
    xk = x.astype(MXU_INPUT_DTYPE)
    xp = jnp.pad(xk, ((0, 0), (0, 0), (1, 1), (1, 1))).reshape(B, C, P)
    xp = jnp.pad(xp, ((0, 0), (0, 0), (M0, S_buf - M0 - P)))

    masks = _build_masks(H, W, num_conv, S_out)

    per_roi = (C * S_buf + conv_dim * S_out) * itemsize
    tbr = _pick_tbr(B, per_roi, vmem_limit // 2)

    conv_out = conv_stack(params["convs"], xp, masks, conv_dim=conv_dim,
                          num_conv=num_conv, W=W, S_out=S_out, S_buf=S_buf,
                          tbr=tbr, vmem_limit=vmem_limit)
    conv_feat = conv_out.reshape(B, conv_dim * S_out)   # free row-major reshape

    extras = jnp.concatenate(
        [Kcs.reshape(B, 9), rotations.reshape(B, 9), Hinfs.reshape(B, 9),
         jnp.zeros((B, EXTRA_DIM - 27), jnp.float32)], axis=-1
    ).astype(jnp.float32)

    r = fc_rot_stack(params["fcs"], conv_feat, extras, vmem_limit=vmem_limit)
    return r[:, :9].reshape(B, 3, 3)


forward = jax.jit(_forward_impl)


# ---------------------------------------------------------------------------
# Plain-JAX transcription of the PyTorch forward (validation only)
# ---------------------------------------------------------------------------
def reference_forward(logical, x, Kcs, rotations, Hinfs):
    B = x.shape[0]
    y = x.astype(jnp.float32)
    for (w, b) in logical["convs"]:
        y = jax.lax.conv_general_dilated(
            y, w, window_strides=(1, 1), padding=((1, 1), (1, 1)),
            dimension_numbers=("NCHW", "OIHW", "NCHW"))
        y = jax.nn.relu(y + b[None, :, None, None])
    feat = y.reshape(B, -1)
    feat = jnp.concatenate([feat, Kcs.reshape(B, -1), rotations.reshape(B, -1),
                            Hinfs.reshape(B, -1)], axis=-1)
    for (w, b) in logical["fcs"]:
        feat = jax.nn.relu(feat @ w + b)
    a1, a2 = feat[:, 0:3], feat[:, 3:6]

    def _norm(v):
        return v / jnp.maximum(jnp.linalg.norm(v, axis=-1, keepdims=True), 1e-12)

    b1 = _norm(a1)
    b2 = _norm(a2 - jnp.sum(b1 * a2, axis=-1, keepdims=True) * b1)
    b3 = jnp.cross(b1, b2)
    return jnp.stack([b1, b2, b3], axis=-1)


# ---------------------------------------------------------------------------
if __name__ == "__main__":
    # Small config consistent with the module: NUM_CONV=2, CONV_DIM=8,
    # NUM_FC=2, FC_DIM=32, NORM="" (conv bias=True, no norm layers).
    B, C, H, W = 2, 4, 16, 16
    NUM_CONV, CONV_DIM, NUM_FC, FC_DIM = 2, 8, 2, 32

    key = jax.random.PRNGKey(0)
    key, kx, kk, kr, kh = jax.random.split(key, 5)
    x = jax.random.normal(kx, (B, C, H, W), jnp.float32)        # ROI features (NCHW)
    Kcs = jax.random.normal(kk, (B, 3, 3), jnp.float32)         # camera intrinsics
    rotations = jax.random.normal(kr, (B, 3, 3), jnp.float32)   # prior rotations
    Hinfs = jax.random.normal(kh, (B, 3, 3), jnp.float32)       # homographies

    params, logical = init_params(key, C, H, W, NUM_CONV, CONV_DIM, NUM_FC, FC_DIM)

    R = jax.block_until_ready(forward(params, x, Kcs, rotations, Hinfs))
    assert R.shape == (B, 3, 3) and R.dtype == jnp.float32

    # In-script correctness check against the plain-JAX reference.
    R_ref = jax.block_until_ready(
        reference_forward(logical, x, Kcs, rotations, Hinfs))
    tol = 5e-3 if MXU_INPUT_DTYPE == jnp.float32 else 5e-2
    max_err = float(jnp.max(jnp.abs(R - R_ref)))
    assert max_err < tol, f"mismatch vs reference: {max_err}"

    print("KERNEL_OK")
</pallas_src>

<mosaic_0001>
module attributes {stable_mosaic.version = 11 : i64} {
  func.func @kernel(%arg0: i32, %arg1: memref<2x4x512xf32, #tpu.memory_space<vmem>>, %arg2: memref<1x384xf32, #tpu.memory_space<vmem>>, %arg3: memref<8x36xf32, #tpu.memory_space<vmem>>, %arg4: memref<8x1xf32, #tpu.memory_space<vmem>>, %arg5: memref<8x72xf32, #tpu.memory_space<vmem>>, %arg6: memref<8x1xf32, #tpu.memory_space<vmem>>, %arg7: memref<2x8x384xf32, #tpu.memory_space<vmem>>, %arg8: memref<72x384xf32, #tpu.memory_space<vmem>>, %arg9: memref<8x512xf32, #tpu.memory_space<vmem>>, %arg10: memref<8x512xf32, #tpu.memory_space<vmem>>) attributes {dimension_semantics = [#tpu.dimension_semantics<parallel>], iteration_bounds = array<i64: 1>, scalar_prefetch = 0 : i64, scratch_operands = 3 : i64, tpu.core_type = #tpu.core_type<tc>, window_params = [{transform_indices = @transform_0, window_bounds = array<i64: 2, 4, 512>}, {pipeline_mode = #tpu.pipeline_mode<synchronous>, transform_indices = @transform_1, window_bounds = array<i64: 1, 384>}, {pipeline_mode = #tpu.pipeline_mode<synchronous>, transform_indices = @transform_2, window_bounds = array<i64: 8, 36>}, {pipeline_mode = #tpu.pipeline_mode<synchronous>, transform_indices = @transform_3, window_bounds = array<i64: 8, 1>}, {pipeline_mode = #tpu.pipeline_mode<synchronous>, transform_indices = @transform_4, window_bounds = array<i64: 8, 72>}, {pipeline_mode = #tpu.pipeline_mode<synchronous>, transform_indices = @transform_5, window_bounds = array<i64: 8, 1>}, {transform_indices = @transform_6, window_bounds = array<i64: 2, 8, 384>}]} {
    %cst = arith.constant 0.000000e+00 : f32
    %0 = vector.broadcast %cst : f32 to vector<8x128xf32>
    %c0 = arith.constant 0 : index
    %c384 = arith.constant 384 : index
    %1 = vector.load %arg9[%c0, %c384] : memref<8x512xf32, #tpu.memory_space<vmem>>, vector<8x128xf32>
    tpu.vector_store %arg9[%c0, %c384], %0 {strides = array<i32>} : memref<8x512xf32, #tpu.memory_space<vmem>>, vector<8x128xf32>,
    %c0_0 = arith.constant 0 : index
    %c384_1 = arith.constant 384 : index
    %2 = vector.load %arg10[%c0_0, %c384_1] : memref<8x512xf32, #tpu.memory_space<vmem>>, vector<8x128xf32>
    tpu.vector_store %arg10[%c0_0, %c384_1], %0 {strides = array<i32>} : memref<8x512xf32, #tpu.memory_space<vmem>>, vector<8x128xf32>,
    %c0_2 = arith.constant 0 : index
    %c0_3 = arith.constant 0 : index
    %3 = vector.load %arg2[%c0_2, %c0_3] : memref<1x384xf32, #tpu.memory_space<vmem>>, vector<1x384xf32>
    %c0_4 = arith.constant 0 : index
    %c0_5 = arith.constant 0 : index
    %c0_6 = arith.constant 0 : index
    %4 = vector.load %arg1[%c0_4, %c0_5, %c0_6] : memref<2x4x512xf32, #tpu.memory_space<vmem>>, vector<1x4x384xf32>
    %5 = vector.shape_cast %4 : vector<1x4x384xf32> to vector<4x384xf32>
    %c0_7 = arith.constant 0 : index
    %c0_8 = arith.constant 0 : index
    %6 = vector.load %arg8[%c0_7, %c0_8] : memref<72x384xf32, #tpu.memory_space<vmem>>, vector<4x384xf32>
    tpu.vector_store %arg8[%c0_7, %c0_8], %5 {strides = array<i32>} : memref<72x384xf32, #tpu.memory_space<vmem>>, vector<4x384xf32>,
    %c0_9 = arith.constant 0 : index
    %c0_10 = arith.constant 0 : index
    %c1 = arith.constant 1 : index
    %7 = vector.load %arg1[%c0_9, %c0_10, %c1] : memref<2x4x512xf32, #tpu.memory_space<vmem>>, vector<1x4x384xf32>
    %8 = vector.shape_cast %7 : vector<1x4x384xf32> to vector<4x384xf32>
    %c4 = arith.constant 4 : index
    %c0_11 = arith.constant 0 : index
    %9 = vector.load %arg8[%c4, %c0_11] : memref<72x384xf32, #tpu.memory_space<vmem>>, vector<4x384xf32>
    tpu.vector_store %arg8[%c4, %c0_11], %8 {strides = array<i32>} : memref<72x384xf32, #tpu.memory_space<vmem>>, vector<4x384xf32>,
    %c0_12 = arith.constant 0 : index
    %c0_13 = arith.constant 0 : index
    %c2 = arith.constant 2 : index
    %10 = vector.load %arg1[%c0_12, %c0_13, %c2] : memref<2x4x512xf32, #tpu.memory_space<vmem>>, vector<1x4x384xf32>
    %11 = vector.shape_cast %10 : vector<1x4x384xf32> to vector<4x384xf32>
    %c8 = arith.constant 8 : index
    %c0_14 = arith.constant 0 : index
    %12 = vector.load %arg8[%c8, %c0_14] : memref<72x384xf32, #tpu.memory_space<vmem>>, vector<4x384xf32>
    tpu.vector_store %arg8[%c8, %c0_14], %11 {strides = array<i32>} : memref<72x384xf32, #tpu.memory_space<vmem>>, vector<4x384xf32>,
    %c0_15 = arith.constant 0 : index
    %c0_16 = arith.constant 0 : index
    %c18 = arith.constant 18 : index
    %13 = vector.load %arg1[%c0_15, %c0_16, %c18] : memref<2x4x512xf32, #tpu.memory_space<vmem>>, vector<1x4x384xf32>
    %14 = vector.shape_cast %13 : vector<1x4x384xf32> to vector<4x384xf32>
    %c12 = arith.constant 12 : index
    %c0_17 = arith.constant 0 : index
    %15 = vector.load %arg8[%c12, %c0_17] : memref<72x384xf32, #tpu.memory_space<vmem>>, vector<4x384xf32>
    tpu.vector_store %arg8[%c12, %c0_17], %14 {strides = array<i32>} : memref<72x384xf32, #tpu.memory_space<vmem>>, vector<4x384xf32>,
    %c0_18 = arith.constant 0 : index
    %c0_19 = arith.constant 0 : index
    %c19 = arith.constant 19 : index
    %16 = vector.load %arg1[%c0_18, %c0_19, %c19] : memref<2x4x512xf32, #tpu.memory_space<vmem>>, vector<1x4x384xf32>
    %17 = vector.shape_cast %16 : vector<1x4x384xf32> to vector<4x384xf32>
    %c16 = arith.constant 16 : index
    %c0_20 = arith.constant 0 : index
    %18 = vector.load %arg8[%c16, %c0_20] : memref<72x384xf32, #tpu.memory_space<vmem>>, vector<4x384xf32>
    tpu.vector_store %arg8[%c16, %c0_20], %17 {strides = array<i32>} : memref<72x384xf32, #tpu.memory_space<vmem>>, vector<4x384xf32>,
    %c0_21 = arith.constant 0 : index
    %c0_22 = arith.constant 0 : index
    %c20 = arith.constant 20 : index
    %19 = vector.load %arg1[%c0_21, %c0_22, %c20] : memref<2x4x512xf32, #tpu.memory_space<vmem>>, vector<1x4x384xf32>
    %20 = vector.shape_cast %19 : vector<1x4x384xf32> to vector<4x384xf32>
    %c20_23 = arith.constant 20 : index
    %c0_24 = arith.constant 0 : index
    %21 = vector.load %arg8[%c20_23, %c0_24] : memref<72x384xf32, #tpu.memory_space<vmem>>, vector<4x384xf32>
    tpu.vector_store %arg8[%c20_23, %c0_24], %20 {strides = array<i32>} : memref<72x384xf32, #tpu.memory_space<vmem>>, vector<4x384xf32>,
    %c0_25 = arith.constant 0 : index
    %c0_26 = arith.constant 0 : index
    %c36 = arith.constant 36 : index
    %22 = vector.load %arg1[%c0_25, %c0_26, %c36] : memref<2x4x512xf32, #tpu.memory_space<vmem>>, vector<1x4x384xf32>
    %23 = vector.shape_cast %22 : vector<1x4x384xf32> to vector<4x384xf32>
    %c24 = arith.constant 24 : index
    %c0_27 = arith.constant 0 : index
    %24 = vector.load %arg8[%c24, %c0_27] : memref<72x384xf32, #tpu.memory_space<vmem>>, vector<4x384xf32>
    tpu.vector_store %arg8[%c24, %c0_27], %23 {strides = array<i32>} : memref<72x384xf32, #tpu.memory_space<vmem>>, vector<4x384xf32>,
    %c0_28 = arith.constant 0 : index
    %c0_29 = arith.constant 0 : index
    %c37 = arith.constant 37 : index
    %25 = vector.load %arg1[%c0_28, %c0_29, %c37] : memref<2x4x512xf32, #tpu.memory_space<vmem>>, vector<1x4x384xf32>
    %26 = vector.shape_cast %25 : vector<1x4x384xf32> to vector<4x384xf32>
    %c28 = arith.constant 28 : index
    %c0_30 = arith.constant 0 : index
    %27 = vector.load %arg8[%c28, %c0_30] : memref<72x384xf32, #tpu.memory_space<vmem>>, vector<4x384xf32>
    tpu.vector_store %arg8[%c28, %c0_30], %26 {strides = array<i32>} : memref<72x384xf32, #tpu.memory_space<vmem>>, vector<4x384xf32>,
    %c0_31 = arith.constant 0 : index
    %c0_32 = arith.constant 0 : index
    %c38 = arith.constant 38 : index
    %28 = vector.load %arg1[%c0_31, %c0_32, %c38] : memref<2x4x512xf32, #tpu.memory_space<vmem>>, vector<1x4x384xf32>
    %29 = vector.shape_cast %28 : vector<1x4x384xf32> to vector<4x384xf32>
    %c32 = arith.constant 32 : index
    %c0_33 = arith.constant 0 : index
    %30 = vector.load %arg8[%c32, %c0_33] : memref<72x384xf32, #tpu.memory_space<vmem>>, vector<4x384xf32>
    tpu.vector_store %arg8[%c32, %c0_33], %29 {strides = array<i32>} : memref<72x384xf32, #tpu.memory_space<vmem>>, vector<4x384xf32>,
    %c0_34 = arith.constant 0 : index
    %c0_35 = arith.constant 0 : index
    %31 = vector.load %arg3[%c0_34, %c0_35] : memref<8x36xf32, #tpu.memory_space<vmem>>, vector<8x36xf32>
    %c0_36 = arith.constant 0 : index
    %c0_37 = arith.constant 0 : index
    %32 = vector.load %arg8[%c0_36, %c0_37] : memref<72x384xf32, #tpu.memory_space<vmem>>, vector<36x384xf32>
    %cst_38 = arith.constant dense<0.000000e+00> : vector<8x384xf32>
    %33 = tpu.matmul %31, %32, %cst_38 {dimension_numbers = #tpu.dot_dimension_numbers<[1], [0], [0], [1], [0, 0, 1, 1], [], []>} : vector<8x36xf32>, vector<36x384xf32>, vector<8x384xf32> -> vector<8x384xf32>
    %c0_39 = arith.constant 0 : index
    %c0_40 = arith.constant 0 : index
    %34 = vector.load %arg4[%c0_39, %c0_40] : memref<8x1xf32, #tpu.memory_space<vmem>>, vector<8x1xf32>
    %35 = vector.broadcast %34 : vector<8x1xf32> to vector<8x384xf32>
    %36 = arith.addf %33, %35 : vector<8x384xf32>
    %cst_41 = arith.constant 0.000000e+00 : f32
    %37 = vector.broadcast %cst_41 : f32 to vector<8x384xf32>
    %38 = arith.maximumf %36, %37 : vector<8x384xf32>
    %39 = vector.broadcast %3 : vector<1x384xf32> to vector<8x384xf32>
    %40 = arith.mulf %38, %39 : vector<8x384xf32>
    %c0_42 = arith.constant 0 : index
    %c0_43 = arith.constant 0 : index
    %41 = vector.load %arg9[%c0_42, %c0_43] : memref<8x512xf32, #tpu.memory_space<vmem>>, vector<8x384xf32>
    tpu.vector_store %arg9[%c0_42, %c0_43], %40 {strides = array<i32>} : memref<8x512xf32, #tpu.memory_space<vmem>>, vector<8x384xf32>,
    %c0_44 = arith.constant 0 : index
    %c0_45 = arith.constant 0 : index
    %42 = vector.load %arg9[%c0_44, %c0_45] : memref<8x512xf32, #tpu.memory_space<vmem>>, vector<8x384xf32>
    %c0_46 = arith.constant 0 : index
    %c0_47 = arith.constant 0 : index
    %43 = vector.load %arg8[%c0_46, %c0_47] : memref<72x384xf32, #tpu.memory_space<vmem>>, vector<8x384xf32>
    tpu.vector_store %arg8[%c0_46, %c0_47], %42 {strides = array<i32>} : memref<72x384xf32, #tpu.memory_space<vmem>>, vector<8x384xf32>,
    %c0_48 = arith.constant 0 : index
    %c1_49 = arith.constant 1 : index
    %44 = vector.load %arg9[%c0_48, %c1_49] : memref<8x512xf32, #tpu.memory_space<vmem>>, vector<8x384xf32>
    %c8_50 = arith.constant 8 : index
    %c0_51 = arith.constant 0 : index
    %45 = vector.load %arg8[%c8_50, %c0_51] : memref<72x384xf32, #tpu.memory_space<vmem>>, vector<8x384xf32>
    tpu.vector_store %arg8[%c8_50, %c0_51], %44 {strides = array<i32>} : memref<72x384xf32, #tpu.memory_space<vmem>>, vector<8x384xf32>,
    %c0_52 = arith.constant 0 : index
    %c2_53 = arith.constant 2 : index
    %46 = vector.load %arg9[%c0_52, %c2_53] : memref<8x512xf32, #tpu.memory_space<vmem>>, vector<8x384xf32>
    %c16_54 = arith.constant 16 : index
    %c0_55 = arith.constant 0 : index
    %47 = vector.load %arg8[%c16_54, %c0_55] : memref<72x384xf32, #tpu.memory_space<vmem>>, vector<8x384xf32>
    tpu.vector_store %arg8[%c16_54, %c0_55], %46 {strides = array<i32>} : memref<72x384xf32, #tpu.memory_space<vmem>>, vector<8x384xf32>,
    %c0_56 = arith.constant 0 : index
    %c18_57 = arith.constant 18 : index
    %48 = vector.load %arg9[%c0_56, %c18_57] : memref<8x512xf32, #tpu.memory_space<vmem>>, vector<8x384xf32>
    %c24_58 = arith.constant 24 : index
    %c0_59 = arith.constant 0 : index
    %49 = vector.load %arg8[%c24_58, %c0_59] : memref<72x384xf32, #tpu.memory_space<vmem>>, vector<8x384xf32>
    tpu.vector_store %arg8[%c24_58, %c0_59], %48 {strides = array<i32>} : memref<72x384xf32, #tpu.memory_space<vmem>>, vector<8x384xf32>,
    %c0_60 = arith.constant 0 : index
    %c19_61 = arith.constant 19 : index
    %50 = vector.load %arg9[%c0_60, %c19_61] : memref<8x512xf32, #tpu.memory_space<vmem>>, vector<8x384xf32>
    %c32_62 = arith.constant 32 : index
    %c0_63 = arith.constant 0 : index
    %51 = vector.load %arg8[%c32_62, %c0_63] : memref<72x384xf32, #tpu.memory_space<vmem>>, vector<8x384xf32>
    tpu.vector_store %arg8[%c32_62, %c0_63], %50 {strides = array<i32>} : memref<72x384xf32, #tpu.memory_space<vmem>>, vector<8x384xf32>,
    %c0_64 = arith.constant 0 : index
    %c20_65 = arith.constant 20 : index
    %52 = vector.load %arg9[%c0_64, %c20_65] : memref<8x512xf32, #tpu.memory_space<vmem>>, vector<8x384xf32>
    %c40 = arith.constant 40 : index
    %c0_66 = arith.constant 0 : index
    %53 = vector.load %arg8[%c40, %c0_66] : memref<72x384xf32, #tpu.memory_space<vmem>>, vector<8x384xf32>
    tpu.vector_store %arg8[%c40, %c0_66], %52 {strides = array<i32>} : memref<72x384xf32, #tpu.memory_space<vmem>>, vector<8x384xf32>,
    %c0_67 = arith.constant 0 : index
    %c36_68 = arith.constant 36 : index
    %54 = vector.load %arg9[%c0_67, %c36_68] : memref<8x512xf32, #tpu.memory_space<vmem>>, vector<8x384xf32>
    %c48 = arith.constant 48 : index
    %c0_69 = arith.constant 0 : index
    %55 = vector.load %arg8[%c48, %c0_69] : memref<72x384xf32, #tpu.memory_space<vmem>>, vector<8x384xf32>
    tpu.vector_store %arg8[%c48, %c0_69], %54 {strides = array<i32>} : memref<72x384xf32, #tpu.memory_space<vmem>>, vector<8x384xf32>,
    %c0_70 = arith.constant 0 : index
    %c37_71 = arith.constant 37 : index
    %56 = vector.load %arg9[%c0_70, %c37_71] : memref<8x512xf32, #tpu.memory_space<vmem>>, vector<8x384xf32>
    %c56 = arith.constant 56 : index
    %c0_72 = arith.constant 0 : index
    %57 = vector.load %arg8[%c56, %c0_72] : memref<72x384xf32, #tpu.memory_space<vmem>>, vector<8x384xf32>
    tpu.vector_store %arg8[%c56, %c0_72], %56 {strides = array<i32>} : memref<72x384xf32, #tpu.memory_space<vmem>>, vector<8x384xf32>,
    %c0_73 = arith.constant 0 : index
    %c38_74 = arith.constant 38 : index
    %58 = vector.load %arg9[%c0_73, %c38_74] : memref<8x512xf32, #tpu.memory_space<vmem>>, vector<8x384xf32>
    %c64 = arith.constant 64 : index
    %c0_75 = arith.constant 0 : index
    %59 = vector.load %arg8[%c64, %c0_75] : memref<72x384xf32, #tpu.memory_space<vmem>>, vector<8x384xf32>
    tpu.vector_store %arg8[%c64, %c0_75], %58 {strides = array<i32>} : memref<72x384xf32, #tpu.memory_space<vmem>>, vector<8x384xf32>,
    %c0_76 = arith.constant 0 : index
    %c0_77 = arith.constant 0 : index
    %60 = vector.load %arg5[%c0_76, %c0_77] : memref<8x72xf32, #tpu.memory_space<vmem>>, vector<8x72xf32>
    %c0_78 = arith.constant 0 : index
    %c0_79 = arith.constant 0 : index
    %61 = vector.load %arg8[%c0_78, %c0_79] : memref<72x384xf32, #tpu.memory_space<vmem>>, vector<72x384xf32>
    %cst_80 = arith.constant dense<0.000000e+00> : vector<8x384xf32>
    %62 = tpu.matmul %60, %61, %cst_80 {dimension_numbers = #tpu.dot_dimension_numbers<[1], [0], [0], [1], [0, 0, 1, 1], [], []>} : vector<8x72xf32>, vector<72x384xf32>, vector<8x384xf32> -> vector<8x384xf32>
    %c0_81 = arith.constant 0 : index
    %c0_82 = arith.constant 0 : index
    %63 = vector.load %arg6[%c0_81, %c0_82] : memref<8x1xf32, #tpu.memory_space<vmem>>, vector<8x1xf32>
    %64 = vector.broadcast %63 : vector<8x1xf32> to vector<8x384xf32>
    %65 = arith.addf %62, %64 : vector<8x384xf32>
    %cst_83 = arith.constant 0.000000e+00 : f32
    %66 = vector.broadcast %cst_83 : f32 to vector<8x384xf32>
    %67 = arith.maximumf %65, %66 : vector<8x384xf32>
    %c0_84 = arith.constant 0 : index
    %c0_85 = arith.constant 0 : index
    %c0_86 = arith.constant 0 : index
    %68 = vector.load %arg7[%c0_84, %c0_85, %c0_86] : memref<2x8x384xf32, #tpu.memory_space<vmem>>, vector<1x8x384xf32>
    %69 = vector.shape_cast %68 : vector<1x8x384xf32> to vector<8x384xf32>
    %70 = vector.shape_cast %67 : vector<8x384xf32> to vector<1x8x384xf32>
    tpu.vector_store %arg7[%c0_84, %c0_85, %c0_86], %70 {strides = array<i32>} : memref<2x8x384xf32, #tpu.memory_space<vmem>>, vector<1x8x384xf32>,
    %c1_87 = arith.constant 1 : index
    %c0_88 = arith.constant 0 : index
    %c0_89 = arith.constant 0 : index
    %71 = vector.load %arg1[%c1_87, %c0_88, %c0_89] : memref<2x4x512xf32, #tpu.memory_space<vmem>>, vector<1x4x384xf32>
    %72 = vector.shape_cast %71 : vector<1x4x384xf32> to vector<4x384xf32>
    %c0_90 = arith.constant 0 : index
    %c0_91 = arith.constant 0 : index
    %73 = vector.load %arg8[%c0_90, %c0_91] : memref<72x384xf32, #tpu.memory_space<vmem>>, vector<4x384xf32>
    tpu.vector_store %arg8[%c0_90, %c0_91], %72 {strides = array<i32>} : memref<72x384xf32, #tpu.memory_space<vmem>>, vector<4x384xf32>,
    %c1_92 = arith.constant 1 : index
    %c0_93 = arith.constant 0 : index
    %c1_94 = arith.constant 1 : index
    %74 = vector.load %arg1[%c1_92, %c0_93, %c1_94] : memref<2x4x512xf32, #tpu.memory_space<vmem>>, vector<1x4x384xf32>
    %75 = vector.shape_cast %74 : vector<1x4x384xf32> to vector<4x384xf32>
    %c4_95 = arith.constant 4 : index
    %c0_96 = arith.constant 0 : index
    %76 = vector.load %arg8[%c4_95, %c0_96] : memref<72x384xf32, #tpu.memory_space<vmem>>, vector<4x384xf32>
    tpu.vector_store %arg8[%c4_95, %c0_96], %75 {strides = array<i32>} : memref<72x384xf32, #tpu.memory_space<vmem>>, vector<4x384xf32>,
    %c1_97 = arith.constant 1 : index
    %c0_98 = arith.constant 0 : index
    %c2_99 = arith.constant 2 : index
    %77 = vector.load %arg1[%c1_97, %c0_98, %c2_99] : memref<2x4x512xf32, #tpu.memory_space<vmem>>, vector<1x4x384xf32>
    %78 = vector.shape_cast %77 : vector<1x4x384xf32> to vector<4x384xf32>
    %c8_100 = arith.constant 8 : index
    %c0_101 = arith.constant 0 : index
    %79 = vector.load %arg8[%c8_100, %c0_101] : memref<72x384xf32, #tpu.memory_space<vmem>>, vector<4x384xf32>
    tpu.vector_store %arg8[%c8_100, %c0_101], %78 {strides = array<i32>} : memref<72x384xf32, #tpu.memory_space<vmem>>, vector<4x384xf32>,
    %c1_102 = arith.constant 1 : index
    %c0_103 = arith.constant 0 : index
    %c18_104 = arith.constant 18 : index
    %80 = vector.load %arg1[%c1_102, %c0_103, %c18_104] : memref<2x4x512xf32, #tpu.memory_space<vmem>>, vector<1x4x384xf32>
    %81 = vector.shape_cast %80 : vector<1x4x384xf32> to vector<4x384xf32>
    %c12_105 = arith.constant 12 : index
    %c0_106 = arith.constant 0 : index
    %82 = vector.load %arg8[%c12_105, %c0_106] : memref<72x384xf32, #tpu.memory_space<vmem>>, vector<4x384xf32>
    tpu.vector_store %arg8[%c12_105, %c0_106], %81 {strides = array<i32>} : memref<72x384xf32, #tpu.memory_space<vmem>>, vector<4x384xf32>,
    %c1_107 = arith.constant 1 : index
    %c0_108 = arith.constant 0 : index
    %c19_109 = arith.constant 19 : index
    %83 = vector.load %arg1[%c1_107, %c0_108, %c19_109] : memref<2x4x512xf32, #tpu.memory_space<vmem>>, vector<1x4x384xf32>
    %84 = vector.shape_cast %83 : vector<1x4x384xf32> to vector<4x384xf32>
    %c16_110 = arith.constant 16 : index
    %c0_111 = arith.constant 0 : index
    %85 = vector.load %arg8[%c16_110, %c0_111] : memref<72x384xf32, #tpu.memory_space<vmem>>, vector<4x384xf32>
    tpu.vector_store %arg8[%c16_110, %c0_111], %84 {strides = array<i32>} : memref<72x384xf32, #tpu.memory_space<vmem>>, vector<4x384xf32>,
    %c1_112 = arith.constant 1 : index
    %c0_113 = arith.constant 0 : index
    %c20_114 = arith.constant 20 : index
    %86 = vector.load %arg1[%c1_112, %c0_113, %c20_114] : memref<2x4x512xf32, #tpu.memory_space<vmem>>, vector<1x4x384xf32>
    %87 = vector.shape_cast %86 : vector<1x4x384xf32> to vector<4x384xf32>
    %c20_115 = arith.constant 20 : index
    %c0_116 = arith.constant 0 : index
    %88 = vector.load %arg8[%c20_115, %c0_116] : memref<72x384xf32, #tpu.memory_space<vmem>>, vector<4x384xf32>
    tpu.vector_store %arg8[%c20_115, %c0_116], %87 {strides = array<i32>} : memref<72x384xf32, #tpu.memory_space<vmem>>, vector<4x384xf32>,
    %c1_117 = arith.constant 1 : index
    %c0_118 = arith.constant 0 : index
    %c36_119 = arith.constant 36 : index
    %89 = vector.load %arg1[%c1_117, %c0_118, %c36_119] : memref<2x4x512xf32, #tpu.memory_space<vmem>>, vector<1x4x384xf32>
    %90 = vector.shape_cast %89 : vector<1x4x384xf32> to vector<4x384xf32>
    %c24_120 = arith.constant 24 : index
    %c0_121 = arith.constant 0 : index
    %91 = vector.load %arg8[%c24_120, %c0_121] : memref<72x384xf32, #tpu.memory_space<vmem>>, vector<4x384xf32>
    tpu.vector_store %arg8[%c24_120, %c0_121], %90 {strides = array<i32>} : memref<72x384xf32, #tpu.memory_space<vmem>>, vector<4x384xf32>,
    %c1_122 = arith.constant 1 : index
    %c0_123 = arith.constant 0 : index
    %c37_124 = arith.constant 37 : index
    %92 = vector.load %arg1[%c1_122, %c0_123, %c37_124] : memref<2x4x512xf32, #tpu.memory_space<vmem>>, vector<1x4x384xf32>
    %93 = vector.shape_cast %92 : vector<1x4x384xf32> to vector<4x384xf32>
    %c28_125 = arith.constant 28 : index
    %c0_126 = arith.constant 0 : index
    %94 = vector.load %arg8[%c28_125, %c0_126] : memref<72x384xf32, #tpu.memory_space<vmem>>, vector<4x384xf32>
    tpu.vector_store %arg8[%c28_125, %c0_126], %93 {strides = array<i32>} : memref<72x384xf32, #tpu.memory_space<vmem>>, vector<4x384xf32>,
    %c1_127 = arith.constant 1 : index
    %c0_128 = arith.constant 0 : index
    %c38_129 = arith.constant 38 : index
    %95 = vector.load %arg1[%c1_127, %c0_128, %c38_129] : memref<2x4x512xf32, #tpu.memory_space<vmem>>, vector<1x4x384xf32>
    %96 = vector.shape_cast %95 : vector<1x4x384xf32> to vector<4x384xf32>
    %c32_130 = arith.constant 32 : index
    %c0_131 = arith.constant 0 : index
    %97 = vector.load %arg8[%c32_130, %c0_131] : memref<72x384xf32, #tpu.memory_space<vmem>>, vector<4x384xf32>
    tpu.vector_store %arg8[%c32_130, %c0_131], %96 {strides = array<i32>} : memref<72x384xf32, #tpu.memory_space<vmem>>, vector<4x384xf32>,
    %c0_132 = arith.constant 0 : index
    %c0_133 = arith.constant 0 : index
    %98 = vector.load %arg3[%c0_132, %c0_133] : memref<8x36xf32, #tpu.memory_space<vmem>>, vector<8x36xf32>
    %c0_134 = arith.constant 0 : index
    %c0_135 = arith.constant 0 : index
    %99 = vector.load %arg8[%c0_134, %c0_135] : memref<72x384xf32, #tpu.memory_space<vmem>>, vector<36x384xf32>
    %cst_136 = arith.constant dense<0.000000e+00> : vector<8x384xf32>
    %100 = tpu.matmul %98, %99, %cst_136 {dimension_numbers = #tpu.dot_dimension_numbers<[1], [0], [0], [1], [0, 0, 1, 1], [], []>} : vector<8x36xf32>, vector<36x384xf32>, vector<8x384xf32> -> vector<8x384xf32>
    %c0_137 = arith.constant 0 : index
    %c0_138 = arith.constant 0 : index
    %101 = vector.load %arg4[%c0_137, %c0_138] : memref<8x1xf32, #tpu.memory_space<vmem>>, vector<8x1xf32>
    %102 = vector.broadcast %101 : vector<8x1xf32> to vector<8x384xf32>
    %103 = arith.addf %100, %102 : vector<8x384xf32>
    %cst_139 = arith.constant 0.000000e+00 : f32
    %104 = vector.broadcast %cst_139 : f32 to vector<8x384xf32>
    %105 = arith.maximumf %103, %104 : vector<8x384xf32>
    %106 = vector.broadcast %3 : vector<1x384xf32> to vector<8x384xf32>
    %107 = arith.mulf %105, %106 : vector<8x384xf32>
    %c0_140 = arith.constant 0 : index
    %c0_141 = arith.constant 0 : index
    %108 = vector.load %arg9[%c0_140, %c0_141] : memref<8x512xf32, #tpu.memory_space<vmem>>, vector<8x384xf32>
    tpu.vector_store %arg9[%c0_140, %c0_141], %107 {strides = array<i32>} : memref<8x512xf32, #tpu.memory_space<vmem>>, vector<8x384xf32>,
    %c0_142 = arith.constant 0 : index
    %c0_143 = arith.constant 0 : index
    %109 = vector.load %arg9[%c0_142, %c0_143] : memref<8x512xf32, #tpu.memory_space<vmem>>, vector<8x384xf32>
    %c0_144 = arith.constant 0 : index
    %c0_145 = arith.constant 0 : index
    %110 = vector.load %arg8[%c0_144, %c0_145] : memref<72x384xf32, #tpu.memory_space<vmem>>, vector<8x384xf32>
    tpu.vector_store %arg8[%c0_144, %c0_145], %109 {strides = array<i32>} : memref<72x384xf32, #tpu.memory_space<vmem>>, vector<8x384xf32>,
    %c0_146 = arith.constant 0 : index
    %c1_147 = arith.constant 1 : index
    %111 = vector.load %arg9[%c0_146, %c1_147] : memref<8x512xf32, #tpu.memory_space<vmem>>, vector<8x384xf32>
    %c8_148 = arith.constant 8 : index
    %c0_149 = arith.constant 0 : index
    %112 = vector.load %arg8[%c8_148, %c0_149] : memref<72x384xf32, #tpu.memory_space<vmem>>, vector<8x384xf32>
    tpu.vector_store %arg8[%c8_148, %c0_149], %111 {strides = array<i32>} : memref<72x384xf32, #tpu.memory_space<vmem>>, vector<8x384xf32>,
    %c0_150 = arith.constant 0 : index
    %c2_151 = arith.constant 2 : index
    %113 = vector.load %arg9[%c0_150, %c2_151] : memref<8x512xf32, #tpu.memory_space<vmem>>, vector<8x384xf32>
    %c16_152 = arith.constant 16 : index
    %c0_153 = arith.constant 0 : index
    %114 = vector.load %arg8[%c16_152, %c0_153] : memref<72x384xf32, #tpu.memory_space<vmem>>, vector<8x384xf32>
    tpu.vector_store %arg8[%c16_152, %c0_153], %113 {strides = array<i32>} : memref<72x384xf32, #tpu.memory_space<vmem>>, vector<8x384xf32>,
    %c0_154 = arith.constant 0 : index
    %c18_155 = arith.constant 18 : index
    %115 = vector.load %arg9[%c0_154, %c18_155] : memref<8x512xf32, #tpu.memory_space<vmem>>, vector<8x384xf32>
    %c24_156 = arith.constant 24 : index
    %c0_157 = arith.constant 0 : index
    %116 = vector.load %arg8[%c24_156, %c0_157] : memref<72x384xf32, #tpu.memory_space<vmem>>, vector<8x384xf32>
    tpu.vector_store %arg8[%c24_156, %c0_157], %115 {strides = array<i32>} : memref<72x384xf32, #tpu.memory_space<vmem>>, vector<8x384xf32>,
    %c0_158 = arith.constant 0 : index
    %c19_159 = arith.constant 19 : index
    %117 = vector.load %arg9[%c0_158, %c19_159] : memref<8x512xf32, #tpu.memory_space<vmem>>, vector<8x384xf32>
    %c32_160 = arith.constant 32 : index
    %c0_161 = arith.constant 0 : index
    %118 = vector.load %arg8[%c32_160, %c0_161] : memref<72x384xf32, #tpu.memory_space<vmem>>, vector<8x384xf32>
    tpu.vector_store %arg8[%c32_160, %c0_161], %117 {strides = array<i32>} : memref<72x384xf32, #tpu.memory_space<vmem>>, vector<8x384xf32>,
    %c0_162 = arith.constant 0 : index
    %c20_163 = arith.constant 20 : index
    %119 = vector.load %arg9[%c0_162, %c20_163] : memref<8x512xf32, #tpu.memory_space<vmem>>, vector<8x384xf32>
    %c40_164 = arith.constant 40 : index
    %c0_165 = arith.constant 0 : index
    %120 = vector.load %arg8[%c40_164, %c0_165] : memref<72x384xf32, #tpu.memory_space<vmem>>, vector<8x384xf32>
    tpu.vector_store %arg8[%c40_164, %c0_165], %119 {strides = array<i32>} : memref<72x384xf32, #tpu.memory_space<vmem>>, vector<8x384xf32>,
    %c0_166 = arith.constant 0 : index
    %c36_167 = arith.constant 36 : index
    %121 = vector.load %arg9[%c0_166, %c36_167] : memref<8x512xf32, #tpu.memory_space<vmem>>, vector<8x384xf32>
    %c48_168 = arith.constant 48 : index
    %c0_169 = arith.constant 0 : index
    %122 = vector.load %arg8[%c48_168, %c0_169] : memref<72x384xf32, #tpu.memory_space<vmem>>, vector<8x384xf32>
    tpu.vector_store %arg8[%c48_168, %c0_169], %121 {strides = array<i32>} : memref<72x384xf32, #tpu.memory_space<vmem>>, vector<8x384xf32>,
    %c0_170 = arith.constant 0 : index
    %c37_171 = arith.constant 37 : index
    %123 = vector.load %arg9[%c0_170, %c37_171] : memref<8x512xf32, #tpu.memory_space<vmem>>, vector<8x384xf32>
    %c56_172 = arith.constant 56 : index
    %c0_173 = arith.constant 0 : index
    %124 = vector.load %arg8[%c56_172, %c0_173] : memref<72x384xf32, #tpu.memory_space<vmem>>, vector<8x384xf32>
    tpu.vector_store %arg8[%c56_172, %c0_173], %123 {strides = array<i32>} : memref<72x384xf32, #tpu.memory_space<vmem>>, vector<8x384xf32>,
    %c0_174 = arith.constant 0 : index
    %c38_175 = arith.constant 38 : index
    %125 = vector.load %arg9[%c0_174, %c38_175] : memref<8x512xf32, #tpu.memory_space<vmem>>, vector<8x384xf32>
    %c64_176 = arith.constant 64 : index
    %c0_177 = arith.constant 0 : index
    %126 = vector.load %arg8[%c64_176, %c0_177] : memref<72x384xf32, #tpu.memory_space<vmem>>, vector<8x384xf32>
    tpu.vector_store %arg8[%c64_176, %c0_177], %125 {strides = array<i32>} : memref<72x384xf32, #tpu.memory_space<vmem>>, vector<8x384xf32>,
    %c0_178 = arith.constant 0 : index
    %c0_179 = arith.constant 0 : index
    %127 = vector.load %arg5[%c0_178, %c0_179] : memref<8x72xf32, #tpu.memory_space<vmem>>, vector<8x72xf32>
    %c0_180 = arith.constant 0 : index
    %c0_181 = arith.constant 0 : index
    %128 = vector.load %arg8[%c0_180, %c0_181] : memref<72x384xf32, #tpu.memory_space<vmem>>, vector<72x384xf32>
    %cst_182 = arith.constant dense<0.000000e+00> : vector<8x384xf32>
    %129 = tpu.matmul %127, %128, %cst_182 {dimension_numbers = #tpu.dot_dimension_numbers<[1], [0], [0], [1], [0, 0, 1, 1], [], []>} : vector<8x72xf32>, vector<72x384xf32>, vector<8x384xf32> -> vector<8x384xf32>
    %c0_183 = arith.constant 0 : index
    %c0_184 = arith.constant 0 : index
    %130 = vector.load %arg6[%c0_183, %c0_184] : memref<8x1xf32, #tpu.memory_space<vmem>>, vector<8x1xf32>
    %131 = vector.broadcast %130 : vector<8x1xf32> to vector<8x384xf32>
    %132 = arith.addf %129, %131 : vector<8x384xf32>
    %cst_185 = arith.constant 0.000000e+00 : f32
    %133 = vector.broadcast %cst_185 : f32 to vector<8x384xf32>
    %134 = arith.maximumf %132, %133 : vector<8x384xf32>
    %c1_186 = arith.constant 1 : index
    %c0_187 = arith.constant 0 : index
    %c0_188 = arith.constant 0 : index
    %135 = vector.load %arg7[%c1_186, %c0_187, %c0_188] : memref<2x8x384xf32, #tpu.memory_space<vmem>>, vector<1x8x384xf32>
    %136 = vector.shape_cast %135 : vector<1x8x384xf32> to vector<8x384xf32>
    %137 = vector.shape_cast %134 : vector<8x384xf32> to vector<1x8x384xf32>
    tpu.vector_store %arg7[%c1_186, %c0_187, %c0_188], %137 {strides = array<i32>} : memref<2x8x384xf32, #tpu.memory_space<vmem>>, vector<1x8x384xf32>,
    return
  }
  func.func @transform_0(%arg0: i32) -> (i32, i32, i32) {
    %c0_i32 = arith.constant 0 : i32
    %c0_i32_0 = arith.constant 0 : i32
    %c0_i32_1 = arith.constant 0 : i32
    return %arg0, %c0_i32, %c0_i32_0 : i32, i32, i32
  }
  func.func @transform_1(%arg0: i32) -> (i32, i32) {
    %c0_i32 = arith.constant 0 : i32
    %c0_i32_0 = arith.constant 0 : i32
    %c0_i32_1 = arith.constant 0 : i32
    return %c0_i32, %c0_i32_0 : i32, i32
  }
  func.func @transform_2(%arg0: i32) -> (i32, i32) {
    %c0_i32 = arith.constant 0 : i32
    %c0_i32_0 = arith.constant 0 : i32
    %c0_i32_1 = arith.constant 0 : i32
    return %c0_i32, %c0_i32_0 : i32, i32
  }
  func.func @transform_3(%arg0: i32) -> (i32, i32) {
    %c0_i32 = arith.constant 0 : i32
    %c0_i32_0 = arith.constant 0 : i32
    %c0_i32_1 = arith.constant 0 : i32
    return %c0_i32, %c0_i32_0 : i32, i32
  }
  func.func @transform_4(%arg0: i32) -> (i32, i32) {
    %c0_i32 = arith.constant 0 : i32
    %c0_i32_0 = arith.constant 0 : i32
    %c0_i32_1 = arith.constant 0 : i32
    return %c0_i32, %c0_i32_0 : i32, i32
  }
  func.func @transform_5(%arg0: i32) -> (i32, i32) {
    %c0_i32 = arith.constant 0 : i32
    %c0_i32_0 = arith.constant 0 : i32
    %c0_i32_1 = arith.constant 0 : i32
    return %c0_i32, %c0_i32_0 : i32, i32
  }
  func.func @transform_6(%arg0: i32) -> (i32, i32, i32) {
    %c0_i32 = arith.constant 0 : i32
    %c0_i32_0 = arith.constant 0 : i32
    %c0_i32_1 = arith.constant 0 : i32
    return %arg0, %c0_i32, %c0_i32_0 : i32, i32, i32
  }
}

module attributes {stable_mosaic.version = 11 : i64} {
  func.func @kernel(%arg0: i32, %arg1: i32, %arg2: memref<2x1536xf32, #tpu.memory_space<vmem>>, %arg3: memref<2x32xf32, #tpu.memory_space<vmem>>, %arg4: memref<1536x128xf32, #tpu.memory_space<vmem>>, %arg5: memref<32x128xf32, #tpu.memory_space<vmem>>, %arg6: memref<1x128xf32, #tpu.memory_space<vmem>>, %arg7: memref<128x128xf32, #tpu.memory_space<vmem>>, %arg8: memref<1x128xf32, #tpu.memory_space<vmem>>, %arg9: memref<2x128xf32, #tpu.memory_space<vmem>>, %arg10: memref<2x128xf32, #tpu.memory_space<vmem>>) attributes {dimension_semantics = [#tpu.dimension_semantics<parallel>, #tpu.dimension_semantics<arbitrary>], iteration_bounds = array<i64: 1, 2>, scalar_prefetch = 0 : i64, scratch_operands = 1 : i64, tpu.core_type = #tpu.core_type<tc>, window_params = [{transform_indices = @transform_0, window_bounds = array<i64: 2, 1536>}, {transform_indices = @transform_1, window_bounds = array<i64: 2, 32>}, {transform_indices = @transform_2, window_bounds = array<i64: 1536, 128>}, {pipeline_mode = #tpu.pipeline_mode<synchronous>, transform_indices = @transform_3, window_bounds = array<i64: 32, 128>}, {pipeline_mode = #tpu.pipeline_mode<synchronous>, transform_indices = @transform_4, window_bounds = array<i64: 1, 128>}, {pipeline_mode = #tpu.pipeline_mode<synchronous>, transform_indices = @transform_5, window_bounds = array<i64: 128, 128>}, {pipeline_mode = #tpu.pipeline_mode<synchronous>, transform_indices = @transform_6, window_bounds = array<i64: 1, 128>}, {transform_indices = @transform_7, window_bounds = array<i64: 2, 128>}]} {
    %c0_i32 = arith.constant 0 : i32
    %0 = arith.cmpi eq, %arg1, %c0_i32 : i32
    %1 = arith.extui %0 : i1 to i32
    %c0_i32_0 = arith.constant 0 : i32
    %2 = arith.cmpi ne, %1, %c0_i32_0 : i32
    scf.if %2 {
      %c0_9 = arith.constant 0 : index
      %c0_10 = arith.constant 0 : index
      %12 = vector.load %arg3[%c0_9, %c0_10] : memref<2x32xf32, #tpu.memory_space<vmem>>, vector<2x32xf32>
      %c0_11 = arith.constant 0 : index
      %c0_12 = arith.constant 0 : index
      %13 = vector.load %arg5[%c0_11, %c0_12] : memref<32x128xf32, #tpu.memory_space<vmem>>, vector<32x128xf32>
      %cst_13 = arith.constant dense<0.000000e+00> : vector<2x128xf32>
      %14 = tpu.matmul %12, %13, %cst_13 {dimension_numbers = #tpu.dot_dimension_numbers<[1], [0], [0], [1], [0, 0, 1, 1], [], []>} : vector<2x32xf32>, vector<32x128xf32>, vector<2x128xf32> -> vector<2x128xf32>
      %c0_14 = arith.constant 0 : index
      %c0_15 = arith.constant 0 : index
      %15 = vector.load %arg10[%c0_14, %c0_15] : memref<2x128xf32, #tpu.memory_space<vmem>>, vector<2x128xf32>
      tpu.vector_store %arg10[%c0_14, %c0_15], %14 {strides = array<i32>} : memref<2x128xf32, #tpu.memory_space<vmem>>, vector<2x128xf32>,
    } else {
    }
    %c0 = arith.constant 0 : index
    %c0_1 = arith.constant 0 : index
    %3 = vector.load %arg10[%c0, %c0_1] : memref<2x128xf32, #tpu.memory_space<vmem>>, vector<2x128xf32>
    %c0_2 = arith.constant 0 : index
    %c0_3 = arith.constant 0 : index
    %4 = vector.load %arg2[%c0_2, %c0_3] : memref<2x1536xf32, #tpu.memory_space<vmem>>, vector<2x1536xf32>
    %c0_4 = arith.constant 0 : index
    %c0_5 = arith.constant 0 : index
    %5 = vector.load %arg4[%c0_4, %c0_5] : memref<1536x128xf32, #tpu.memory_space<vmem>>, vector<1536x128xf32>
    %cst = arith.constant dense<0.000000e+00> : vector<2x128xf32>
    %6 = tpu.matmul %4, %5, %cst {dimension_numbers = #tpu.dot_dimension_numbers<[1], [0], [0], [1], [0, 0, 1, 1], [], []>} : vector<2x1536xf32>, vector<1536x128xf32>, vector<2x128xf32> -> vector<2x128xf32>
    %7 = arith.addf %3, %6 : vector<2x128xf32>
    %c0_6 = arith.constant 0 : index
    %c0_7 = arith.constant 0 : index
    %8 = vector.load %arg10[%c0_6, %c0_7] : memref<2x128xf32, #tpu.memory_space<vmem>>, vector<2x128xf32>
    tpu.vector_store %arg10[%c0_6, %c0_7], %7 {strides = array<i32>} : memref<2x128xf32, #tpu.memory_space<vmem>>, vector<2x128xf32>,
    %c1_i32 = arith.constant 1 : i32
    %9 = arith.cmpi eq, %arg1, %c1_i32 : i32
    %10 = arith.extui %9 : i1 to i32
    %c0_i32_8 = arith.constant 0 : i32
    %11 = arith.cmpi ne, %10, %c0_i32_8 : i32
    scf.if %11 {
      %c0_9 = arith.constant 0 : index
      %c0_10 = arith.constant 0 : index
      %12 = vector.load %arg10[%c0_9, %c0_10] : memref<2x128xf32, #tpu.memory_space<vmem>>, vector<2x128xf32>
      %c0_11 = arith.constant 0 : index
      %c0_12 = arith.constant 0 : index
      %13 = vector.load %arg6[%c0_11, %c0_12] : memref<1x128xf32, #tpu.memory_space<vmem>>, vector<1x128xf32>
      %14 = vector.broadcast %13 : vector<1x128xf32> to vector<2x128xf32>
      %15 = arith.addf %12, %14 : vector<2x128xf32>
      %cst_13 = arith.constant 0.000000e+00 : f32
      %16 = vector.broadcast %cst_13 : f32 to vector<2x128xf32>
      %17 = arith.maximumf %15, %16 : vector<2x128xf32>
      %c0_14 = arith.constant 0 : index
      %c0_15 = arith.constant 0 : index
      %18 = vector.load %arg7[%c0_14, %c0_15] : memref<128x128xf32, #tpu.memory_space<vmem>>, vector<128x128xf32>
      %cst_16 = arith.constant dense<0.000000e+00> : vector<2x128xf32>
      %19 = tpu.matmul %17, %18, %cst_16 {dimension_numbers = #tpu.dot_dimension_numbers<[1], [0], [0], [1], [0, 0, 1, 1], [], []>} : vector<2x128xf32>, vector<128x128xf32>, vector<2x128xf32> -> vector<2x128xf32>
      %c0_17 = arith.constant 0 : index
      %c0_18 = arith.constant 0 : index
      %20 = vector.load %arg8[%c0_17, %c0_18] : memref<1x128xf32, #tpu.memory_space<vmem>>, vector<1x128xf32>
      %21 = vector.broadcast %20 : vector<1x128xf32> to vector<2x128xf32>
      %22 = arith.addf %19, %21 : vector<2x128xf32>
      %cst_19 = arith.constant 0.000000e+00 : f32
      %23 = vector.broadcast %cst_19 : f32 to vector<2x128xf32>
      %24 = arith.maximumf %22, %23 : vector<2x128xf32>
      %25 = vector.extract_strided_slice %24 {offsets = [0, 0], sizes = [2, 3], strides = [1, 1]} : vector<2x128xf32> to vector<2x3xf32>
      %26 = vector.extract_strided_slice %24 {offsets = [0, 3], sizes = [2, 3], strides = [1, 1]} : vector<2x128xf32> to vector<2x3xf32>
      %27 = arith.mulf %25, %25 : vector<2x3xf32>
      %cst_20 = arith.constant dense<0.000000e+00> : vector<2xf32>
      %28 = vector.multi_reduction <add>, %27, %cst_20 [1] : vector<2x3xf32> to vector<2xf32>
      %29 = vector.shape_cast %28 : vector<2xf32> to vector<2x1xf32>
      %30 = math.sqrt %29 : vector<2x1xf32>
      %cst_21 = arith.constant 9.99999996E-13 : f32
      %31 = vector.broadcast %cst_21 : f32 to vector<2x1xf32>
      %32 = arith.maximumf %30, %31 : vector<2x1xf32>
      %33 = vector.broadcast %32 : vector<2x1xf32> to vector<2x3xf32>
      %34 = arith.divf %25, %33 : vector<2x3xf32>
      %35 = arith.mulf %34, %26 : vector<2x3xf32>
      %cst_22 = arith.constant dense<0.000000e+00> : vector<2xf32>
      %36 = vector.multi_reduction <add>, %35, %cst_22 [1] : vector<2x3xf32> to vector<2xf32>
      %37 = vector.shape_cast %36 : vector<2xf32> to vector<2x1xf32>
      %38 = vector.broadcast %37 : vector<2x1xf32> to vector<2x3xf32>
      %39 = arith.mulf %38, %34 : vector<2x3xf32>
      %40 = arith.subf %26, %39 : vector<2x3xf32>
      %41 = arith.mulf %40, %40 : vector<2x3xf32>
      %cst_23 = arith.constant dense<0.000000e+00> : vector<2xf32>
      %42 = vector.multi_reduction <add>, %41, %cst_23 [1] : vector<2x3xf32> to vector<2xf32>
      %43 = vector.shape_cast %42 : vector<2xf32> to vector<2x1xf32>
      %44 = math.sqrt %43 : vector<2x1xf32>
      %cst_24 = arith.constant 9.99999996E-13 : f32
      %45 = vector.broadcast %cst_24 : f32 to vector<2x1xf32>
      %46 = arith.maximumf %44, %45 : vector<2x1xf32>
      %47 = vector.broadcast %46 : vector<2x1xf32> to vector<2x3xf32>
      %48 = arith.divf %40, %47 : vector<2x3xf32>
      %49 = vector.extract_strided_slice %34 {offsets = [0, 0], sizes = [2, 1], strides = [1, 1]} : vector<2x3xf32> to vector<2x1xf32>
      %50 = vector.extract_strided_slice %34 {offsets = [0, 1], sizes = [2, 1], strides = [1, 1]} : vector<2x3xf32> to vector<2x1xf32>
      %51 = vector.extract_strided_slice %34 {offsets = [0, 2], sizes = [2, 1], strides = [1, 1]} : vector<2x3xf32> to vector<2x1xf32>
      %52 = vector.extract_strided_slice %48 {offsets = [0, 0], sizes = [2, 1], strides = [1, 1]} : vector<2x3xf32> to vector<2x1xf32>
      %53 = vector.extract_strided_slice %48 {offsets = [0, 1], sizes = [2, 1], strides = [1, 1]} : vector<2x3xf32> to vector<2x1xf32>
      %54 = vector.extract_strided_slice %48 {offsets = [0, 2], sizes = [2, 1], strides = [1, 1]} : vector<2x3xf32> to vector<2x1xf32>
      %55 = arith.mulf %50, %54 : vector<2x1xf32>
      %56 = arith.mulf %51, %53 : vector<2x1xf32>
      %57 = arith.subf %55, %56 : vector<2x1xf32>
      %58 = arith.mulf %51, %52 : vector<2x1xf32>
      %59 = arith.mulf %49, %54 : vector<2x1xf32>
      %60 = arith.subf %58, %59 : vector<2x1xf32>
      %61 = arith.mulf %49, %53 : vector<2x1xf32>
      %62 = arith.mulf %50, %52 : vector<2x1xf32>
      %63 = arith.subf %61, %62 : vector<2x1xf32>
      %64 = tpu.concatenate %49, %52, %57, %50, %53, %60, %51, %54, %63 in 1 : vector<2x1xf32>, vector<2x1xf32>, vector<2x1xf32>, vector<2x1xf32>, vector<2x1xf32>, vector<2x1xf32>, vector<2x1xf32>, vector<2x1xf32>, vector<2x1xf32> -> vector<2x9xf32>
      %cst_25 = arith.constant 0.000000e+00 : f32
      %65 = vector.broadcast %cst_25 : f32 to vector<2x119xf32>
      %66 = tpu.concatenate %64, %65 in 1 : vector<2x9xf32>, vector<2x119xf32> -> vector<2x128xf32>
      %c0_26 = arith.constant 0 : index
      %c0_27 = arith.constant 0 : index
      %67 = vector.load %arg9[%c0_26, %c0_27] : memref<2x128xf32, #tpu.memory_space<vmem>>, vector<2x128xf32>
      tpu.vector_store %arg9[%c0_26, %c0_27], %66 {strides = array<i32>} : memref<2x128xf32, #tpu.memory_space<vmem>>, vector<2x128xf32>,
    } else {
    }
    return
  }
  func.func @transform_0(%arg0: i32, %arg1: i32) -> (i32, i32) {
    %c0_i32 = arith.constant 0 : i32
    return %arg0, %arg1 : i32, i32
  }
  func.func @transform_1(%arg0: i32, %arg1: i32) -> (i32, i32) {
    %c0_i32 = arith.constant 0 : i32
    %c0_i32_0 = arith.constant 0 : i32
    return %arg0, %c0_i32 : i32, i32
  }
  func.func @transform_2(%arg0: i32, %arg1: i32) -> (i32, i32) {
    %c0_i32 = arith.constant 0 : i32
    %c0_i32_0 = arith.constant 0 : i32
    return %arg1, %c0_i32 : i32, i32
  }
  func.func @transform_3(%arg0: i32, %arg1: i32) -> (i32, i32) {
    %c0_i32 = arith.constant 0 : i32
    %c0_i32_0 = arith.constant 0 : i32
    %c0_i32_1 = arith.constant 0 : i32
    return %c0_i32, %c0_i32_0 : i32, i32
  }
  func.func @transform_4(%arg0: i32, %arg1: i32) -> (i32, i32) {
    %c0_i32 = arith.constant 0 : i32
    %c0_i32_0 = arith.constant 0 : i32
    %c0_i32_1 = arith.constant 0 : i32
    return %c0_i32, %c0_i32_0 : i32, i32
  }
  func.func @transform_5(%arg0: i32, %arg1: i32) -> (i32, i32) {
    %c0_i32 = arith.constant 0 : i32
    %c0_i32_0 = arith.constant 0 : i32
    %c0_i32_1 = arith.constant 0 : i32
    return %c0_i32, %c0_i32_0 : i32, i32
  }
  func.func @transform_6(%arg0: i32, %arg1: i32) -> (i32, i32) {
    %c0_i32 = arith.constant 0 : i32
    %c0_i32_0 = arith.constant 0 : i32
    %c0_i32_1 = arith.constant 0 : i32
    return %c0_i32, %c0_i32_0 : i32, i32
  }
  func.func @transform_7(%arg0: i32, %arg1: i32) -> (i32, i32) {
    %c0_i32 = arith.constant 0 : i32
    %c0_i32_0 = arith.constant 0 : i32
    return %arg0, %c0_i32 : i32, i32
  }
}

</mosaic_0001>

<bundles_post_ra>
// kernel: _forward_impl.3
= control target key start
LH: loop header
LB: loop body
LE: loop exit
PB: predicated region body
PF: predicated region fallthrough
CT: control target
= control target key end

     0   :  { %s2047_s0 = inlined_call_operand.vmem [shape: f32[2,3072], index: 0, kind: input, shape index: {}]   ;;  %s2048_s1 = inlined_call_operand.vmem [shape: f32[2,32], index: 1, kind: input, shape index: {}]   ;;  %s2049_s2 = inlined_call_operand.hbm [shape: f32[3072,128], index: 2, kind: input, shape index: {}]   ;;  %s2050_s3 = inlined_call_operand.hbm [shape: f32[32,128], index: 3, kind: input, shape index: {}]   ;;  %s2051_s4 = inlined_call_operand.hbm [shape: f32[1,128], index: 4, kind: input, shape index: {}]   ;;  %s2052_s5 = inlined_call_operand.hbm [shape: f32[128,128], index: 5, kind: input, shape index: {}]   ;;  %s2053_s6 = inlined_call_operand.hbm [shape: f32[1,128], index: 6, kind: input, shape index: {}]   ;;  %s2054_s7 = inlined_call_operand.vmem [shape: f32[2,128], index: 7, kind: output, shape index: {}]  }
   0x1   :  { %2056 = sst [smem:[#allocation14_spill]] %s2050_s3 }
   0x2   :  { %2057 = sst [smem:[#allocation15_spill]] %s2051_s4 }
   0x3   :  { %12 = vsyncpa [#allocation4], 0 }
   0x4   :  { %14 = vsyncpa [#allocation4 + $0x1], 0 }
   0x5   :  { %15 = vsyncpa [#allocation6], 0 }
   0x6   :  { %16 = vsyncpa [#allocation9], 0  ;;  %s1681_s24 = smov 0   ;;  %s1683_s25 = smov 0  }
   0x7   :  { %s1685_s26 = smov 0   ;;  %s1687_s27 = smov 0  }
   0x8   :  { %s1689_s28 = smov 0   ;;  %s1691_s29 = smov 0  }
   0x9 LB: > { %s1273_s30 = sadd.s32 4294967295, %s1623_s29   ;;  %p108_p0 = scmp.ne.s32.totalorder %s1607_s25, %s1603_s24  ;;  %s1623_s29 = sphi %s1691_s29, %s22_s29   ;;  %s1619_s28 = sphi %s1689_s28, %s2069_s28   ;;  %s1615_s27 = sphi %s1687_s27, %s2068_s27   ;;  %s1611_s26 = sphi %s1685_s26, %s2067_s26   ;;  %s1607_s25 = sphi %s1683_s25, %s2066_s25   ;;  %s1603_s24 = sphi %s1681_s24, %s2065_s24  }
   0xa   : > { %p1711_p1 = scmp.eq.s32.totalorder %s1273_s30, 0  ;;  %p1274_p2 = scmp.ge.s32.totalorder %s1623_s29, 1 }
   0xb   : > { %p229_p3 = scmp.lt.s32.totalorder %s1623_s29, 3  ;;  %s2060_s3 = sld [smem:[#allocation14_spill]] }
   0xc   : > { %p1719_p4 = por %p1711_p1, %p108_p0  ;;  %s1625_s14 = smov [#allocation5]  }
   0xd   : > { %p1726_p5 = pnand %p1274_p2, %p229_p3  ;;  %s249_s15 = sshll.u32 %s1625_s14, 4  ;;  %s250_s15 = int_to_ptr.vmem [resolvable:$true] %s249_s15 }
   0xe   : > { %s273_s19 = sshll.u32 %s2052_s5, 4  ;;  %s2055_s20 = smov 128   ;;  %s274_s19 = int_to_ptr.hbm [resolvable:$true] %s273_s19 }
   0xf   : > { %p1315_p6 = pneg %p1726_p5  ;;  %s1627_s21 = smov 8  }
  0x10   : > { %s1628_s22 = smov [#allocation8]   ;;  %s2063_s4 = sld [smem:[#allocation15_spill]] }
  0x11   : > { %s247_s12 = sshll.u32 %s2060_s3, 4  ;;  %p1734_p7 = pnand %p1315_p6, %p1711_p1  ;;  %s248_s12 = int_to_ptr.hbm [resolvable:$true] %s247_s12 }
  0x12   : > { %s275_s23 = sshll.u32 %s1628_s22, 4  ;;  %s288_s14 = sshll.u32 %s2053_s6, 4  ;;  %s276_s23 = int_to_ptr.vmem [resolvable:$true] %s275_s23  ;;  %s289_s14 = int_to_ptr.hbm [resolvable:$true] %s288_s14 }
  0x13   : > { %1318 = dma.hbm_to_vmem [thread:$0]  (!%p1734_p7), %s248_s12, 512, %s250_s15, [#allocation6], %s2055_s20, %s2055_s20, %s1627_s21  }
  0x14   : > { %1324 = dma.hbm_to_vmem [thread:$0]  (!%p1734_p7), %s274_s19, 2048, %s276_s23, [#allocation9], %s2055_s20, %s2055_s20, %s1627_s21  }
  0x15   : > { %s1629_s15 = smov [#allocation7]   ;;  %s1630_s18 = smov [#allocation10]  }
  0x16   : > { %s262_s10 = sshll.u32 %s2063_s4, 4  ;;  %s264_s17 = sshll.u32 %s1629_s15, 4  ;;  %s263_s10 = int_to_ptr.hbm [resolvable:$true] %s262_s10  ;;  %s265_s17 = int_to_ptr.vmem [resolvable:$true] %s264_s17 }
  0x17   : > { %1321 = dma.hbm_to_vmem [thread:$0]  (!%p1734_p7), %s263_s10, 16, %s265_s17, [#allocation6]  }
  0x18   : > { %s290_s22 = sshll.u32 %s1630_s18, 4  ;;  %s31_s19 = sadd.s32 1, %s1619_s28  ;;  %s291_s22 = int_to_ptr.vmem [resolvable:$true] %s290_s22 }
  0x19   : > { %1327 = dma.hbm_to_vmem [thread:$0]  (!%p1734_p7), %s289_s14, 16, %s291_s22, [#allocation9]  }
  0x1a   : > { %s95_s23 = sadd.s32 1, %s1611_s26  ;;  %p32_p8 = scmp.ge.s32.totalorder %s31_s19, 2 }
  0x1b   : > { %p102_p9 = scmp.ne.s32.totalorder %s1611_s26, %s1607_s25  ;;  %p103_p10 = scmp.eq.s32.totalorder %s1623_s29, 0 }
  0x1c   : > { %p1336_p11 = scmp.lt.s32.totalorder %s1623_s29, 2  ;;  %s2071_s19 = smov (%p32_p8, %s31_s19), 0 }
  0x1d   : > { %p104_p12 = por %p103_p10, %p102_p9  ;;  %s314_s24 = sand.u32 1, %s1611_s26  }
  0x1e   : > { %s92_s30 = ssub.s32 %s1619_s28, %s2071_s19  ;;  %s1295_s10 = smul.u32 1536, %s314_s24 }
  0x1f   : > { %p93_p13 = scmp.eq.s32.totalorder %s92_s30, 0  ;;  %s1294_s11 = smul.u32 1536, %s1619_s28 }
  0x20   : > { %p1329_p0 = pnand %p1336_p11, %p104_p12  ;;  %s318_s18 = scalar_lea.vmem [#allocation3], %s1295_s10 }
  0x21   : > { %s1774_s12 = scalar_select %p93_p13, %s1611_s26, %s95_s23  }
  0x22   : > { %s323_s15 = scalar_lea.hbm %s2049_s2, %s1294_s11  ;;  %s326_s22 = sshll.u32 %s318_s18, 4  ;;  %s327_s22 = int_to_ptr.vmem [resolvable:$true] %s326_s22 }
  0x23   : > { %s324_s17 = sshll.u32 %s323_s15, 4  ;;  %s315_s20 = scalar_lea.sflag [#allocation4], %s314_s24  ;;  %s325_s17 = int_to_ptr.hbm [resolvable:$true] %s324_s17 }
  0x24   : > { %s2064_s3 = smov 128   ;;  %338 = sbr.rel (%p1726_p5) target bundleno = 1611 (0x64b), region = 48 }
  0x25   : > { %1331 = dma.hbm_to_vmem [thread:$0]  (!%p1329_p0), %s325_s17, 24576, %s327_s22, %s315_s20, %s2064_s3, %s2064_s3, %s1627_s21  }
  0x26   : > { %s340_s23 = sand.u32 (!%p1726_p5), 1, %s1607_s25  }
  0x27   : > { %s1296_s30 = smul.u32 (!%p1726_p5), 1536, %s340_s23  ;;  %s341_s4 = scalar_lea.sflag (!%p1726_p5), [#allocation4], %s340_s23 }
  0x29   : > { %s1785_s16 = scalar_lea.vmem [#allocation3], %s1296_s30 }
  0x2a   : > { %1590 = dma.done.wait (%p1719_p4), %s341_s4, 24576  }
  0x2b   : > { %1592 = vsyncadd (%p1719_p4), %s341_s4, 4294942720 }
  0x2c   : > { %1594 = dma.done.wait (%p1711_p1), [#allocation6], 528  }
  0x2d   : > { %1596 = vsyncadd (%p1711_p1), [#allocation6], 4294966768 }
  0x2e   : > { %1598 = dma.done.wait (%p1711_p1), [#allocation9], 2064  }
  0x2f   : > { %1600 = vsyncadd (%p1711_p1), [#allocation9], 4294965232  ;;  %s408_s3 = smul.u32 12, %s1615_s27  ;;  %p1288_p3 = scmp.ne.s32.totalorder %s1615_s27, 0 }
  0x31   : > { %p411_p2 = scmp.lt.s32.totalorder %s408_s3, 23  ;;  %430 = sbr.rel (%p1288_p3) target bundleno = 189 (0xbd), region = 72 }
  0x33   : > { %s2073_s3 = smov (!%p411_p2, %s408_s3), 23 }
  0x34   : > { %s1287_s13 = sshll.u32 %s2073_s3, 1 }
  0x35   : > { %s1803_s4 = scalar_lea.vmem %s2047_s0, %s1287_s13 }
  0x36   : > { %v435_v0 = vld [vmem:[#allocation5 + $0x18] sm:$0xff]  ;;  %v434_v1 = vld [vmem:[#allocation5 + $0x10] sm:$0xff]  ;;  %v433_v2 = vld [vmem:[#allocation5 + $0x8] sm:$0xff]  ;;  %vm436_vm0 = vcmask 261120  }
  0x37   : > { %452 = vmatpush.msra.mxu0 %v435_v0  ;;  %v432_v3 = vld [vmem:[#allocation5] sm:$0xff]  ;;  %v431_v4 = vld [vmem:[%s2048_s1] sm:$0x3] }
  0x39   : > { %453 = vmatpush.msra.mxu0 %v434_v1 }
  0x3b   : > { %454 = vmatpush.msra.mxu0 %v433_v2 }
  0x3d   : > { %455 = vmatpush.msra.mxu0 %v432_v3 }
  0x3e   : > { %1289 = vmatmul.msk.f32.vlgmr.msra.gmra.mxu0 %vm436_vm0, %v431_v4 }
  0xbb   : > { %v457_v5 = vpop.f32.mrf.mxu0 }
  0xbc   : > { %460 = vst [vmem:[#allocation2] sm:$0x3] %v457_v5 }
  0xbd PF: > { %v480_v6 = vld [vmem:[%s1785_s16 + $0x78] sm:$0xff]  ;;  %v479_v8 = vld [vmem:[%s1785_s16 + $0x70] sm:$0xff]  ;;  %v478_v12 = vld [vmem:[%s1785_s16 + $0x68] sm:$0xff]  ;;  %p1290_p1 = scmp.ne.s32.totalorder %s1615_s27, 1 }
  0xbe   : > { %v512_v7 = vld [vmem:[%s1785_s16 + $0x178] sm:$0xff]  ;;  %688 = vmatpush.msra.mxu0 %v480_v6  ;;  %v511_v10 = vld [vmem:[%s1785_s16 + $0x170] sm:$0xff]  ;;  %v510_v14 = vld [vmem:[%s1785_s16 + $0x168] sm:$0xff]  ;;  %s1631_s27 = smov (!%p1290_p1), 125   ;;  %s1632_s24 = smov (!%p1290_p1), 3  }
  0xbf   : > { %728 = vmatpush.msra.mxu2 %v512_v7  ;;  %v496_v9 = vld [vmem:[%s1785_s16 + $0xf8] sm:$0xff]  ;;  %v495_v13 = vld [vmem:[%s1785_s16 + $0xf0] sm:$0xff]  ;;  %v494_v16 = vld [vmem:[%s1785_s16 + $0xe8] sm:$0xff]  ;;  %s1633_s10 = smov (!%p1290_p1), 123   ;;  %s1634_s11 = smov (!%p1290_p1), 126  }
  0xc0   : > { %v528_v11 = vld [vmem:[%s1785_s16 + $0x1f8] sm:$0xff]  ;;  %708 = vmatpush.msra.mxu1 %v496_v9  ;;  %689 = vmatpush.msra.mxu0 %v479_v8  ;;  %v527_v15 = vld [vmem:[%s1785_s16 + $0x1f0] sm:$0xff]  ;;  %v477_v17 = vld [vmem:[%s1785_s16 + $0x60] sm:$0xff]  ;;  %s1635_s14 = smov (!%p1290_p1), 124   ;;  %s1636_s15 = smov (!%p1290_p1), 127  }
  0xc1   : > { %748 = vmatpush.msra.mxu3 %v528_v11  ;;  %729 = vmatpush.msra.mxu2 %v511_v10  ;;  %v509_v18 = vld [vmem:[%s1785_s16 + $0x160] sm:$0xff]  ;;  %v526_v19 = vld [vmem:[%s1785_s16 + $0x1e8] sm:$0xff]  ;;  %v476_v22 = vld [vmem:[%s1785_s16 + $0x58] sm:$0xff]  ;;  %s1637_s17 = smov (!%p1290_p1), 2   ;;  %s1638_s18 = smov (!%p1290_p1), 4  }
  0xc2   : > { %709 = vmatpush.msra.mxu1 %v495_v13  ;;  %690 = vmatpush.msra.mxu0 %v478_v12  ;;  %v493_v20 = vld [vmem:[%s1785_s16 + $0xe0] sm:$0xff]  ;;  %v508_v23 = vld [vmem:[%s1785_s16 + $0x158] sm:$0xff]  ;;  %v475_v26 = vld [vmem:[%s1785_s16 + $0x50] sm:$0xff]  ;;  %s1639_s22 = smov (!%p1290_p1), 8   ;;  %s1640_s23 = smov (!%p1290_p1), 1  }
  0xc3   : > { %749 = vmatpush.msra.mxu3 %v527_v15  ;;  %730 = vmatpush.msra.mxu2 %v510_v14  ;;  %v525_v21 = vld [vmem:[%s1785_s16 + $0x1e0] sm:$0xff]  ;;  %v492_v24 = vld [vmem:[%s1785_s16 + $0xd8] sm:$0xff]  ;;  %v507_v27 = vld [vmem:[%s1785_s16 + $0x150] sm:$0xff] }
  0xc4   : > { %710 = vmatpush.msra.mxu1 %v494_v16  ;;  %691 = vmatpush.msra.mxu0 %v477_v17  ;;  %v524_v25 = vld [vmem:[%s1785_s16 + $0x1d8] sm:$0xff]  ;;  %v491_v28 = vld [vmem:[%s1785_s16 + $0xd0] sm:$0xff]  ;;  %v474_v30 = vld [vmem:[%s1785_s16 + $0x48] sm:$0xff] }
  0xc5   : > { %750 = vmatpush.msra.mxu3 %v526_v19  ;;  %731 = vmatpush.msra.mxu2 %v509_v18  ;;  %v523_v29 = vld [vmem:[%s1785_s16 + $0x1d0] sm:$0xff]  ;;  %v506_v31 = vld [vmem:[%s1785_s16 + $0x148] sm:$0xff]  ;;  %v473_v34 = vld [vmem:[%s1785_s16 + $0x40] sm:$0xff] }
  0xc6   : > { %711 = vmatpush.msra.mxu1 %v493_v20  ;;  %692 = vmatpush.msra.mxu0 %v476_v22  ;;  %v490_v32 = vld [vmem:[%s1785_s16 + $0xc8] sm:$0xff]  ;;  %v505_v35 = vld [vmem:[%s1785_s16 + $0x140] sm:$0xff]  ;;  %v472_v38 = vld [vmem:[%s1785_s16 + $0x38] sm:$0xff] }
  0xc7   : > { %751 = vmatpush.msra.mxu3 %v525_v21  ;;  %732 = vmatpush.msra.mxu2 %v508_v23  ;;  %v522_v33 = vld [vmem:[%s1785_s16 + $0x1c8] sm:$0xff]  ;;  %v489_v36 = vld [vmem:[%s1785_s16 + $0xc0] sm:$0xff]  ;;  %v504_v39 = vld [vmem:[%s1785_s16 + $0x138] sm:$0xff] }
  0xc8   : > { %712 = vmatpush.msra.mxu1 %v492_v24  ;;  %693 = vmatpush.msra.mxu0 %v475_v26  ;;  %v521_v37 = vld [vmem:[%s1785_s16 + $0x1c0] sm:$0xff]  ;;  %v488_v40 = vld [vmem:[%s1785_s16 + $0xb8] sm:$0xff]  ;;  %v471_v42 = vld [vmem:[%s1785_s16 + $0x30] sm:$0xff] }
  0xc9   : > { %752 = vmatpush.msra.mxu3 %v524_v25  ;;  %733 = vmatpush.msra.mxu2 %v507_v27  ;;  %v520_v41 = vld [vmem:[%s1785_s16 + $0x1b8] sm:$0xff]  ;;  %v503_v43 = vld [vmem:[%s1785_s16 + $0x130] sm:$0xff]  ;;  %v470_v46 = vld [vmem:[%s1785_s16 + $0x28] sm:$0xff] }
  0xca   : > { %713 = vmatpush.msra.mxu1 %v491_v28  ;;  %694 = vmatpush.msra.mxu0 %v474_v30  ;;  %v487_v44 = vld [vmem:[%s1785_s16 + $0xb0] sm:$0xff]  ;;  %v502_v47 = vld [vmem:[%s1785_s16 + $0x128] sm:$0xff]  ;;  %v469_v50 = vld [vmem:[%s1785_s16 + $0x20] sm:$0xff] }
  0xcb   : > { %753 = vmatpush.msra.mxu3 %v523_v29  ;;  %734 = vmatpush.msra.mxu2 %v506_v31  ;;  %v519_v45 = vld [vmem:[%s1785_s16 + $0x1b0] sm:$0xff]  ;;  %v486_v48 = vld [vmem:[%s1785_s16 + $0xa8] sm:$0xff]  ;;  %v501_v51 = vld [vmem:[%s1785_s16 + $0x120] sm:$0xff] }
  0xcc   : > { %714 = vmatpush.msra.mxu1 %v490_v32  ;;  %695 = vmatpush.msra.mxu0 %v473_v34  ;;  %v518_v49 = vld [vmem:[%s1785_s16 + $0x1a8] sm:$0xff]  ;;  %v485_v52 = vld [vmem:[%s1785_s16 + $0xa0] sm:$0xff]  ;;  %v468_v54 = vld [vmem:[%s1785_s16 + $0x18] sm:$0xff] }
  0xcd   : > { %754 = vmatpush.msra.mxu3 %v522_v33  ;;  %735 = vmatpush.msra.mxu2 %v505_v35  ;;  %v517_v53 = vld [vmem:[%s1785_s16 + $0x1a0] sm:$0xff]  ;;  %v500_v55 = vld [vmem:[%s1785_s16 + $0x118] sm:$0xff]  ;;  %v467_v58 = vld [vmem:[%s1785_s16 + $0x10] sm:$0xff] }
  0xce   : > { %715 = vmatpush.msra.mxu1 %v489_v36  ;;  %696 = vmatpush.msra.mxu0 %v472_v38  ;;  %v484_v56 = vld [vmem:[%s1785_s16 + $0x98] sm:$0xff]  ;;  %v499_v59 = vld [vmem:[%s1785_s16 + $0x110] sm:$0xff]  ;;  %v466_v62 = vld [vmem:[%s1785_s16 + $0x8] sm:$0xff] }
  0xcf   : > { %755 = vmatpush.msra.mxu3 %v521_v37  ;;  %736 = vmatpush.msra.mxu2 %v504_v39  ;;  %v516_v57 = vld [vmem:[%s1785_s16 + $0x198] sm:$0xff]  ;;  %v483_v60 = vld [vmem:[%s1785_s16 + $0x90] sm:$0xff]  ;;  %v498_v63 = vld [vmem:[%s1785_s16 + $0x108] sm:$0xff] }
  0xd0   : > { %716 = vmatpush.msra.mxu1 %v488_v40  ;;  %697 = vmatpush.msra.mxu0 %v471_v42  ;;  %v515_v61 = vld [vmem:[%s1785_s16 + $0x190] sm:$0xff]  ;;  %v482_v0 = vld [vmem:[%s1785_s16 + $0x88] sm:$0xff]  ;;  %v465_v2 = vld [vmem:[%s1785_s16] sm:$0xff] }
  0xd1   : > { %756 = vmatpush.msra.mxu3 %v520_v41  ;;  %737 = vmatpush.msra.mxu2 %v503_v43  ;;  %v514_v1 = vld [vmem:[%s1785_s16 + $0x188] sm:$0xff]  ;;  %v497_v3 = vld [vmem:[%s1785_s16 + $0x100] sm:$0xff]  ;;  %v544_v4 = vld [vmem:[%s1785_s16 + $0x278] sm:$0xff] }
  0xd2   : > { %717 = vmatpush.msra.mxu1 %v487_v44  ;;  %698 = vmatpush.msra.mxu0 %v470_v46  ;;  %v576_v5 = vld [vmem:[%s1785_s16 + $0x378] sm:$0xff]  ;;  %v481_v6 = vld [vmem:[%s1785_s16 + $0x80] sm:$0xff]  ;;  %v543_v8 = vld [vmem:[%s1785_s16 + $0x270] sm:$0xff] }
  0xd3   : > { %757 = vmatpush.msra.mxu3 %v519_v45  ;;  %738 = vmatpush.msra.mxu2 %v502_v47  ;;  %v513_v7 = vld [vmem:[%s1785_s16 + $0x180] sm:$0xff]  ;;  %v560_v9 = vld [vmem:[%s1785_s16 + $0x2f8] sm:$0xff]  ;;  %v575_v10 = vld [vmem:[%s1785_s16 + $0x370] sm:$0xff] }
  0xd4   : > { %718 = vmatpush.msra.mxu1 %v486_v48  ;;  %699 = vmatpush.msra.mxu0 %v469_v50  ;;  %v592_v11 = vld [vmem:[%s1785_s16 + $0x3f8] sm:$0xff]  ;;  %v542_v12 = vld [vmem:[%s1785_s16 + $0x268] sm:$0xff]  ;;  %v559_v13 = vld [vmem:[%s1785_s16 + $0x2f0] sm:$0xff] }
  0xd5   : > { %758 = vmatpush.msra.mxu3 %v518_v49  ;;  %739 = vmatpush.msra.mxu2 %v501_v51  ;;  %v574_v14 = vld [vmem:[%s1785_s16 + $0x368] sm:$0xff]  ;;  %v591_v15 = vld [vmem:[%s1785_s16 + $0x3f0] sm:$0xff]  ;;  %v541_v16 = vld [vmem:[%s1785_s16 + $0x260] sm:$0xff] }
  0xd6   : > { %719 = vmatpush.msra.mxu1 %v485_v52  ;;  %700 = vmatpush.msra.mxu0 %v468_v54  ;;  %v558_v17 = vld [vmem:[%s1785_s16 + $0x2e8] sm:$0xff]  ;;  %v573_v18 = vld [vmem:[%s1785_s16 + $0x360] sm:$0xff]  ;;  %v540_v20 = vld [vmem:[%s1785_s16 + $0x258] sm:$0xff] }
  0xd7   : > { %759 = vmatpush.msra.mxu3 %v517_v53  ;;  %740 = vmatpush.msra.mxu2 %v500_v55  ;;  %v590_v19 = vld [vmem:[%s1785_s16 + $0x3e8] sm:$0xff]  ;;  %v557_v21 = vld [vmem:[%s1785_s16 + $0x2e0] sm:$0xff]  ;;  %v572_v22 = vld [vmem:[%s1785_s16 + $0x358] sm:$0xff] }
  0xd8   : > { %720 = vmatpush.msra.mxu1 %v484_v56  ;;  %701 = vmatpush.msra.mxu0 %v467_v58  ;;  %v589_v23 = vld [vmem:[%s1785_s16 + $0x3e0] sm:$0xff]  ;;  %v539_v24 = vld [vmem:[%s1785_s16 + $0x250] sm:$0xff]  ;;  %v556_v25 = vld [vmem:[%s1785_s16 + $0x2d8] sm:$0xff] }
  0xd9   : > { %760 = vmatpush.msra.mxu3 %v516_v57  ;;  %741 = vmatpush.msra.mxu2 %v499_v59  ;;  %v571_v26 = vld [vmem:[%s1785_s16 + $0x350] sm:$0xff]  ;;  %v588_v27 = vld [vmem:[%s1785_s16 + $0x3d8] sm:$0xff]  ;;  %v538_v29 = vld [vmem:[%s1785_s16 + $0x248] sm:$0xff] }
  0xda   : > { %721 = vmatpush.msra.mxu1 %v483_v60  ;;  %702 = vmatpush.msra.mxu0 %v466_v62  ;;  %v462_v28 = vld [vmem:[%s1803_s4] sm:$0xff]  ;;  %v570_v31 = vld [vmem:[%s1785_s16 + $0x348] sm:$0xff]  ;;  %v537_v33 = vld [vmem:[%s1785_s16 + $0x240] sm:$0xff] }
  0xdb   : > { %761 = vmatpush.msra.mxu3 %v515_v61  ;;  %742 = vmatpush.msra.mxu2 %v498_v63  ;;  %v555_v30 = vld [vmem:[%s1785_s16 + $0x2d0] sm:$0xff]  ;;  %660 = vst [vmem:[#allocation1] ss:$4 sm:$0xff] %v462_v28  ;;  %v554_v34 = vld [vmem:[%s1785_s16 + $0x2c8] sm:$0xff]  ;;  %v569_v35 = vld [vmem:[%s1785_s16 + $0x340] sm:$0xff] }
  0xdc   : > { %722 = vmatpush.msra.mxu1 %v482_v0  ;;  %703 = vmatpush.msra.mxu0 %v465_v2  ;;  %v587_v32 = vld [vmem:[%s1785_s16 + $0x3d0] sm:$0xff]  ;;  %v586_v36 = vld [vmem:[%s1785_s16 + $0x3c8] sm:$0xff]  ;;  %v536_v37 = vld [vmem:[%s1785_s16 + $0x238] sm:$0xff] }
  0xdd   : > { %762 = vmatpush.msra.mxu3 %v514_v1  ;;  %743 = vmatpush.msra.mxu2 %v497_v3  ;;  %v553_v38 = vld [vmem:[%s1785_s16 + $0x2c0] sm:$0xff]  ;;  %v568_v39 = vld [vmem:[%s1785_s16 + $0x338] sm:$0xff]  ;;  %v535_v41 = vld [vmem:[%s1785_s16 + $0x230] sm:$0xff] }
  0xde   : > { %768 = vmatpush.msrb.mxu0 %v544_v4  ;;  %723 = vmatpush.msra.mxu1 %v481_v6  ;;  %v585_v40 = vld [vmem:[%s1785_s16 + $0x3c0] sm:$0xff]  ;;  %v552_v42 = vld [vmem:[%s1785_s16 + $0x2b8] sm:$0xff]  ;;  %v567_v43 = vld [vmem:[%s1785_s16 + $0x330] sm:$0xff] }
  0xdf   : > { %808 = vmatpush.msrb.mxu2 %v576_v5  ;;  %763 = vmatpush.msra.mxu3 %v513_v7  ;;  %v584_v44 = vld [vmem:[%s1785_s16 + $0x3b8] sm:$0xff]  ;;  %v534_v46 = vld [vmem:[%s1785_s16 + $0x228] sm:$0xff]  ;;  %v551_v47 = vld [vmem:[%s1785_s16 + $0x2b0] sm:$0xff] }
  0xe0   : > { %769 = vmatpush.msrb.mxu0 %v543_v8  ;;  %788 = vmatpush.msrb.mxu1 %v560_v9  ;;  %v463_v45 = vld [vmem:[%s1803_s4 + $0x8] sm:$0xff]  ;;  %v464_v48 = vld [vmem:[%s1803_s4 + $0x10] sm:$0xff]  ;;  %v583_v54 = vld [vmem:[%s1785_s16 + $0x3b0] sm:$0xff] }
  0xe1   : > { %809 = vmatpush.msrb.mxu2 %v575_v10  ;;  %828 = vmatpush.msrb.mxu3 %v592_v11  ;;  %662 = vst [vmem:[#allocation1 + $0x20] ss:$4 sm:$0xff] %v463_v45  ;;  %v566_v53 = vld [vmem:[%s1785_s16 + $0x328] sm:$0xff]  ;;  %v533_v55 = vld [vmem:[%s1785_s16 + $0x220] sm:$0xff]  ;;  %v532_v59 = vld [vmem:[%s1785_s16 + $0x218] sm:$0xff] }
  0xe2   : > { %770 = vmatpush.msrb.mxu0 %v542_v12  ;;  %789 = vmatpush.msrb.mxu1 %v559_v13  ;;  %v665_v49 = vld.sshfl [vmem:[#allocation1 + $0x10] sm:$0xff pattern:$0x73625140]  ;;  %v663_v50 = vld.sshfl [vmem:[#allocation1] sm:$0xff pattern:$0x73625140] }
  0xe3   : > { %810 = vmatpush.msrb.mxu2 %v574_v14  ;;  %829 = vmatpush.msrb.mxu3 %v591_v15  ;;  %v666_v51 = vld.sshfl [vmem:[#allocation1 + $0x18] sm:$0xff pattern:$0x73625140]  ;;  %v1916_v52 = vld.sshfl [vmem:[#allocation1 + $0x8] sm:$0xff pattern:$0x73625140] }
  0xe4   : > { %771 = vmatpush.msrb.mxu0 %v541_v16  ;;  %790 = vmatpush.msrb.mxu1 %v558_v17  ;;  %671 = vst [vmem:[#allocation1] ss:$4 sm:$0xff] %v464_v48  ;;  %v550_v56 = vld [vmem:[%s1785_s16 + $0x2a8] sm:$0xff]  ;;  %v565_v57 = vld [vmem:[%s1785_s16 + $0x320] sm:$0xff]  ;;  %v564_v61 = vld [vmem:[%s1785_s16 + $0x318] sm:$0xff] }
  0xe5   : > { %811 = vmatpush.msrb.mxu2 %v573_v18  ;;  %830 = vmatpush.msrb.mxu3 %v590_v19  ;;  %v582_v58 = vld [vmem:[%s1785_s16 + $0x3a8] sm:$0xff]  ;;  %v549_v60 = vld [vmem:[%s1785_s16 + $0x2a0] sm:$0xff]  ;;  %v531_v63 = vld [vmem:[%s1785_s16 + $0x210] sm:$0xff] }
  0xe6   : > { %772 = vmatpush.msrb.mxu0 %v540_v20  ;;  %791 = vmatpush.msrb.mxu1 %v557_v21  ;;  %v581_v62 = vld [vmem:[%s1785_s16 + $0x3a0] sm:$0xff]  ;;  %v548_v0 = vld [vmem:[%s1785_s16 + $0x298] sm:$0xff]  ;;  %v563_v1 = vld [vmem:[%s1785_s16 + $0x310] sm:$0xff] }
  0xe7   : > { %812 = vmatpush.msrb.mxu2 %v572_v22  ;;  %831 = vmatpush.msrb.mxu3 %v589_v23  ;;  %v580_v2 = vld [vmem:[%s1785_s16 + $0x398] sm:$0xff]  ;;  %v530_v3 = vld [vmem:[%s1785_s16 + $0x208] sm:$0xff]  ;;  %v547_v4 = vld [vmem:[%s1785_s16 + $0x290] sm:$0xff] }
  0xe8   : > { %773 = vmatpush.msrb.mxu0 %v539_v24  ;;  %792 = vmatpush.msrb.mxu1 %v556_v25  ;;  %v562_v5 = vld [vmem:[%s1785_s16 + $0x308] sm:$0xff]  ;;  %v579_v6 = vld [vmem:[%s1785_s16 + $0x390] sm:$0xff]  ;;  %v529_v7 = vld [vmem:[%s1785_s16 + $0x200] sm:$0xff] }
  0xe9   : > { %813 = vmatpush.msrb.mxu2 %v571_v26  ;;  %832 = vmatpush.msrb.mxu3 %v588_v27  ;;  %v546_v8 = vld [vmem:[%s1785_s16 + $0x288] sm:$0xff]  ;;  %v561_v9 = vld [vmem:[%s1785_s16 + $0x300] sm:$0xff]  ;;  %v608_v11 = vld [vmem:[%s1785_s16 + $0x478] sm:$0xff] }
  0xea   : > { %774 = vmatpush.msrb.mxu0 %v538_v29  ;;  %793 = vmatpush.msrb.mxu1 %v555_v30  ;;  %v578_v10 = vld [vmem:[%s1785_s16 + $0x388] sm:$0xff]  ;;  %v640_v12 = vld [vmem:[%s1785_s16 + $0x578] sm:$0xff]  ;;  %v545_v13 = vld [vmem:[%s1785_s16 + $0x280] sm:$0xff] }
  0xeb   : > { %814 = vmatpush.msrb.mxu2 %v570_v31  ;;  %833 = vmatpush.msrb.mxu3 %v587_v32  ;;  %v577_v14 = vld [vmem:[%s1785_s16 + $0x380] sm:$0xff]  ;;  %v607_v15 = vld [vmem:[%s1785_s16 + $0x470] sm:$0xff]  ;;  %v624_v16 = vld [vmem:[%s1785_s16 + $0x4f8] sm:$0xff] }
  0xec   : > { %775 = vmatpush.msrb.mxu0 %v537_v33  ;;  %794 = vmatpush.msrb.mxu1 %v554_v34  ;;  %v639_v17 = vld [vmem:[%s1785_s16 + $0x570] sm:$0xff]  ;;  %v656_v18 = vld [vmem:[%s1785_s16 + $0x5f8] sm:$0xff]  ;;  %v606_v19 = vld [vmem:[%s1785_s16 + $0x468] sm:$0xff] }
  0xed   : > { %815 = vmatpush.msrb.mxu2 %v569_v35  ;;  %834 = vmatpush.msrb.mxu3 %v586_v36  ;;  %v623_v20 = vld [vmem:[%s1785_s16 + $0x4f0] sm:$0xff]  ;;  %v638_v21 = vld [vmem:[%s1785_s16 + $0x568] sm:$0xff]  ;;  %v605_v24 = vld [vmem:[%s1785_s16 + $0x460] sm:$0xff] }
  0xee   : > { %776 = vmatpush.msrb.mxu0 %v536_v37  ;;  %795 = vmatpush.msrb.mxu1 %v553_v38  ;;  %v655_v22 = vld [vmem:[%s1785_s16 + $0x5f0] sm:$0xff]  ;;  %v669_v23 = vld.sshfl [vmem:[#allocation1 + $0x30] sm:$0xff pattern:$0x73625140]  ;;  %v604_v30 = vld [vmem:[%s1785_s16 + $0x458] sm:$0xff] }
  0xef   : > { %816 = vmatpush.msrb.mxu2 %v568_v39  ;;  %835 = vmatpush.msrb.mxu3 %v585_v40  ;;  %v622_v25 = vld [vmem:[%s1785_s16 + $0x4e8] sm:$0xff]  ;;  %v637_v26 = vld [vmem:[%s1785_s16 + $0x560] sm:$0xff]  ;;  %v667_v28 = vld.sshfl [vmem:[#allocation1 + $0x20] sm:$0xff pattern:$0x73625140] }
  0xf0   : > { %777 = vmatpush.msrb.mxu0 %v535_v41  ;;  %796 = vmatpush.msrb.mxu1 %v552_v42  ;;  %v654_v27 = vld [vmem:[%s1785_s16 + $0x5e8] sm:$0xff]  ;;  %v621_v31 = vld [vmem:[%s1785_s16 + $0x4e0] sm:$0xff]  ;;  %v636_v32 = vld [vmem:[%s1785_s16 + $0x558] sm:$0xff] }
  0xf1   : > { %817 = vmatpush.msrb.mxu2 %v567_v43  ;;  %836 = vmatpush.msrb.mxu3 %v584_v44  ;;  %v670_v29 = vld.sshfl [vmem:[#allocation1 + $0x38] sm:$0xff pattern:$0x73625140]  ;;  %v653_v33 = vld [vmem:[%s1785_s16 + $0x5e0] sm:$0xff]  ;;  %v620_v36 = vld [vmem:[%s1785_s16 + $0x4d8] sm:$0xff] }
  0xf2   : > { %778 = vmatpush.msrb.mxu0 %v534_v46  ;;  %797 = vmatpush.msrb.mxu1 %v551_v47  ;;  %v668_v34 = vld.sshfl [vmem:[#allocation1 + $0x28] sm:$0xff pattern:$0x73625140]  ;;  %v603_v35 = vld [vmem:[%s1785_s16 + $0x450] sm:$0xff]  ;;  %v602_v39 = vld [vmem:[%s1785_s16 + $0x448] sm:$0xff] }
  0xf3   : > { %818 = vmatpush.msrb.mxu2 %v566_v53  ;;  %837 = vmatpush.msrb.mxu3 %v583_v54  ;;  %v635_v37 = vld [vmem:[%s1785_s16 + $0x550] sm:$0xff]  ;;  %v652_v38 = vld [vmem:[%s1785_s16 + $0x5d8] sm:$0xff]  ;;  %v634_v41 = vld [vmem:[%s1785_s16 + $0x548] sm:$0xff] }
  0xf4   : > { %779 = vmatpush.msrb.mxu0 %v533_v55  ;;  %798 = vmatpush.msrb.mxu1 %v550_v56  ;;  %v619_v40 = vld [vmem:[%s1785_s16 + $0x4d0] sm:$0xff]  ;;  %v601_v43 = vld [vmem:[%s1785_s16 + $0x440] sm:$0xff]  ;;  %v618_v44 = vld [vmem:[%s1785_s16 + $0x4c8] sm:$0xff] }
  0xf5   : > { %819 = vmatpush.msrb.mxu2 %v565_v57  ;;  %838 = vmatpush.msrb.mxu3 %v582_v58  ;;  %v651_v42 = vld [vmem:[%s1785_s16 + $0x5d0] sm:$0xff]  ;;  %v633_v45 = vld [vmem:[%s1785_s16 + $0x540] sm:$0xff]  ;;  %v650_v46 = vld [vmem:[%s1785_s16 + $0x5c8] sm:$0xff] }
  0xf6   : > { %780 = vmatpush.msrb.mxu0 %v532_v59  ;;  %799 = vmatpush.msrb.mxu1 %v549_v60  ;;  %v600_v47 = vld [vmem:[%s1785_s16 + $0x438] sm:$0xff]  ;;  %v617_v48 = vld [vmem:[%s1785_s16 + $0x4c0] sm:$0xff]  ;;  %v631_v53 = vld [vmem:[%s1785_s16 + $0x530] sm:$0xff] }
  0xf7   : > { %820 = vmatpush.msrb.mxu2 %v564_v61  ;;  %839 = vmatpush.msrb.mxu3 %v581_v62  ;;  %v648_v54 = vld [vmem:[%s1785_s16 + $0x5b8] sm:$0xff]  ;;  %v598_v55 = vld [vmem:[%s1785_s16 + $0x428] sm:$0xff]  ;;  %v615_v56 = vld [vmem:[%s1785_s16 + $0x4b0] sm:$0xff] }
  0xf8   : > { %781 = vmatpush.msrb.mxu0 %v531_v63  ;;  %800 = vmatpush.msrb.mxu1 %v548_v0  ;;  %v630_v57 = vld [vmem:[%s1785_s16 + $0x528] sm:$0xff]  ;;  %v647_v58 = vld [vmem:[%s1785_s16 + $0x5b0] sm:$0xff]  ;;  %v597_v59 = vld [vmem:[%s1785_s16 + $0x420] sm:$0xff] }
  0xf9   : > { %821 = vmatpush.msrb.mxu2 %v563_v1  ;;  %840 = vmatpush.msrb.mxu3 %v580_v2  ;;  %v614_v60 = vld [vmem:[%s1785_s16 + $0x4a8] sm:$0xff]  ;;  %v629_v61 = vld [vmem:[%s1785_s16 + $0x520] sm:$0xff]  ;;  %v596_v63 = vld [vmem:[%s1785_s16 + $0x418] sm:$0xff] }
  0xfa   : > { %782 = vmatpush.msrb.mxu0 %v530_v3  ;;  %801 = vmatpush.msrb.mxu1 %v547_v4  ;;  %v646_v62 = vld [vmem:[%s1785_s16 + $0x5a8] sm:$0xff]  ;;  %v613_v0 = vld [vmem:[%s1785_s16 + $0x4a0] sm:$0xff]  ;;  %v628_v1 = vld [vmem:[%s1785_s16 + $0x518] sm:$0xff] }
  0xfb   : > { %822 = vmatpush.msrb.mxu2 %v562_v5  ;;  %841 = vmatpush.msrb.mxu3 %v579_v6  ;;  %v645_v2 = vld [vmem:[%s1785_s16 + $0x5a0] sm:$0xff]  ;;  %v595_v3 = vld [vmem:[%s1785_s16 + $0x410] sm:$0xff]  ;;  %v612_v4 = vld [vmem:[%s1785_s16 + $0x498] sm:$0xff] }
  0xfc   : > { %744 = vmatmul.f32.vlgmr.msra.gmra.mxu2 %v665_v49  ;;  %783 = vmatpush.msrb.mxu0 %v529_v7  ;;  %v632_v49 = vld [vmem:[%s1785_s16 + $0x538] sm:$0xff]  ;;  %v627_v5 = vld [vmem:[%s1785_s16 + $0x510] sm:$0xff]  ;;  %v594_v7 = vld [vmem:[%s1785_s16 + $0x408] sm:$0xff] }
  0xfd   : > { %802 = vmatpush.msrb.mxu1 %v546_v8  ;;  %823 = vmatpush.msrb.mxu2 %v561_v9  ;;  %v644_v6 = vld [vmem:[%s1785_s16 + $0x598] sm:$0xff]  ;;  %v611_v8 = vld [vmem:[%s1785_s16 + $0x490] sm:$0xff]  ;;  %v626_v9 = vld [vmem:[%s1785_s16 + $0x508] sm:$0xff] }
  0xfe   : > { %842 = vmatpush.msrb.mxu3 %v578_v10  ;;  %704 = vmatmul.f32.vlgmr.msra.gmra.mxu0 %v663_v50  ;;  %v649_v50 = vld [vmem:[%s1785_s16 + $0x5c0] sm:$0xff]  ;;  %v643_v10 = vld [vmem:[%s1785_s16 + $0x590] sm:$0xff] }
  0xff   : > { %764 = vmatmul.f32.vlgmr.msra.gmra.mxu3 %v666_v51  ;;  %848 = vmatpush.msra.mxu0 %v608_v11  ;;  %v599_v51 = vld [vmem:[%s1785_s16 + $0x430] sm:$0xff]  ;;  %v593_v11 = vld [vmem:[%s1785_s16 + $0x400] sm:$0xff] }
 0x100   : > { %888 = vmatpush.msra.mxu2 %v640_v12  ;;  %803 = vmatpush.msrb.mxu1 %v545_v13  ;;  %v610_v12 = vld [vmem:[%s1785_s16 + $0x488] sm:$0xff]  ;;  %v625_v13 = vld [vmem:[%s1785_s16 + $0x500] sm:$0xff] }
 0x101   : > { %843 = vmatpush.msrb.mxu3 %v577_v14  ;;  %724 = vmatmul.f32.vlgmr.msra.gmra.mxu1 %v1916_v52  ;;  %v616_v52 = vld [vmem:[%s1785_s16 + $0x4b8] sm:$0xff]  ;;  %v642_v14 = vld [vmem:[%s1785_s16 + $0x588] sm:$0xff] }
 0x102   : > { %849 = vmatpush.msra.mxu0 %v607_v15  ;;  %868 = vmatpush.msra.mxu1 %v624_v16  ;;  %v672_v15 = vld.sshfl [vmem:[#allocation1] sm:$0xff pattern:$0x73625140]  ;;  %v674_v16 = vld.sshfl [vmem:[#allocation1 + $0x10] sm:$0xff pattern:$0x73625140] }
 0x103   : > { %889 = vmatpush.msra.mxu2 %v639_v17  ;;  %908 = vmatpush.msra.mxu3 %v656_v18  ;;  %v609_v17 = vld [vmem:[%s1785_s16 + $0x480] sm:$0xff] }
 0x104   : > { %850 = vmatpush.msra.mxu0 %v606_v19  ;;  %869 = vmatpush.msra.mxu1 %v623_v20  ;;  %v641_v18 = vld [vmem:[%s1785_s16 + $0x580] sm:$0xff]  ;;  %v675_v20 = vld.sshfl [vmem:[#allocation1 + $0x18] sm:$0xff pattern:$0x73625140] }
 0x105   : > { %890 = vmatpush.msra.mxu2 %v638_v21  ;;  %909 = vmatpush.msra.mxu3 %v655_v22  ;;  %v673_v19 = vld.sshfl [vmem:[#allocation1 + $0x8] sm:$0xff pattern:$0x73625140] }
 0x106   : > { %824 = vmatmul.f32.vlgmr.msrb.gmra.mxu2 %v669_v23  ;;  %851 = vmatpush.msra.mxu0 %v605_v24 }
 0x107   : > { %870 = vmatpush.msra.mxu1 %v622_v25  ;;  %891 = vmatpush.msra.mxu2 %v637_v26 }
 0x108   : > { %910 = vmatpush.msra.mxu3 %v654_v27  ;;  %784 = vmatmul.f32.vlgmr.msrb.gmra.mxu0 %v667_v28 }
 0x109   : > { %844 = vmatmul.f32.vlgmr.msrb.gmra.mxu3 %v670_v29  ;;  %852 = vmatpush.msra.mxu0 %v604_v30 }
 0x10a   : > { %871 = vmatpush.msra.mxu1 %v621_v31  ;;  %892 = vmatpush.msra.mxu2 %v636_v32 }
 0x10b   : > { %911 = vmatpush.msra.mxu3 %v653_v33  ;;  %804 = vmatmul.f32.vlgmr.msrb.gmra.mxu1 %v668_v34 }
 0x10c   : > { %853 = vmatpush.msra.mxu0 %v603_v35  ;;  %872 = vmatpush.msra.mxu1 %v620_v36 }
 0x10d   : > { %893 = vmatpush.msra.mxu2 %v635_v37  ;;  %912 = vmatpush.msra.mxu3 %v652_v38 }
 0x10e   : > { %854 = vmatpush.msra.mxu0 %v602_v39  ;;  %873 = vmatpush.msra.mxu1 %v619_v40 }
 0x10f   : > { %894 = vmatpush.msra.mxu2 %v634_v41  ;;  %913 = vmatpush.msra.mxu3 %v651_v42  ;;  %v461_v42 = vld [vmem:[#allocation2] sm:$0x3] }
 0x110   : > { %855 = vmatpush.msra.mxu0 %v601_v43  ;;  %874 = vmatpush.msra.mxu1 %v618_v44 }
 0x111   : > { %895 = vmatpush.msra.mxu2 %v633_v45  ;;  %914 = vmatpush.msra.mxu3 %v650_v46 }
 0x112   : > { %856 = vmatpush.msra.mxu0 %v600_v47  ;;  %875 = vmatpush.msra.mxu1 %v617_v48 }
 0x113   : > { %896 = vmatpush.msra.mxu2 %v632_v49  ;;  %915 = vmatpush.msra.mxu3 %v649_v50 }
 0x114   : > { %857 = vmatpush.msra.mxu0 %v599_v51  ;;  %876 = vmatpush.msra.mxu1 %v616_v52 }
 0x115   : > { %897 = vmatpush.msra.mxu2 %v631_v53  ;;  %916 = vmatpush.msra.mxu3 %v648_v54 }
 0x116   : > { %858 = vmatpush.msra.mxu0 %v598_v55  ;;  %877 = vmatpush.msra.mxu1 %v615_v56 }
 0x117   : > { %898 = vmatpush.msra.mxu2 %v630_v57  ;;  %917 = vmatpush.msra.mxu3 %v647_v58 }
 0x118   : > { %859 = vmatpush.msra.mxu0 %v597_v59  ;;  %878 = vmatpush.msra.mxu1 %v614_v60 }
 0x119   : > { %899 = vmatpush.msra.mxu2 %v629_v61  ;;  %918 = vmatpush.msra.mxu3 %v646_v62 }
 0x11a   : > { %860 = vmatpush.msra.mxu0 %v596_v63  ;;  %879 = vmatpush.msra.mxu1 %v613_v0 }
 0x11b   : > { %900 = vmatpush.msra.mxu2 %v628_v1  ;;  %919 = vmatpush.msra.mxu3 %v645_v2 }
 0x11c   : > { %861 = vmatpush.msra.mxu0 %v595_v3  ;;  %880 = vmatpush.msra.mxu1 %v612_v4 }
 0x11d   : > { %901 = vmatpush.msra.mxu2 %v627_v5  ;;  %920 = vmatpush.msra.mxu3 %v644_v6 }
 0x11e   : > { %862 = vmatpush.msra.mxu0 %v594_v7  ;;  %881 = vmatpush.msra.mxu1 %v611_v8 }
 0x11f   : > { %902 = vmatpush.msra.mxu2 %v626_v9  ;;  %921 = vmatpush.msra.mxu3 %v643_v10 }
 0x120   : > { %863 = vmatpush.msra.mxu0 %v593_v11  ;;  %882 = vmatpush.msra.mxu1 %v610_v12 }
 0x121   : > { %903 = vmatpush.msra.mxu2 %v625_v13  ;;  %922 = vmatpush.msra.mxu3 %v642_v14 }
 0x122   : > { %864 = vmatmul.f32.vlgmr.msra.gmra.mxu0 %v672_v15  ;;  %904 = vmatmul.f32.vlgmr.msra.gmra.mxu2 %v674_v16 }
 0x123   : > { %883 = vmatpush.msra.mxu1 %v609_v17  ;;  %923 = vmatpush.msra.mxu3 %v641_v18 }
 0x124   : > { %884 = vmatmul.f32.vlgmr.msra.gmra.mxu1 %v673_v19  ;;  %924 = vmatmul.f32.vlgmr.msra.gmra.mxu3 %v675_v20 }
 0x17b   : > { %v705_v22 = vpop.f32.mrf.mxu0 }
 0x17e   : > { %v725_v21 = vpop.f32.mrf.mxu1 }
 0x17f   : > { %v726_v23 = vadd.f32 %v725_v21, %v705_v22  ;;  %v745_v24 = vpop.f32.mrf.mxu2 }
 0x181   : > { %v746_v25 = vadd.f32 %v745_v24, %v726_v23 }
 0x182   : > { %v765_v26 = vpop.f32.mrf.mxu3 }
 0x183   : > { %v766_v27 = vadd.f32 %v765_v26, %v746_v25 }
 0x185   : > { %v785_v28 = vpop.f32.mrf.mxu0 }
 0x186   : > { %v786_v29 = vadd.f32 %v785_v28, %v766_v27 }
 0x188   : > { %v805_v30 = vpop.f32.mrf.mxu1 }
 0x189   : > { %v806_v31 = vadd.f32 %v805_v30, %v786_v29  ;;  %v825_v32 = vpop.f32.mrf.mxu2 }
 0x18b   : > { %v826_v33 = vadd.f32 %v825_v32, %v806_v31 }
 0x18c   : > { %v845_v34 = vpop.f32.mrf.mxu3 }
 0x18d   : > { %v846_v35 = vadd.f32 %v845_v34, %v826_v33 }
 0x19f   : > { %v865_v36 = vpop.f32.mrf.mxu0 }
 0x1a0   : > { %v866_v37 = vadd.f32 %v865_v36, %v846_v35 }
 0x1a1   : > { %v885_v38 = vpop.f32.mrf.mxu1 }
 0x1a2   : > { %v886_v39 = vadd.f32 %v885_v38, %v866_v37 }
 0x1a5   : > { %v905_v40 = vpop.f32.mrf.mxu2 }
 0x1a6   : > { %v906_v41 = vadd.f32 %v905_v40, %v886_v39 }
 0x1a7   : > { %v925_v43 = vpop.f32.mrf.mxu3 }
 0x1a8   : > { %v926_v44 = vadd.f32 %v925_v43, %v906_v41  ;;  %933 = sbr.rel (%p1290_p1) target bundleno = 1611 (0x64b), region = 76 }
 0x1aa   : > { %v928_v45 = vadd.f32 %v926_v44, %v461_v42 }
 0x1ac   : > { %929 = vst [vmem:[#allocation2] sm:$0x3] %v928_v45 }
 0x1ad   : > { %v956_v46 = vld [vmem:[#allocation8 + $0x78] sm:$0xff]  ;;  %v955_v47 = vld [vmem:[#allocation8 + $0x70] sm:$0xff]  ;;  %v954_v48 = vld [vmem:[#allocation8 + $0x68] sm:$0xff]  ;;  %vm983_vm1 = vcmask 17408   ;;  %vm1113_vm14 = vcmask 7168   ;;  %vm1115_vm15 = vcmask 15360  }
 0x1ae   : > { %961 = vmatpush.msra.mxu0 %v956_v46  ;;  %v953_v49 = vld [vmem:[#allocation8 + $0x60] sm:$0xff]  ;;  %v952_v50 = vld [vmem:[#allocation8 + $0x58] sm:$0xff]  ;;  %v951_v51 = vld [vmem:[#allocation8 + $0x50] sm:$0xff]  ;;  %vm1117_vm0 = vcmask 23552  }
 0x1af   : > { %v950_v52 = vld [vmem:[#allocation8 + $0x48] sm:$0xff]  ;;  %v949_v53 = vld [vmem:[#allocation8 + $0x40] sm:$0xff]  ;;  %v948_v54 = vld [vmem:[#allocation8 + $0x38] sm:$0xff] }
 0x1b0   : > { %962 = vmatpush.msra.mxu0 %v955_v47  ;;  %v947_v55 = vld [vmem:[#allocation8 + $0x30] sm:$0xff]  ;;  %v946_v56 = vld [vmem:[#allocation8 + $0x28] sm:$0xff]  ;;  %v945_v57 = vld [vmem:[#allocation8 + $0x20] sm:$0xff] }
 0x1b1   : > { %v1405_v58 = vld [vmem:[#allocation7] ss:$0 sm:$0xff]  ;;  %v943_v61 = vld [vmem:[#allocation8 + $0x10] sm:$0xff]  ;;  %v942_v63 = vld [vmem:[#allocation8 + $0x8] sm:$0xff] }
 0x1b2   : > { %963 = vmatpush.msra.mxu0 %v954_v48  ;;  %v944_v60 = vld [vmem:[#allocation8 + $0x18] sm:$0xff]  ;;  %v941_v0 = vld [vmem:[#allocation8] sm:$0xff] }
 0x1b3   : > { %v934_v59 = vld [vmem:[#allocation2] sm:$0x3]  ;;  %v1406_v2 = vld [vmem:[#allocation10] ss:$0 sm:$0xff] }
 0x1b4   : > { %964 = vmatpush.msra.mxu0 %v953_v49  ;;  %v939_v62 = vadd.f32 %v1405_v58, %v934_v59 }
 0x1b6   : > { %965 = vmatpush.msra.mxu0 %v952_v50  ;;  %v940_v1 = vmax.f32 %v939_v62, 0.0 }
 0x1b8   : > { %966 = vmatpush.msra.mxu0 %v951_v51 }
 0x1ba   : > { %967 = vmatpush.msra.mxu0 %v950_v52 }
 0x1bc   : > { %968 = vmatpush.msra.mxu0 %v949_v53 }
 0x1be   : > { %969 = vmatpush.msra.mxu0 %v948_v54 }
 0x1c0   : > { %970 = vmatpush.msra.mxu0 %v947_v55 }
 0x1c2   : > { %971 = vmatpush.msra.mxu0 %v946_v56 }
 0x1c4   : > { %972 = vmatpush.msra.mxu0 %v945_v57 }
 0x1c6   : > { %973 = vmatpush.msra.mxu0 %v944_v60 }
 0x1c8   : > { %974 = vmatpush.msra.mxu0 %v943_v61 }
 0x1ca   : > { %975 = vmatpush.msra.mxu0 %v942_v63 }
 0x1cc   : > { %976 = vmatpush.msra.mxu0 %v941_v0 }
 0x1cd   : > { %977 = vmatmul.f32.vlgmr.msra.gmra.mxu0 %v940_v1 }
 0x24a   : > { %v978_v3 = vpop.f32.mrf.mxu0 }
 0x24b   : > { %v979_v4 = vadd.f32 %v1406_v2, %v978_v3 }
 0x24d   : > { %v981_v5 = vmax.f32 %v979_v4, 0.0 }
 0x24f   : > { %v982_v6 = vmul.f32 %v981_v5, %v981_v5 }
 0x251   : > { %v984_v7 = vsel %vm983_vm1, %v982_v6, 0.0 }
 0x252   : > { %985 = vadd.xlane.f32.xlu0 %v984_v7 }
 0x266   : > { %1016 = vrot.lane.b32.xlu0 %v981_v5, %s1631_s27 }
 0x2c5   : > { %v986_v8 = vpop.xlane.xlu0 %985 }
 0x2c6   : > { %1407 = vrsqrt.f32 %v986_v8  ;;  %vm994_vm2 = vcmp.eq.f32.partialorder %v986_v8, inf  ;;  %v997_v16 = vand.u32 2147483648, %v986_v8  ;;  %vm996_vm3 = vcmp.eq.f32.partialorder %v986_v8, 0.0 }
 0x2cc   : > { %v1408_v9 = vpop.eup %1407 }
 0x2cd   : > { %v988_v10 = vmul.f32 %v1408_v9, %v986_v8 }
 0x2cf   : > { %v989_v11 = vmul.f32 %v1408_v9, %v988_v10 }
 0x2d1   : > { %v990_v12 = vmul.f32 0.5, %v989_v11 }
 0x2d3   : > { %v991_v13 = vsub.f32 1.5, %v990_v12 }
 0x2d5   : > { %v992_v14 = vmul.f32 %v1408_v9, %v991_v13 }
 0x2d7   : > { %v993_v15 = vmul.f32 %v992_v14, %v986_v8 }
 0x2d8   : > { %v1017_v31 = vpop.permute.xlu0 %1016 }
 0x2d9   : > { %v995_v17 = vsel %vm994_vm2, %v986_v8, %v993_v15  ;;  %vm1121_vm2 = vcmask 39936  }
 0x2da   : > { %v998_v18 = vsel %vm996_vm3, %v997_v16, %v995_v17  ;;  %vm1123_vm3 = vcmask 48128  }
 0x2db   : > { %v999_v19 = vmax.f32 %v998_v18, 1e-12 }
 0x2dd   : > { %1409 = vrcp.f32 %v999_v19  ;;  %v1011_v23 = vand.u32 2147483648, %v999_v19  ;;  %v1009_v25 = vand.u32 2147483647, %v999_v19  ;;  %vm1005_vm5 = vweird.f32 %v999_v19 }
 0x2df   : > { %v1012_v27 = vor.u32 1.1754944e-38, %v1011_v23  ;;  %vm1010_vm7 = vcmp.eq.f32.partialorder %v1009_v25, 8.507059e+37 }
 0x2e3   : > { %v1410_v20 = vpop.eup %1409 }
 0x2e4   : > { %v1001_v21 = vmul.f32 %v1410_v20, %v999_v19  ;;  %vm1006_vm4 = vweird.f32 %v1410_v20 }
 0x2e5   : > { %vm1007_vm6 = vmor %vm1005_vm5, %vm1006_vm4  ;;  %vm1125_vm4 = vcmask 56320   ;;  %vm1127_vm5 = vcmask 64512  }
 0x2e6   : > { %v1002_v22 = vsub.f32 1.0, %v1001_v21 }
 0x2e8   : > { %v1003_v24 = vmul.f32 %v1410_v20, %v1002_v22 }
 0x2ea   : > { %v1004_v26 = vadd.f32 %v1410_v20, %v1003_v24 }
 0x2ec   : > { %v1008_v28 = vsel %vm1007_vm6, %v1410_v20, %v1004_v26  ;;  %vm1129_vm6 = vcmask 72704  }
 0x2ed   : > { %v1013_v29 = vsel %vm1010_vm7, %v1012_v27, %v1008_v28 }
 0x2ee   : > { %v2010_v30 = vmul.f32 %v1013_v29, %v981_v5 }
 0x2f0   : > { %v1019_v32 = vmul.f32 %v1017_v31, %v2010_v30 }
 0x2f2   : > { %v1020_v33 = vsel %vm983_vm1, %v1019_v32, 0.0 }
 0x2f3   : > { %1021 = vadd.xlane.f32.xlu1 %v1020_v33 }
 0x366   : > { %v1022_v34 = vpop.xlane.xlu1 %1021 }
 0x367   : > { %v1023_v35 = vmul.f32 %v1022_v34, %v2010_v30 }
 0x369   : > { %1025 = vrot.lane.b32.xlu1 %v1023_v35, %s1632_s24 }
 0x3db   : > { %v1026_v36 = vpop.permute.xlu1 %1025 }
 0x3dc   : > { %v1028_v37 = vsub.f32 %v981_v5, %v1026_v36 }
 0x3de   : > { %v1029_v38 = vmul.f32 %v1028_v37, %v1028_v37 }
 0x3e0   : > { %1031 = vrot.lane.b32.xlu2 %v1029_v38, %s1631_s27 }
 0x43a   : > { %v1032_v39 = vpop.permute.xlu2 %1031 }
 0x43b   : > { %v1034_v40 = vsel %vm983_vm1, %v1032_v39, 0.0  ;;  %vm1119_vm1 = vcmask 31744  }
 0x43c   : > { %1035 = vadd.xlane.f32.xlu2 %v1034_v40 }
 0x4af   : > { %v1036_v41 = vpop.xlane.xlu2 %1035 }
 0x4b0   : > { %1411 = vrsqrt.f32 %v1036_v41  ;;  %vm1044_vm8 = vcmp.eq.f32.partialorder %v1036_v41, inf  ;;  %v1047_v49 = vand.u32 2147483648, %v1036_v41  ;;  %vm1046_vm9 = vcmp.eq.f32.partialorder %v1036_v41, 0.0 }
 0x4b6   : > { %v1412_v42 = vpop.eup %1411 }
 0x4b7   : > { %v1038_v43 = vmul.f32 %v1412_v42, %v1036_v41 }
 0x4b9   : > { %v1039_v44 = vmul.f32 %v1412_v42, %v1038_v43 }
 0x4bb   : > { %v1040_v45 = vmul.f32 0.5, %v1039_v44 }
 0x4bd   : > { %v1041_v46 = vsub.f32 1.5, %v1040_v45 }
 0x4bf   : > { %v1042_v47 = vmul.f32 %v1412_v42, %v1041_v46 }
 0x4c1   : > { %v1043_v48 = vmul.f32 %v1042_v47, %v1036_v41 }
 0x4c3   : > { %v1045_v50 = vsel %vm1044_vm8, %v1036_v41, %v1043_v48 }
 0x4c4   : > { %v1048_v51 = vsel %vm1046_vm9, %v1047_v49, %v1045_v50 }
 0x4c5   : > { %v1049_v52 = vmax.f32 %v1048_v51, 1e-12 }
 0x4c7   : > { %1413 = vrcp.f32 %v1049_v52  ;;  %v1061_v56 = vand.u32 2147483648, %v1049_v52  ;;  %v1059_v58 = vand.u32 2147483647, %v1049_v52  ;;  %vm1055_vm11 = vweird.f32 %v1049_v52 }
 0x4c9   : > { %v1062_v60 = vor.u32 1.1754944e-38, %v1061_v56  ;;  %vm1060_vm13 = vcmp.eq.f32.partialorder %v1059_v58, 8.507059e+37 }
 0x4cd   : > { %v1414_v53 = vpop.eup %1413 }
 0x4ce   : > { %v1051_v54 = vmul.f32 %v1414_v53, %v1049_v52  ;;  %vm1056_vm10 = vweird.f32 %v1414_v53 }
 0x4cf   : > { %vm1057_vm12 = vmor %vm1055_vm11, %vm1056_vm10 }
 0x4d0   : > { %v1052_v55 = vsub.f32 1.0, %v1051_v54 }
 0x4d2   : > { %v1053_v57 = vmul.f32 %v1414_v53, %v1052_v55 }
 0x4d4   : > { %v1054_v59 = vadd.f32 %v1414_v53, %v1053_v57 }
 0x4d6   : > { %v1058_v61 = vsel %vm1057_vm12, %v1414_v53, %v1054_v59 }
 0x4d7   : > { %v1063_v62 = vsel %vm1060_vm13, %v1062_v60, %v1058_v61 }
 0x4d8   : > { %v1064_v63 = vmul.f32 %v1063_v62, %v1028_v37 }
 0x4da   : > { %1083 = vrot.lane.b32.xlu1 %v1064_v63, %s1633_s10  ;;  %1070 = vrot.lane.b32.xlu0 %v1064_v63, %s1634_s11 }
 0x4e2   : > { %1066 = vrot.lane.b32.xlu0 %v1064_v63, %s1635_s14 }
 0x4ea   : > { %1079 = vrot.lane.b32.xlu0 %v1064_v63, %s1636_s15 }
 0x4f2   : > { %1097 = vrot.lane.b32.xlu0 %v2010_v30, %s1637_s17 }
 0x4fa   : > { %1104 = vrot.lane.b32.xlu0 %v2010_v30, %s1638_s18 }
 0x54c   : > { %v1071_v0 = vpop.permute.xlu0 %1070  ;;  %v1084_v2 = vpop.permute.xlu1 %1083 }
 0x54d   : > { %v1073_v1 = vmul.f32 %v1071_v0, %v2010_v30  ;;  %v1086_v3 = vmul.f32 %v1084_v2, %v2010_v30  ;;  %v1114_v14 = vsel %vm1113_vm14, %v2010_v30, %v1071_v0 }
 0x54f   : > { %1075 = vrot.lane.b32.xlu1 %v1073_v1, %s1636_s15 }
 0x554   : > { %v1067_v4 = vpop.permute.xlu0 %1066 }
 0x555   : > { %v1069_v5 = vmul.f32 %v1067_v4, %v2010_v30 }
 0x557   : > { %1088 = vrot.lane.b32.xlu1 %v1086_v3, %s1637_s17 }
 0x55c   : > { %v1080_v8 = vpop.permute.xlu0 %1079 }
 0x55d   : > { %v1082_v9 = vmul.f32 %v1080_v8, %v2010_v30 }
 0x564   : > { %v1098_v12 = vpop.permute.xlu0 %1097 }
 0x56c   : > { %v1105_v17 = vpop.permute.xlu0 %1104 }
 0x5c1   : > { %v1076_v6 = vpop.permute.xlu1 %1075 }
 0x5c2   : > { %v1078_v7 = vsub.f32 %v1069_v5, %v1076_v6 }
 0x5c4   : > { %1110 = vrot.lane.b32.xlu0 %v1078_v7, %s1639_s22  ;;  %1093 = vrot.lane.b32.xlu2 %v1078_v7, %s1640_s23 }
 0x5c9   : > { %v1089_v10 = vpop.permute.xlu1 %1088 }
 0x5ca   : > { %v1091_v11 = vsub.f32 %v1082_v9, %v1089_v10 }
 0x5cc   : > { %1101 = vrot.lane.b32.xlu1 %v1091_v11, %s1632_s24 }
 0x5d4   : > { %1107 = vrot.lane.b32.xlu1 %v1064_v63, %s1637_s17 }
 0x61e   : > { %v1094_v13 = vpop.permute.xlu2 %1093 }
 0x61f   : > { %v1116_v15 = vsel %vm1115_vm15, %v1114_v14, %v1094_v13 }
 0x620   : > { %v1118_v18 = vsel %vm1117_vm0, %v1116_v15, %v1098_v12 }
 0x621   : > { %v1120_v19 = vsel %vm1119_vm1, %v1118_v18, %v1064_v63 }
 0x636   : > { %v1111_v23 = vpop.permute.xlu0 %1110 }
 0x63e   : > { %v1102_v16 = vpop.permute.xlu1 %1101 }
 0x63f   : > { %v1122_v20 = vsel %vm1121_vm2, %v1120_v19, %v1102_v16 }
 0x640   : > { %v1124_v22 = vsel %vm1123_vm3, %v1122_v20, %v1105_v17 }
 0x646   : > { %v1108_v21 = vpop.permute.xlu1 %1107 }
 0x647   : > { %v1126_v24 = vsel %vm1125_vm4, %v1124_v22, %v1108_v21 }
 0x648   : > { %v1128_v25 = vsel %vm1127_vm5, %v1126_v24, %v1111_v23 }
 0x649   : > { %v1130_v26 = vsel %vm1129_vm6, %v1128_v25, 0.0 }
 0x64a   : > { %1131 = vst [vmem:[%s2054_s7] sm:$0x3] %v1130_v26 }
 0x64b PF: > { %s22_s29 = sadd.s32 1, %s1623_s29   ;;  %s2065_s24 = smov %s1607_s25 }
 0x64c   : > { %p19_p4 = scmp.ge.s32.totalorder %s22_s29, 4   ;;  %s2066_s25 = smov %s1611_s26 }
 0x64d   : > { %s2067_s26 = smov %s1774_s12  ;;  %s2068_s27 = smov %s1619_s28 }
 0x64e   : > { %s2069_s28 = smov %s2071_s19  ;;  %21 = sbr.rel (!%p19_p4) target bundleno = 9 (0x9), region = 119 }
 0x653   :  { %1151 = vsyncpa [#allocation4], 1 }
 0x654   :  { %1153 = vsyncpa [#allocation4 + $0x1], 1 }
 0x655   :  { %1154 = vsyncpa [#allocation6], 1 }
 0x656   :  { %1155 = vsyncpa [#allocation9], 1 }

// kernel: _forward_impl.2
= control target key start
LH: loop header
LB: loop body
LE: loop exit
PB: predicated region body
PF: predicated region fallthrough
CT: control target
= control target key end

     0   :  { %11 = vsyncpa [#allocation6], 0  ;;  %s2319_s0 = inlined_call_operand.vmem [shape: f32[2,4,512], index: 0, kind: input, shape index: {}]   ;;  %s2320_s1 = inlined_call_operand.hbm [shape: f32[1,384], index: 1, kind: input, shape index: {}]   ;;  %s2321_s2 = inlined_call_operand.hbm [shape: f32[8,36], index: 2, kind: input, shape index: {}]   ;;  %s2322_s3 = inlined_call_operand.vmem [shape: f32[8,1], index: 3, kind: input, shape index: {}]   ;;  %s2323_s4 = inlined_call_operand.hbm [shape: f32[8,72], index: 4, kind: input, shape index: {}]   ;;  %s2324_s5 = inlined_call_operand.vmem [shape: f32[8,1], index: 5, kind: input, shape index: {}]   ;;  %s2325_s6 = inlined_call_operand.vmem [shape: f32[2,8,384], index: 6, kind: output, shape index: {}]  }
   0x1   :  { %12 = vsyncpa [#allocation8], 0  ;;  %s31_s23 = sshll.u32 %s2321_s2, 4  ;;  %s1556_s24 = smov [#allocation7]   ;;  %s32_s23 = int_to_ptr.hbm [resolvable:$true] %s31_s23 }
   0x2   :  { %s33_s25 = sshll.u32 %s1556_s24, 4  ;;  %s20_s28 = sshll.u32 %s2320_s1, 4  ;;  %s34_s25 = int_to_ptr.vmem [resolvable:$true] %s33_s25  ;;  %s21_s28 = int_to_ptr.hbm [resolvable:$true] %s20_s28 }
   0x3   :  { %36 = dma.hbm_to_vmem [thread:$0]  %s32_s23, 128, %s34_s25, [#allocation8]  }
   0x4   :  { %s1557_s29 = smov [#allocation5]   ;;  %s44_s9 = sshll.u32 %s2323_s4, 4  ;;  %s45_s9 = int_to_ptr.hbm [resolvable:$true] %s44_s9 }
   0x5   :  { %s22_s30 = sshll.u32 %s1557_s29, 4  ;;  %s1558_s2 = smov [#allocation9]   ;;  %s23_s30 = int_to_ptr.vmem [resolvable:$true] %s22_s30 }
   0x6   :  { %25 = dma.hbm_to_vmem [thread:$0]  %s21_s28, 48, %s23_s30, [#allocation6]  }
   0x7   :  { %s46_s10 = sshll.u32 %s1558_s2, 4  ;;  %s47_s10 = int_to_ptr.vmem [resolvable:$true] %s46_s10 }
   0x8   :  { %49 = dma.hbm_to_vmem [thread:$0]  %s45_s9, 128, %s47_s10, [#allocation8]  }
   0x9   :  { %1552 = dma.done.wait [#allocation6], 48  }
   0xa   :  { %1553 = vsyncadd [#allocation6], 4294967248 }
   0xb   :  { %1554 = dma.done.wait [#allocation8], 256  }
   0xc   :  { %1555 = vsyncadd [#allocation8], 4294967040  ;;  %v1616_v0 = vld [vmem:[%s2319_s0] sm:$0xff]  ;;  %v68_v1 = vld [vmem:[%s2319_s0 + $0x8] sm:$0xf]  ;;  %s1559_s15 = smov 127  }
   0xd   :  { %71 = vst [vmem:[#allocation1] ss:$2 sm:$0xff] %v1616_v0  ;;  %v1626_v5 = vld [vmem:[%s2319_s0 + $0x8] sm:$0xff]  ;;  %s1560_s16 = smov 126   ;;  %s1561_s17 = smov 110   ;;  %v1673_v34 = vld [vmem:[%s2319_s0 + $0x10] sm:$0xff] }
   0xe   :  { %73 = vst [vmem:[#allocation1 + $0x10] ss:$2 sm:$0xff] %v68_v1  ;;  %s1562_s18 = smov 109   ;;  %s1563_s19 = smov 108   ;;  %v1415_v37 = vld [vmem:[%s2319_s0 + $0x18] sm:$0xf] }
   0xf   :  { %s1564_s20 = smov 92   ;;  %s1565_s21 = smov 91   ;;  %v1692_v42 = vld [vmem:[%s2319_s0 + $0x18] sm:$0xff]  ;;  %vm103_vm0 = vcmask 1039360   ;;  %vm132_vm1 = vcmask 1031168   ;;  %vm191_vm2 = vcmask 891904  }
  0x10   :  { %s1566_s26 = smov 90   ;;  %vm162_vm3 = vcmask 900096   ;;  %vm221_vm4 = vcmask 883712   ;;  %vm280_vm5 = vcmask 744448   ;;  %vm250_vm6 = vcmask 752640  }
  0x11   :  { %vm309_vm7 = vcmask 736256   ;;  %vm345_vm8 = vcmask 1043456   ;;  %vm341_vm9 = vcmask 293888   ;;  %vm671_vm10 = vcmask 588800  }
  0x14   :  { %v74_v2 = vld.sshfl [vmem:[#allocation1] sm:$0xff pattern:$0x75316420]  ;;  %v75_v3 = vld.sshfl [vmem:[#allocation1 + $0x8] sm:$0xff pattern:$0x75316420] }
  0x15   :  { %88 = vst [vmem:[#allocation1 + $0x1] ss:$2 sm:$0xff] %v1616_v0  ;;  %v76_v4 = vld.sshfl [vmem:[#allocation1 + $0x10] sm:$0xff pattern:$0x75316420] }
  0x16   :  { %80 = vst [vmem:[#allocation2 + $0xb0] sm:$0xf] %v74_v2 }
  0x17   :  { %81 = vst [vmem:[#allocation2] sm:$0xf] %v75_v3 }
  0x18   :  { %90 = vst [vmem:[#allocation1 + $0x11] ss:$2 sm:$0xff] %v1626_v5 }
  0x19   :  { %82 = vst [vmem:[#allocation2 + $0x10] sm:$0xf] %v76_v4 }
  0x1c   :  { %v92_v6 = vld.sshfl [vmem:[#allocation1 + $0x8] sm:$0xff pattern:$0x75316420]  ;;  %v91_v7 = vld.sshfl [vmem:[#allocation1] sm:$0xff pattern:$0x75316420] }
  0x1d   :  { %97 = vrot.lane.b32.xlu1 %v92_v6, %s1559_s15  ;;  %95 = vrot.lane.b32.xlu0 %v91_v7, %s1559_s15  ;;  %117 = vst [vmem:[#allocation1] ss:$2 sm:$0xff] %v1616_v0 }
  0x1f   :  { %v1632_v8 = vld.sshfl [vmem:[#allocation1 + $0x10] sm:$0xff pattern:$0x75316420]  ;;  %v1634_v9 = vld.sshfl [vmem:[#allocation1 + $0x18] sm:$0xff pattern:$0x75316420] }
  0x20   :  { %119 = vst [vmem:[#allocation1 + $0x10] ss:$2 sm:$0xff] %v1626_v5 }
  0x24   :  { %v120_v10 = vld.sshfl [vmem:[#allocation1] sm:$0xff pattern:$0x75316420]  ;;  %v121_v11 = vld.sshfl [vmem:[#allocation1 + $0x8] sm:$0xff pattern:$0x75316420] }
  0x25   :  { %124 = vrot.lane.b32.xlu1 %v120_v10, %s1560_s16  ;;  %126 = vrot.lane.b32.xlu2 %v121_v11, %s1560_s16  ;;  %147 = vst [vmem:[#allocation1 + $0x1] ss:$2 sm:$0xff] %v1616_v0 }
  0x27   :  { %v122_v12 = vld.sshfl [vmem:[#allocation1 + $0x10] sm:$0xff pattern:$0x75316420]  ;;  %v1640_v13 = vld.sshfl [vmem:[#allocation1 + $0x18] sm:$0xff pattern:$0x75316420] }
  0x28   :  { %128 = vrot.lane.b32.xlu0 %v122_v12, %s1560_s16  ;;  %149 = vst [vmem:[#allocation1 + $0x11] ss:$2 sm:$0xff] %v1626_v5 }
  0x2c   :  { %v151_v14 = vld.sshfl [vmem:[#allocation1 + $0x8] sm:$0xff pattern:$0x75316420]  ;;  %v150_v15 = vld.sshfl [vmem:[#allocation1] sm:$0xff pattern:$0x75316420] }
  0x2d   :  { %156 = vrot.lane.b32.xlu1 %v151_v14, %s1561_s17  ;;  %176 = vst [vmem:[#allocation1] ss:$2 sm:$0xff] %v1616_v0 }
  0x2f   :  { %v152_v16 = vld.sshfl [vmem:[#allocation1 + $0x10] sm:$0xff pattern:$0x75316420]  ;;  %v1646_v17 = vld.sshfl [vmem:[#allocation1 + $0x18] sm:$0xff pattern:$0x75316420] }
  0x30   :  { %154 = vrot.lane.b32.xlu0 %v150_v15, %s1561_s17  ;;  %178 = vst [vmem:[#allocation1 + $0x10] ss:$2 sm:$0xff] %v1626_v5 }
  0x34   :  { %v179_v18 = vld.sshfl [vmem:[#allocation1] sm:$0xff pattern:$0x75316420]  ;;  %v180_v19 = vld.sshfl [vmem:[#allocation1 + $0x8] sm:$0xff pattern:$0x75316420] }
  0x35   :  { %158 = vrot.lane.b32.xlu1 %v152_v16, %s1561_s17  ;;  %206 = vst [vmem:[#allocation1 + $0x1] ss:$2 sm:$0xff] %v1616_v0 }
  0x37   :  { %v181_v20 = vld.sshfl [vmem:[#allocation1 + $0x10] sm:$0xff pattern:$0x75316420]  ;;  %v182_v21 = vld.sshfl [vmem:[#allocation1 + $0x18] sm:$0xff pattern:$0x75316420] }
  0x38   :  { %187 = vrot.lane.b32.xlu2 %v181_v20, %s1562_s18  ;;  %183 = vrot.lane.b32.xlu0 %v179_v18, %s1562_s18  ;;  %208 = vst [vmem:[#allocation1 + $0x11] ss:$2 sm:$0xff] %v1626_v5 }
  0x3c   :  { %v210_v22 = vld.sshfl [vmem:[#allocation1 + $0x8] sm:$0xff pattern:$0x75316420]  ;;  %v209_v23 = vld.sshfl [vmem:[#allocation1] sm:$0xff pattern:$0x75316420] }
  0x3d   :  { %185 = vrot.lane.b32.xlu1 %v180_v19, %s1562_s18  ;;  %235 = vst [vmem:[#allocation1] ss:$2 sm:$0xff] %v1616_v0 }
  0x3f   :  { %v211_v24 = vld.sshfl [vmem:[#allocation1 + $0x10] sm:$0xff pattern:$0x75316420]  ;;  %v212_v25 = vld.sshfl [vmem:[#allocation1 + $0x18] sm:$0xff pattern:$0x75316420] }
  0x40   :  { %189 = vrot.lane.b32.xlu2 %v182_v21, %s1562_s18  ;;  %215 = vrot.lane.b32.xlu0 %v210_v22, %s1563_s19  ;;  %237 = vst [vmem:[#allocation1 + $0x10] ss:$2 sm:$0xff] %v1626_v5 }
  0x44   :  { %v238_v26 = vld.sshfl [vmem:[#allocation1] sm:$0xff pattern:$0x75316420]  ;;  %v239_v27 = vld.sshfl [vmem:[#allocation1 + $0x8] sm:$0xff pattern:$0x75316420] }
  0x45   :  { %242 = vrot.lane.b32.xlu1 %v238_v26, %s1564_s20  ;;  %265 = vst [vmem:[#allocation1 + $0x1] ss:$2 sm:$0xff] %v1616_v0 }
  0x47   :  { %v240_v28 = vld.sshfl [vmem:[#allocation1 + $0x10] sm:$0xff pattern:$0x75316420]  ;;  %v241_v29 = vld.sshfl [vmem:[#allocation1 + $0x18] sm:$0xff pattern:$0x75316420] }
  0x48   :  { %217 = vrot.lane.b32.xlu0 %v211_v24, %s1563_s19  ;;  %213 = vrot.lane.b32.xlu2 %v209_v23, %s1563_s19  ;;  %267 = vst [vmem:[#allocation1 + $0x11] ss:$2 sm:$0xff] %v1626_v5 }
  0x4c   :  { %v269_v30 = vld.sshfl [vmem:[#allocation1 + $0x8] sm:$0xff pattern:$0x75316420]  ;;  %v268_v31 = vld.sshfl [vmem:[#allocation1] sm:$0xff pattern:$0x75316420] }
  0x4d   :  { %244 = vrot.lane.b32.xlu1 %v239_v27, %s1564_s20  ;;  %294 = vst [vmem:[#allocation1] ss:$2 sm:$0xff] %v1616_v0 }
  0x4f   :  { %v270_v32 = vld.sshfl [vmem:[#allocation1 + $0x10] sm:$0xff pattern:$0x75316420]  ;;  %v271_v33 = vld.sshfl [vmem:[#allocation1 + $0x18] sm:$0xff pattern:$0x75316420] }
  0x50   :  { %276 = vrot.lane.b32.xlu0 %v270_v32, %s1565_s21  ;;  %246 = vrot.lane.b32.xlu2 %v240_v28, %s1564_s20  ;;  %296 = vst [vmem:[#allocation1 + $0x10] ss:$2 sm:$0xff] %v1626_v5 }
  0x54   :  { %v297_v35 = vld.sshfl [vmem:[#allocation1] sm:$0xff pattern:$0x75316420]  ;;  %v298_v36 = vld.sshfl [vmem:[#allocation1 + $0x8] sm:$0xff pattern:$0x75316420] }
  0x55   :  { %248 = vrot.lane.b32.xlu1 %v241_v29, %s1564_s20  ;;  %746 = vst [vmem:[#allocation1] ss:$2 sm:$0xff] %v1673_v34 }
  0x57   :  { %v299_v38 = vld.sshfl [vmem:[#allocation1 + $0x10] sm:$0xff pattern:$0x75316420]  ;;  %v300_v39 = vld.sshfl [vmem:[#allocation1 + $0x18] sm:$0xff pattern:$0x75316420] }
  0x58   :  { %272 = vrot.lane.b32.xlu2 %v268_v31, %s1565_s21  ;;  %301 = vrot.lane.b32.xlu0 %v297_v35, %s1566_s26  ;;  %748 = vst [vmem:[#allocation1 + $0x10] ss:$2 sm:$0xff] %v1415_v37  ;;  %v1567_v31 = vmov 0   ;;  %v1568_v37 = vmov 0.0  }
  0x59   :  { %1457 = vset.pattern.permute.xlu2 %v1567_v31  ;;  %1478 = vset.pattern.permute.xlu0 %v1567_v31 }
  0x5a   :  { %1479 = vset.pattern.permute.xlu1 %v1567_v31 }
  0x5c   :  { %v1682_v40 = vld.sshfl [vmem:[#allocation1] sm:$0xff pattern:$0x75316420]  ;;  %v1684_v41 = vld.sshfl [vmem:[#allocation1 + $0x8] sm:$0xff pattern:$0x75316420] }
  0x5d   :  { %99 = vrot.lane.b32.xlu1 %v1632_v8, %s1559_s15  ;;  %763 = vst [vmem:[#allocation1 + $0x1] ss:$2 sm:$0xff] %v1673_v34 }
  0x5f   :  { %v1694_v43 = vld.sshfl [vmem:[#allocation1 + $0x10] sm:$0xff pattern:$0x75316420] }
  0x60   :  { %274 = vrot.lane.b32.xlu2 %v269_v30, %s1565_s21  ;;  %303 = vrot.lane.b32.xlu0 %v298_v36, %s1566_s26  ;;  %765 = vst [vmem:[#allocation1 + $0x11] ss:$2 sm:$0xff] %v1692_v42 }
  0x64   :  { %v1699_v44 = vld.sshfl [vmem:[#allocation1] sm:$0xff pattern:$0x75316420]  ;;  %v1701_v45 = vld.sshfl [vmem:[#allocation1 + $0x8] sm:$0xff pattern:$0x75316420] }
  0x65   :  { %307 = vrot.lane.b32.xlu1 %v300_v39, %s1566_s26  ;;  %791 = vst [vmem:[#allocation1] ss:$2 sm:$0xff] %v1673_v34 }
  0x67   :  { %v1705_v46 = vld.sshfl [vmem:[#allocation1 + $0x10] sm:$0xff pattern:$0x75316420]  ;;  %v1707_v47 = vld.sshfl [vmem:[#allocation1 + $0x18] sm:$0xff pattern:$0x75316420] }
  0x68   :  { %793 = vst [vmem:[#allocation1 + $0x10] ss:$2 sm:$0xff] %v1692_v42  ;;  %278 = vrot.lane.b32.xlu2 %v271_v33, %s1565_s21  ;;  %219 = vrot.lane.b32.xlu0 %v212_v25, %s1563_s19  ;;  %v1762_v33 = vld [vmem:[%s2322_s3] sm:$0xff] }
  0x6c   :  { %v1767_v36 = vld.sshfl [vmem:[#allocation1 + $0x8] sm:$0xff pattern:$0x75316420] }
  0x6d   :  { %101 = vrot.lane.b32.xlu1 %v1634_v9, %s1559_s15 }
  0x6f   :  { %v1714_v48 = vld.sshfl [vmem:[#allocation1 + $0x10] sm:$0xff pattern:$0x75316420]  ;;  %v1716_v49 = vld.sshfl [vmem:[#allocation1 + $0x18] sm:$0xff pattern:$0x75316420] }
  0x70   :  { %822 = vst [vmem:[#allocation1 + $0x11] ss:$2 sm:$0xff] %v1692_v42  ;;  %305 = vrot.lane.b32.xlu2 %v299_v38, %s1566_s26  ;;  %160 = vrot.lane.b32.xlu0 %v1646_v17, %s1561_s17  ;;  %v794_v38 = vld.sshfl [vmem:[#allocation1] sm:$0xff pattern:$0x75316420] }
  0x71   :  { %820 = vst [vmem:[#allocation1 + $0x1] ss:$2 sm:$0xff] %v1673_v34 }
  0x75   :  { %476 = vrot.lane.b32.xlu1 %v1568_v37, %s1560_s16 }
  0x77   :  { %v1722_v50 = vld.sshfl [vmem:[#allocation1 + $0x10] sm:$0xff pattern:$0x75316420]  ;;  %v1724_v51 = vld.sshfl [vmem:[#allocation1 + $0x18] sm:$0xff pattern:$0x75316420] }
  0x78   :  { %850 = vst [vmem:[#allocation1 + $0x10] ss:$2 sm:$0xff] %v1692_v42  ;;  %130 = vrot.lane.b32.xlu2 %v1640_v13, %s1560_s16  ;;  %451 = vrot.lane.b32.xlu0 %v1568_v37, %s1559_s15 }
  0x7d   :  { %798 = vrot.lane.b32.xlu1 %v794_v38, %s1560_s16 }
  0x7f   :  { %v1729_v52 = vld.sshfl [vmem:[#allocation1 + $0x10] sm:$0xff pattern:$0x75316420]  ;;  %v1731_v53 = vld.sshfl [vmem:[#allocation1 + $0x18] sm:$0xff pattern:$0x75316420]  ;;  %v127_v54 = vpop.permute.xlu2 %126 }
  0x80   :  { %879 = vst [vmem:[#allocation1 + $0x11] ss:$2 sm:$0xff] %v1692_v42  ;;  %338 = vperm.xlu2 %1457, %v1762_v33   ;;  %772 = vrot.lane.b32.xlu0 %v1701_v45, %s1559_s15 }
  0x88   :  { %526 = vrot.lane.b32.xlu2 %v1568_v37, %s1562_s18 }
  0x8f   :  { %v1734_v55 = vpop.permute.xlu1 %97  ;;  %v96_v56 = vpop.permute.xlu0 %95 }
  0x90   :  { %v104_v57 = vsel %vm103_vm0, %v96_v56, %v1734_v55  ;;  %501 = vrot.lane.b32.xlu2 %v1568_v37, %s1561_s17 }
  0x91   :  { %110 = vst [vmem:[#allocation2 + $0xb0] sm:$0xf0] %v104_v57 }
  0x92   :  { %v188_v58 = vpop.permute.xlu2 %187 }
  0x97   :  { %v125_v59 = vpop.permute.xlu1 %124 }
  0x98   :  { %v133_v60 = vsel %vm132_vm1, %v125_v59, %v127_v54  ;;  %800 = vrot.lane.b32.xlu2 %v1767_v36, %s1560_s16 }
  0x99   :  { %139 = vst [vmem:[#allocation2 + $0x48] sm:$0xf] %v133_v60  ;;  %v823_v60 = vld.sshfl [vmem:[#allocation1] sm:$0xff pattern:$0x75316420] }
  0x9a   :  { %v1739_v61 = vpop.permute.xlu0 %128  ;;  %v190_v62 = vpop.permute.xlu2 %189  ;;  %827 = vrot.lane.b32.xlu0 %v823_v60, %s1561_s17 }
  0x9b   :  { %v134_v63 = vsel %vm132_vm1, %v127_v54, %v1739_v61  ;;  %v194_v0 = vsel %vm191_vm2, %v188_v58, %v190_v62  ;;  %v824_v62 = vld.sshfl [vmem:[#allocation1 + $0x8] sm:$0xff pattern:$0x75316420] }
  0x9c   :  { %140 = vst [vmem:[#allocation2 + $0x60] sm:$0xf] %v134_v63  ;;  %829 = vrot.lane.b32.xlu1 %v824_v62, %s1561_s17 }
  0x9d   :  { %200 = vst [vmem:[#allocation2 + $0x80] sm:$0xf] %v194_v0 }
  0x9e   :  { %848 = vst [vmem:[#allocation1] ss:$2 sm:$0xff] %v1673_v34 }
  0x9f   :  { %v157_v1 = vpop.permute.xlu1 %156 }
  0xa0   :  { %770 = vrot.lane.b32.xlu2 %v1699_v44, %s1559_s15 }
  0xa2   :  { %v155_v2 = vpop.permute.xlu0 %154  ;;  %v214_v3 = vpop.permute.xlu2 %213 }
  0xa3   :  { %v163_v4 = vsel %vm162_vm3, %v155_v2, %v157_v1 }
  0xa4   :  { %169 = vst [vmem:[#allocation2 + $0x48] sm:$0xf0] %v163_v4 }
  0xa7   :  { %v1745_v5 = vpop.permute.xlu1 %158 }
  0xa8   :  { %v164_v6 = vsel %vm162_vm3, %v157_v1, %v1745_v5 }
  0xa9   :  { %170 = vst [vmem:[#allocation2 + $0x60] sm:$0xf0] %v164_v6 }
  0xaa   :  { %v184_v7 = vpop.permute.xlu0 %183  ;;  %v247_v8 = vpop.permute.xlu2 %246 }
  0xaf   :  { %v186_v9 = vpop.permute.xlu1 %185 }
  0xb0   :  { %v192_v10 = vsel %vm191_vm2, %v184_v7, %v186_v9  ;;  %v193_v11 = vsel %vm191_vm2, %v186_v9, %v188_v58 }
  0xb1   :  { %198 = vst [vmem:[#allocation2 + $0x40] sm:$0xf] %v192_v10  ;;  %v852_v10 = vld.sshfl [vmem:[#allocation1 + $0x8] sm:$0xff pattern:$0x75316420] }
  0xb2   :  { %199 = vst [vmem:[#allocation2 + $0x78] sm:$0xf] %v193_v11  ;;  %v216_v12 = vpop.permute.xlu0 %215  ;;  %v273_v13 = vpop.permute.xlu2 %272  ;;  %v851_v11 = vld.sshfl [vmem:[#allocation1] sm:$0xff pattern:$0x75316420]  ;;  %857 = vrot.lane.b32.xlu2 %v852_v10, %s1562_s18 }
  0xb3   :  { %v222_v14 = vsel %vm221_vm4, %v214_v3, %v216_v12  ;;  %877 = vst [vmem:[#allocation1 + $0x1] ss:$2 sm:$0xff] %v1673_v34  ;;  %855 = vrot.lane.b32.xlu1 %v851_v11, %s1562_s18 }
  0xb4   :  { %228 = vst [vmem:[#allocation2 + $0x40] sm:$0xf0] %v222_v14  ;;  %v1795_v14 = vld [vmem:[#allocation7] sm:$0xff] }
  0xb7   :  { %v243_v15 = vpop.permute.xlu1 %242 }
  0xba   :  { %v218_v16 = vpop.permute.xlu0 %217  ;;  %v275_v17 = vpop.permute.xlu2 %274 }
  0xbb   :  { %v223_v18 = vsel %vm221_vm4, %v216_v12, %v218_v16  ;;  %v281_v19 = vsel %vm280_vm5, %v273_v13, %v275_v17  ;;  %v326_v4 = vld [vmem:[#allocation2 + $0x40] sm:$0xff] }
  0xbc   :  { %229 = vst [vmem:[#allocation2 + $0x78] sm:$0xf0] %v223_v18  ;;  %v324_v12 = vld [vmem:[#allocation2 + $0x60] sm:$0xff] }
  0xbd   :  { %287 = vst [vmem:[#allocation2 + $0xa8] sm:$0xf0] %v281_v19  ;;  %v882_v19 = vld.sshfl [vmem:[#allocation1 + $0x10] sm:$0xff pattern:$0x75316420] }
  0xbf   :  { %v245_v20 = vpop.permute.xlu1 %244 }
  0xc0   :  { %v251_v21 = vsel %vm250_vm6, %v243_v15, %v245_v20  ;;  %v252_v22 = vsel %vm250_vm6, %v245_v20, %v247_v8  ;;  %v320_v15 = vld [vmem:[#allocation2 + $0xb0] sm:$0xff] }
  0xc1   :  { %257 = vst [vmem:[#allocation2 + $0xa8] sm:$0xf] %v251_v21  ;;  %v883_v20 = vld.sshfl [vmem:[#allocation1 + $0x18] sm:$0xff pattern:$0x75316420] }
  0xc2   :  { %v277_v23 = vpop.permute.xlu0 %276  ;;  %258 = vst [vmem:[#allocation2 + $0x50] sm:$0xf] %v252_v22  ;;  %v279_v24 = vpop.permute.xlu2 %278  ;;  %v880_v21 = vld.sshfl [vmem:[#allocation1] sm:$0xff pattern:$0x75316420] }
  0xc3   :  { %v282_v25 = vsel %vm280_vm5, %v275_v17, %v277_v23  ;;  %v283_v26 = vsel %vm280_vm5, %v277_v23, %v279_v24  ;;  %v327_v7 = vld [vmem:[#allocation2 + $0x78] sm:$0xff]  ;;  %v881_v22 = vld.sshfl [vmem:[#allocation1 + $0x8] sm:$0xff pattern:$0x75316420]  ;;  %884 = vrot.lane.b32.xlu0 %v880_v21, %s1563_s19  ;;  %907 = vst [vmem:[#allocation1 + $0x10] ss:$2 sm:$0xff] %v1692_v42 }
  0xc4   :  { %288 = vst [vmem:[#allocation2 + $0x50] sm:$0xf0] %v282_v25  ;;  %886 = vrot.lane.b32.xlu1 %v881_v22, %s1563_s19 }
  0xc5   :  { %289 = vst [vmem:[#allocation2 + $0x30] sm:$0xf0] %v283_v26 }
  0xc6   :  { %905 = vst [vmem:[#allocation1] ss:$2 sm:$0xff] %v1673_v34 }
  0xc7   :  { %v249_v27 = vpop.permute.xlu1 %248 }
  0xc8   :  { %v253_v28 = vsel %vm250_vm6, %v247_v8, %v249_v27  ;;  %v329_v2 = vld [vmem:[#allocation2 + $0xa8] sm:$0xff] }
  0xc9   :  { %259 = vst [vmem:[#allocation2 + $0x30] sm:$0xf] %v253_v28  ;;  %v323_v8 = vld [vmem:[#allocation2 + $0x48] sm:$0xff] }
  0xca   :  { %v306_v29 = vpop.permute.xlu2 %305  ;;  %v302_v30 = vpop.permute.xlu0 %301  ;;  %v910_v27 = vld.sshfl [vmem:[#allocation1 + $0x10] sm:$0xff pattern:$0x75316420]  ;;  %v911_v28 = vld.sshfl [vmem:[#allocation1 + $0x18] sm:$0xff pattern:$0x75316420] }
  0xcb   :  { %v330_v45 = vld [vmem:[#allocation2 + $0x50] sm:$0xff]  ;;  %936 = vst [vmem:[#allocation1 + $0x11] ss:$2 sm:$0xff] %v1692_v42 }
  0xcc   :  { %918 = vrot.lane.b32.xlu1 %v911_v28, %s1564_s20 }
  0xcd   :  { %v908_v25 = vld.sshfl [vmem:[#allocation1] sm:$0xff pattern:$0x75316420]  ;;  %v909_v26 = vld.sshfl [vmem:[#allocation1 + $0x8] sm:$0xff pattern:$0x75316420] }
  0xce   :  { %914 = vrot.lane.b32.xlu0 %v909_v26, %s1564_s20  ;;  %934 = vst [vmem:[#allocation1 + $0x1] ss:$2 sm:$0xff] %v1673_v34  ;;  %912 = vrot.lane.b32.xlu2 %v908_v25, %s1564_s20 }
  0xcf   :  { %v100_v32 = vpop.permute.xlu1 %99 }
  0xd0   :  { %v105_v35 = vsel %vm103_vm0, %v1734_v55, %v100_v32 }
  0xd1   :  { %111 = vst [vmem:[#allocation2] sm:$0xf0] %v105_v35 }
  0xd2   :  { %v131_v39 = vpop.permute.xlu2 %130  ;;  %v304_v54 = vpop.permute.xlu0 %303  ;;  %v939_v44 = vld.sshfl [vmem:[#allocation1 + $0x10] sm:$0xff pattern:$0x75316420]  ;;  %v940_v31 = vld.sshfl [vmem:[#allocation1 + $0x18] sm:$0xff pattern:$0x75316420] }
  0xd3   :  { %v135_v55 = vsel %vm132_vm1, %v1739_v61, %v131_v39  ;;  %v310_v56 = vsel %vm309_vm7, %v302_v30, %v304_v54  ;;  %v311_v57 = vsel %vm309_vm7, %v304_v54, %v306_v29  ;;  %964 = vst [vmem:[#allocation1 + $0x10] ss:$2 sm:$0xff] %v1692_v42 }
  0xd4   :  { %141 = vst [vmem:[#allocation2 + $0x28] sm:$0xf] %v135_v55 }
  0xd5   :  { %316 = vst [vmem:[#allocation2 + $0x88] sm:$0xf] %v310_v56  ;;  %v937_v30 = vld.sshfl [vmem:[#allocation1] sm:$0xff pattern:$0x75316420] }
  0xd6   :  { %317 = vst [vmem:[#allocation2 + $0x70] sm:$0xf] %v311_v57  ;;  %916 = vrot.lane.b32.xlu0 %v910_v27, %s1564_s20  ;;  %941 = vrot.lane.b32.xlu1 %v937_v30, %s1565_s21 }
  0xd7   :  { %v308_v58 = vpop.permute.xlu1 %307 }
  0xd8   :  { %v312_v59 = vsel %vm309_vm7, %v306_v29, %v308_v58  ;;  %v321_v17 = vld [vmem:[#allocation2] sm:$0xff] }
  0xd9   :  { %318 = vst [vmem:[#allocation2 + $0x8] sm:$0xf] %v312_v59  ;;  %v938_v29 = vld.sshfl [vmem:[#allocation1 + $0x8] sm:$0xff pattern:$0x75316420] }
  0xda   :  { %v220_v61 = vpop.permute.xlu0 %219  ;;  %962 = vst [vmem:[#allocation1] ss:$2 sm:$0xff] %v1673_v34  ;;  %v967_v35 = vld.sshfl [vmem:[#allocation1 + $0x10] sm:$0xff pattern:$0x75316420]  ;;  %943 = vrot.lane.b32.xlu2 %v938_v29, %s1565_s21  ;;  %v339_v42 = vpop.permute.xlu2 %338 }
  0xdb   :  { %v224_v63 = vsel %vm221_vm4, %v218_v16, %v220_v61  ;;  %v968_v34 = vld.sshfl [vmem:[#allocation1 + $0x18] sm:$0xff pattern:$0x75316420]  ;;  %v1855_v59 = vld [vmem:[#allocation5] sm:$0x7] }
  0xdc   :  { %230 = vst [vmem:[#allocation2 + $0x80] sm:$0xf0] %v224_v63  ;;  %v332_v0 = vld [vmem:[#allocation2 + $0x88] sm:$0xf]  ;;  %v420_v63 = vperm.slane %v1855_v59, 1 }
  0xdd   :  { %1405 = vmatpush.msk.msra.mxu2 %vm345_vm8, %v332_v0  ;;  %v333_v1 = vld [vmem:[#allocation2 + $0x70] sm:$0xf] }
  0xde   :  { %1407 = vmatpush.msk.msra.mxu1 %vm345_vm8, %v333_v1  ;;  %973 = vrot.lane.b32.xlu1 %v967_v35, %s1566_s26 }
  0xdf   :  { %367 = vmatpush.msra.mxu2 %v329_v2  ;;  %v102_v3 = vpop.permute.xlu1 %101 }
  0xe0   :  { %387 = vmatpush.msra.mxu1 %v330_v45  ;;  %v106_v6 = vsel %vm103_vm0, %v100_v32, %v102_v3  ;;  %v334_v16 = vld [vmem:[#allocation2 + $0x8] sm:$0xf] }
  0xe1   :  { %368 = vmatpush.msra.mxu2 %v326_v4  ;;  %112 = vst [vmem:[#allocation2 + $0x10] sm:$0xf0] %v106_v6  ;;  %v966_v32 = vld.sshfl [vmem:[#allocation1 + $0x8] sm:$0xff pattern:$0x75316420]  ;;  %v419_v4 = vperm.slane %v1855_v59, 0 }
  0xe2   :  { %388 = vmatpush.msra.mxu1 %v327_v7  ;;  %v161_v9 = vpop.permute.xlu0 %160  ;;  %971 = vrot.lane.b32.xlu0 %v966_v32, %s1566_s26  ;;  %v965_v36 = vld.sshfl [vmem:[#allocation1] sm:$0xff pattern:$0x75316420]  ;;  %v1839_v38 = vpop.permute.xlu2 %526 }
  0xe3   :  { %369 = vmatpush.msra.mxu2 %v323_v8  ;;  %v165_v13 = vsel %vm162_vm3, %v1745_v5, %v161_v9  ;;  %v331_v5 = vld [vmem:[#allocation2 + $0x30] sm:$0xff]  ;;  %v328_v18 = vld [vmem:[#allocation2 + $0x80] sm:$0xff]  ;;  %969 = vrot.lane.b32.xlu2 %v965_v36, %s1566_s26 }
  0xe4   :  { %389 = vmatpush.msra.mxu1 %v324_v12  ;;  %171 = vst [vmem:[#allocation2 + $0x28] sm:$0xf0] %v165_v13 }
  0xe5   :  { %370 = vmatpush.msra.mxu2 %v320_v15 }
  0xe6   :  { %390 = vmatpush.msra.mxu1 %v321_v17  ;;  %1406 = vmatmul.msk.f32.vlgmr.msra.gmra.mxu2 %vm341_vm9, %v1795_v14 }
  0xe7   :  { %1408 = vmatmul.msk.f32.vlgmr.msra.gmra.mxu1 %vm341_vm9, %v1795_v14  ;;  %1409 = vmatpush.msk.msrb.mxu2 %vm345_vm8, %v334_v16  ;;  %v1849_v57 = vpop.permute.xlu1 %476 }
  0xe8   :  { %v322_v24 = vld [vmem:[#allocation2 + $0x10] sm:$0xff]  ;;  %859 = vrot.lane.b32.xlu1 %v1729_v52, %s1562_s18 }
  0xe9   :  { %407 = vmatpush.msrb.mxu2 %v331_v5 }
  0xea   :  { %947 = vrot.lane.b32.xlu0 %v940_v31, %s1565_s21  ;;  %v1841_v39 = vpop.permute.xlu2 %501  ;;  %v1847_v56 = vpop.permute.xlu0 %451 }
  0xeb   :  { %408 = vmatpush.msrb.mxu2 %v328_v18  ;;  %v325_v23 = vld [vmem:[#allocation2 + $0x28] sm:$0xff]  ;;  %975 = vrot.lane.b32.xlu2 %v968_v34, %s1566_s26 }
  0xed   :  { %409 = vmatpush.msrb.mxu2 %v325_v23 }
  0xef   :  { %410 = vmatpush.msrb.mxu2 %v322_v24 }
  0xf0   :  { %1410 = vmatmul.msk.f32.vlgmr.msrb.gmra.mxu2 %vm341_vm9, %v1795_v14  ;;  %890 = vrot.lane.b32.xlu1 %v883_v20, %s1563_s19 }
  0xf2   :  { %888 = vrot.lane.b32.xlu0 %v882_v19, %s1563_s19  ;;  %v1843_v52 = vpop.permute.xlu2 %800 }
  0xf3   :  { %945 = vrot.lane.b32.xlu2 %v939_v44, %s1565_s21 }
  0xfa   :  { %v771_v54 = vpop.permute.xlu2 %770 }
  0xfb   :  { %861 = vrot.lane.b32.xlu2 %v1731_v53, %s1562_s18  ;;  %v1853_v53 = vpop.permute.xlu0 %772 }
  0xfc   :  { %v778_v11 = vsel %vm103_vm0, %v771_v54, %v1853_v53 }
 0x103   :  { %802 = vrot.lane.b32.xlu2 %v1714_v48, %s1560_s16  ;;  %v1857_v48 = vpop.permute.xlu1 %798 }
 0x10c   :  { %v1845_v55 = vpop.permute.xlu2 %857  ;;  %v1862_v0 = vpop.permute.xlu0 %827 }
 0x10e   :  { %v1869_v6 = vpop.permute.xlu1 %829 }
 0x125   :  { %v856_v12 = vpop.permute.xlu1 %855 }
 0x126   :  { %v1895_v13 = vsel %vm191_vm2, %v856_v12, %v1845_v55 }
 0x128   :  { %v1851_v58 = vpop.permute.xlu2 %912 }
 0x134   :  { %v1859_v60 = vpop.permute.xlu2 %943 }
 0x135   :  { %v885_v10 = vpop.permute.xlu0 %884 }
 0x136   :  { %v887_v19 = vpop.permute.xlu1 %886 }
 0x137   :  { %v1912_v20 = vsel %vm221_vm4, %v885_v10, %v887_v19 }
 0x13d   :  { %v1876_v7 = vpop.permute.xlu2 %969 }
 0x13e   :  { %v919_v25 = vpop.permute.xlu1 %918 }
 0x140   :  { %v1900_v5 = vpop.permute.xlu0 %914 }
 0x145   :  { %v976_v15 = vpop.permute.xlu2 %975 }
 0x148   :  { %v917_v23 = vpop.permute.xlu0 %916  ;;  %v942_v27 = vpop.permute.xlu1 %941 }
 0x149   :  { %v1923_v24 = vsel %vm250_vm6, %v1900_v5, %v917_v23 }
 0x14d   :  { %v946_v21 = vpop.permute.xlu2 %945 }
 0x14e   :  { %v1919_v22 = vsel %vm280_vm5, %v1859_v60, %v946_v21 }
 0x150   :  { %v974_v30 = vpop.permute.xlu1 %973 }
 0x151   :  { %v1954_v31 = vsel %vm309_vm7, %v974_v30, %v976_v15 }
 0x154   :  { %v1934_v26 = vpop.permute.xlu0 %971 }
 0x155   :  { %v1951_v44 = vsel %vm309_vm7, %v1934_v26, %v974_v30  ;;  %v862_v36 = vpop.permute.xlu2 %861 }
 0x15a   :  { %v860_v34 = vpop.permute.xlu1 %859 }
 0x15c   :  { %v948_v28 = vpop.permute.xlu0 %947 }
 0x15d   :  { %v1943_v29 = vsel %vm280_vm5, %v946_v21, %v948_v28 }
 0x164   :  { %v392_v61 = vpop.f32.mrf.mxu1  ;;  %v889_v32 = vpop.permute.xlu0 %888 }
 0x165   :  { %v393_v62 = vadd.f32 %v392_v61, %v339_v42  ;;  %v1959_v35 = vsel %vm221_vm4, %v887_v19, %v889_v32 }
 0x167   :  { %v416_v1 = vmax.f32 %v393_v62, 0.0 }
 0x169   :  { %v1866_v2 = vmul.f32 %v420_v63, %v416_v1  ;;  %v372_v45 = vpop.f32.mrf.mxu2  ;;  %v920_v1 = vsel %vm250_vm6, %v1851_v58, %v1900_v5  ;;  %v977_v5 = vsel %vm309_vm7, %v1876_v7, %v1934_v26  ;;  %v806_v7 = vsel %vm132_vm1, %v1857_v48, %v1843_v52 }
 0x16a   :  { %v373_v3 = vadd.f32 %v372_v45, %v339_v42  ;;  %v949_v45 = vsel %vm280_vm5, %v942_v27, %v1859_v60  ;;  %v835_v26 = vsel %vm162_vm3, %v1862_v0, %v1869_v6 }
 0x16b   :  { %435 = vst [vmem:[#allocation2] sm:$0xff] %v1866_v2  ;;  %472 = vrot.lane.b32.xlu2 %v1866_v2, %s1560_s16  ;;  %497 = vrot.lane.b32.xlu0 %v1866_v2, %s1561_s17 }
 0x16c   :  { %v415_v8 = vmax.f32 %v373_v3, 0.0  ;;  %522 = vrot.lane.b32.xlu1 %v1866_v2, %s1562_s18  ;;  %756 = vst [vmem:[#allocation2] sm:$0xf] %v1684_v41 }
 0x16e   :  { %v1883_v9 = vmul.f32 %v419_v4, %v415_v8 }
 0x170   :  { %434 = vst [vmem:[#allocation2 + $0xb0] sm:$0xff] %v1883_v9 }
 0x171   :  { %755 = vst [vmem:[#allocation2 + $0xb0] sm:$0xf] %v1682_v40  ;;  %v421_v40 = vperm.slane %v1855_v59, 2  ;;  %v665_v59 = vld [vmem:[%s2324_s5] sm:$0xff] }
 0x172   :  { %784 = vst [vmem:[#allocation2 + $0xb0] sm:$0xf0] %v778_v11 }
 0x173   :  { %622 = vrot.lane.b32.xlu0 %v1866_v2, %s1566_s26  ;;  %495 = vrot.lane.b32.xlu2 %v1883_v9, %s1561_s17  ;;  %v412_v41 = vpop.f32.mrf.mxu2 }
 0x174   :  { %447 = vrot.lane.b32.xlu1 %v1866_v2, %s1559_s15  ;;  %v413_v16 = vadd.f32 %v412_v41, %v339_v42  ;;  %v1969_v42 = vsel %vm191_vm2, %v860_v34, %v862_v36 }
 0x176   :  { %v417_v17 = vmax.f32 %v413_v16, 0.0 }
 0x178   :  { %v1904_v18 = vmul.f32 %v421_v40, %v417_v17 }
 0x17a   :  { %436 = vst [vmem:[#allocation2 + $0x10] sm:$0xff] %v1904_v18 }
 0x17b   :  { %547 = vrot.lane.b32.xlu0 %v1866_v2, %s1563_s19  ;;  %620 = vrot.lane.b32.xlu2 %v1883_v9, %s1566_s26  ;;  %757 = vst [vmem:[#allocation2 + $0x10] sm:$0xf] %v1694_v43  ;;  %v1930_v43 = vsel %vm250_vm6, %v917_v23, %v919_v25 }
 0x17c   :  { %597 = vrot.lane.b32.xlu1 %v1866_v2, %s1565_s21 }
 0x183   :  { %545 = vrot.lane.b32.xlu2 %v1883_v9, %s1563_s19  ;;  %520 = vrot.lane.b32.xlu0 %v1883_v9, %s1562_s18 }
 0x184   :  { %572 = vrot.lane.b32.xlu1 %v1866_v2, %s1564_s20 }
 0x18b   :  { %449 = vrot.lane.b32.xlu2 %v1904_v18, %s1559_s15  ;;  %445 = vrot.lane.b32.xlu0 %v1883_v9, %s1559_s15 }
 0x18c   :  { %470 = vrot.lane.b32.xlu1 %v1883_v9, %s1560_s16 }
 0x193   :  { %833 = vrot.lane.b32.xlu2 %v1724_v51, %s1561_s17  ;;  %595 = vrot.lane.b32.xlu0 %v1883_v9, %s1565_s21  ;;  %v1966_v51 = vsel %vm191_vm2, %v1845_v55, %v860_v34  ;;  %v987_v34 = vld [vmem:[#allocation2 + $0xb0] sm:$0xff] }
 0x194   :  { %524 = vrot.lane.b32.xlu1 %v1904_v18, %s1562_s18 }
 0x19b   :  { %1005 = vperm.xlu2 %1457, %v1762_v33   ;;  %570 = vrot.lane.b32.xlu0 %v1883_v9, %s1564_s20  ;;  %v891_v33 = vpop.permute.xlu1 %890 }
 0x19c   :  { %499 = vrot.lane.b32.xlu1 %v1904_v18, %s1561_s17 }
 0x1a3   :  { %1469 = vrot.lane.b32.xlu2 %v1568_v37, %s1564_s20  ;;  %474 = vrot.lane.b32.xlu0 %v1904_v18, %s1560_s16 }
 0x1a4   :  { %831 = vrot.lane.b32.xlu1 %v1722_v50, %s1561_s17  ;;  %v1992_v50 = vsel %vm221_vm4, %v889_v32, %v891_v33 }
 0x1ab   :  { %1134 = vrot.lane.b32.xlu2 %v1568_v37, %s1560_s16  ;;  %804 = vrot.lane.b32.xlu0 %v1716_v49, %s1560_s16 }
 0x1ac   :  { %776 = vrot.lane.b32.xlu1 %v1707_v47, %s1559_s15  ;;  %v1998_v47 = vpop.permute.xlu2 %802 }
 0x1ad   :  { %v807_v60 = vsel %vm132_vm1, %v1843_v52, %v1998_v47 }
 0x1b3   :  { %599 = vrot.lane.b32.xlu2 %v1904_v18, %s1565_s21  ;;  %774 = vrot.lane.b32.xlu0 %v1705_v46, %s1559_s15 }
 0x1b4   :  { %1459 = vrot.lane.b32.xlu1 %v1568_v37, %s1566_s26 }
 0x1bb   :  { %1464 = vrot.lane.b32.xlu0 %v1568_v37, %s1565_s21 }
 0x1bc   :  { %1474 = vrot.lane.b32.xlu1 %v1568_v37, %s1563_s19 }
 0x1c3   :  { %1184 = vrot.lane.b32.xlu0 %v1568_v37, %s1562_s18 }
 0x1c4   :  { %1159 = vrot.lane.b32.xlu1 %v1568_v37, %s1561_s17 }
 0x1c5   :  { %v2004_v46 = vpop.permute.xlu2 %472 }
 0x1cb   :  { %1109 = vrot.lane.b32.xlu0 %v1568_v37, %s1559_s15 }
 0x1cc   :  { %574 = vrot.lane.b32.xlu1 %v1904_v18, %s1564_s20 }
 0x1cd   :  { %v496_v49 = vpop.permute.xlu2 %495 }
 0x1d3   :  { %624 = vrot.lane.b32.xlu0 %v1904_v18, %s1566_s26 }
 0x1d5   :  { %v621_v54 = vpop.permute.xlu2 %620 }
 0x1db   :  { %549 = vrot.lane.b32.xlu0 %v1904_v18, %s1563_s19 }
 0x1dd   :  { %v2014_v55 = vpop.permute.xlu0 %497  ;;  %v2016_v61 = vpop.permute.xlu2 %545 }
 0x1de   :  { %v2020_v62 = vsel %vm162_vm3, %v496_v49, %v2014_v55  ;;  %v523_v37 = vpop.permute.xlu1 %522 }
 0x1df   :  { %509 = vst [vmem:[#allocation2 + $0xa8] sm:$0xff] %v2020_v62 }
 0x1e0   :  { %926 = vst [vmem:[#allocation2 + $0xa8] sm:$0xf] %v920_v1 }
 0x1e1   :  { %955 = vst [vmem:[#allocation2 + $0xa8] sm:$0xf0] %v949_v45 }
 0x1e5   :  { %v2028_v3 = vpop.permute.xlu0 %622  ;;  %v450_v8 = vpop.permute.xlu2 %449 }
 0x1e6   :  { %v628_v10 = vsel %vm309_vm7, %v621_v54, %v2028_v3  ;;  %v448_v11 = vpop.permute.xlu1 %447  ;;  %v2034_v12 = vsel %vm103_vm0, %v450_v8, %v1847_v56 }
 0x1e7   :  { %v2037_v58 = vsel %vm103_vm0, %v448_v11, %v450_v8  ;;  %461 = vst [vmem:[#allocation2 + $0x28] sm:$0xff] %v2034_v12  ;;  %682 = vmatpush.msra.mxu3 %v628_v10 }
 0x1e8   :  { %460 = vst [vmem:[#allocation2 + $0x60] sm:$0xff] %v2037_v58  ;;  %v996_v28 = vld [vmem:[#allocation2 + $0xa8] sm:$0xff] }
 0x1e9   :  { %813 = vst [vmem:[#allocation2 + $0x60] sm:$0xf] %v807_v60 }
 0x1ed   :  { %v2044_v41 = vpop.permute.xlu0 %547 }
 0x1ee   :  { %v2046_v15 = vpop.permute.xlu1 %597 }
 0x1f5   :  { %v521_v16 = vpop.permute.xlu0 %520 }
 0x1f6   :  { %v2048_v56 = vpop.permute.xlu1 %572  ;;  %v528_v17 = vsel %vm191_vm2, %v521_v16, %v523_v37 }
 0x1f7   :  { %534 = vst [vmem:[#allocation2 + $0x88] sm:$0xff] %v528_v17 }
 0x1f8   :  { %983 = vst [vmem:[#allocation2 + $0x88] sm:$0xf] %v977_v5 }
 0x1fd   :  { %v446_v19 = vpop.permute.xlu0 %445 }
 0x1fe   :  { %v471_v21 = vpop.permute.xlu1 %470  ;;  %v453_v23 = vsel %vm103_vm0, %v446_v19, %v448_v11 }
 0x1ff   :  { %v478_v25 = vsel %vm132_vm1, %v471_v21, %v2004_v46  ;;  %459 = vst [vmem:[#allocation2 + $0x48] sm:$0xff] %v453_v23  ;;  %v999_v27 = vld [vmem:[#allocation2 + $0x88] sm:$0xf] }
 0x200   :  { %484 = vst [vmem:[#allocation2 + $0x40] sm:$0xff] %v478_v25  ;;  %1432 = vmatpush.msk.msra.mxu2 %vm345_vm8, %v999_v27 }
 0x201   :  { %869 = vst [vmem:[#allocation2 + $0x40] sm:$0xf] %v1895_v13 }
 0x202   :  { %898 = vst [vmem:[#allocation2 + $0x40] sm:$0xf0] %v1912_v20  ;;  %1032 = vmatpush.msra.mxu2 %v996_v28 }
 0x203   :  { %812 = vst [vmem:[#allocation2 + $0x48] sm:$0xf] %v806_v7 }
 0x204   :  { %841 = vst [vmem:[#allocation2 + $0x48] sm:$0xf0] %v835_v26 }
 0x205   :  { %v596_v30 = vpop.permute.xlu0 %595 }
 0x206   :  { %v525_v32 = vpop.permute.xlu1 %524  ;;  %v603_v36 = vsel %vm280_vm5, %v596_v30, %v2046_v15 }
 0x207   :  { %v2069_v13 = vsel %vm191_vm2, %v523_v37, %v525_v32  ;;  %v2073_v52 = vsel %vm191_vm2, %v525_v32, %v1839_v38  ;;  %683 = vmatpush.msra.mxu3 %v603_v36 }
 0x208   :  { %535 = vst [vmem:[#allocation2 + $0x70] sm:$0xff] %v2069_v13 }
 0x209   :  { %536 = vst [vmem:[#allocation2 + $0x8] sm:$0xff] %v2073_v52  ;;  %v993_v48 = vld [vmem:[#allocation2 + $0x40] sm:$0xff] }
 0x20a   :  { %984 = vst [vmem:[#allocation2 + $0x70] sm:$0xf] %v1951_v44  ;;  %1033 = vmatpush.msra.mxu2 %v993_v48  ;;  %v553_v44 = vsel %vm221_vm4, %v2016_v61, %v2044_v41 }
 0x20b   :  { %985 = vst [vmem:[#allocation2 + $0x8] sm:$0xf] %v1954_v31  ;;  %v990_v0 = vld [vmem:[#allocation2 + $0x48] sm:$0xff] }
 0x20c   :  { %1034 = vmatpush.msra.mxu2 %v990_v0 }
 0x20d   :  { %v571_v20 = vpop.permute.xlu0 %570 }
 0x20e   :  { %v500_v33 = vpop.permute.xlu1 %499  ;;  %v578_v38 = vsel %vm250_vm6, %v571_v20, %v2048_v56  ;;  %1035 = vmatpush.msra.mxu2 %v987_v34 }
 0x20f   :  { %v2083_v49 = vsel %vm162_vm3, %v2014_v55, %v500_v33  ;;  %v2087_v54 = vsel %vm162_vm3, %v500_v33, %v1841_v39  ;;  %1433 = vmatmul.msk.f32.vlgmr.msra.gmra.mxu2 %vm341_vm9, %v1795_v14  ;;  %684 = vmatpush.msra.mxu3 %v578_v38  ;;  %v834_v55 = vpop.permute.xlu2 %833 }
 0x210   :  { %510 = vst [vmem:[#allocation2 + $0x50] sm:$0xff] %v2083_v49 }
 0x211   :  { %511 = vst [vmem:[#allocation2 + $0x30] sm:$0xff] %v2087_v54  ;;  %685 = vmatpush.msra.mxu3 %v553_v44 }
 0x212   :  { %927 = vst [vmem:[#allocation2 + $0x50] sm:$0xf] %v1923_v24  ;;  %v1001_v31 = vld [vmem:[#allocation2 + $0x8] sm:$0xf] }
 0x213   :  { %928 = vst [vmem:[#allocation2 + $0x30] sm:$0xf] %v1930_v43  ;;  %1436 = vmatpush.msk.msrb.mxu2 %vm345_vm8, %v1001_v31  ;;  %686 = vmatpush.msra.mxu3 %v528_v17 }
 0x214   :  { %956 = vst [vmem:[#allocation2 + $0x50] sm:$0xf0] %v1919_v22  ;;  %v2115_v22 = vld [vmem:[#allocation9] sm:$0xff] }
 0x215   :  { %957 = vst [vmem:[#allocation2 + $0x30] sm:$0xf0] %v1943_v29  ;;  %v475_v39 = vpop.permute.xlu0 %474  ;;  %687 = vmatpush.msra.mxu3 %v2020_v62 }
 0x216   :  { %v832_v61 = vpop.permute.xlu1 %831  ;;  %v2104_v37 = vsel %vm132_vm1, %v2004_v46, %v475_v39  ;;  %v2111_v1 = vsel %vm132_vm1, %v475_v39, %v1849_v57 }
 0x217   :  { %v836_v24 = vsel %vm162_vm3, %v1869_v6, %v832_v61  ;;  %v837_v43 = vsel %vm162_vm3, %v832_v61, %v834_v55  ;;  %485 = vst [vmem:[#allocation2 + $0x78] sm:$0xff] %v2104_v37  ;;  %688 = vmatpush.msra.mxu3 %v478_v25  ;;  %v1000_v6 = vld [vmem:[#allocation2 + $0x70] sm:$0xf]  ;;  %v2130_v60 = vpop.permute.xlu2 %1005 }
 0x218   :  { %842 = vst [vmem:[#allocation2 + $0x60] sm:$0xf0] %v836_v24 }
 0x219   :  { %843 = vst [vmem:[#allocation2 + $0x28] sm:$0xf0] %v837_v43  ;;  %689 = vmatpush.msra.mxu3 %v453_v23 }
 0x21a   :  { %486 = vst [vmem:[#allocation2 + $0x80] sm:$0xff] %v2111_v1 }
 0x21b   :  { %870 = vst [vmem:[#allocation2 + $0x78] sm:$0xf] %v1966_v51  ;;  %690 = vmatpush.msra.mxu3 %v1883_v9  ;;  %v997_v46 = vld [vmem:[#allocation2 + $0x50] sm:$0xff] }
 0x21c   :  { %871 = vst [vmem:[#allocation2 + $0x80] sm:$0xf] %v1969_v42  ;;  %v998_v57 = vld [vmem:[#allocation2 + $0x30] sm:$0xff]  ;;  %1411 = vmatmul.msk.f32.vlgmr.msra.gmra.mxu3 %vm671_vm10, %v2115_v22 }
 0x21d   :  { %1434 = vmatpush.msk.msrb.mxu3 %vm345_vm8, %v1000_v6  ;;  %899 = vst [vmem:[#allocation2 + $0x78] sm:$0xf0] %v1959_v35  ;;  %v805_v29 = vpop.permute.xlu0 %804  ;;  %1072 = vmatpush.msrb.mxu2 %v998_v57 }
 0x21e   :  { %900 = vst [vmem:[#allocation2 + $0x80] sm:$0xf0] %v1992_v50  ;;  %v808_v51 = vsel %vm132_vm1, %v1998_v47, %v805_v29  ;;  %v777_v9 = vpop.permute.xlu1 %776 }
 0x21f   :  { %1052 = vmatpush.msrb.mxu3 %v997_v46  ;;  %814 = vst [vmem:[#allocation2 + $0x28] sm:$0xf] %v808_v51  ;;  %v991_v11 = vld [vmem:[#allocation2 + $0x60] sm:$0xff] }
 0x224   :  { %v994_v42 = vld [vmem:[#allocation2 + $0x78] sm:$0xff] }
 0x225   :  { %v775_v62 = vpop.permute.xlu0 %774  ;;  %v995_v45 = vld [vmem:[#allocation2 + $0x80] sm:$0xff]  ;;  %1053 = vmatpush.msrb.mxu3 %v994_v42 }
 0x226   :  { %v779_v35 = vsel %vm103_vm0, %v1853_v53, %v775_v62  ;;  %v780_v8 = vsel %vm103_vm0, %v775_v62, %v777_v9  ;;  %1073 = vmatpush.msrb.mxu2 %v995_v45  ;;  %v992_v10 = vld [vmem:[#allocation2 + $0x28] sm:$0xff]  ;;  %v2132_v50 = vpop.permute.xlu1 %1459  ;;  %v2138_v53 = vpop.permute.xlu2 %1469 }
 0x227   :  { %785 = vst [vmem:[#allocation2] sm:$0xf0] %v779_v35  ;;  %1054 = vmatpush.msrb.mxu3 %v991_v11  ;;  %v1461_v27 = vunpack.i.l.bf16 %v2132_v50  ;;  %v1471_v30 = vunpack.i.l.bf16 %v2138_v53  ;;  %v1462_v55 = vunpack.i.h.bf16 %v2132_v50  ;;  %v1472_v42 = vunpack.i.h.bf16 %v2138_v53 }
 0x228   :  { %786 = vst [vmem:[#allocation2 + $0x10] sm:$0xf0] %v780_v8  ;;  %1074 = vmatpush.msrb.mxu2 %v992_v10 }
 0x22d   :  { %v2134_v47 = vpop.permute.xlu0 %1464 }
 0x22e   :  { %v988_v16 = vld [vmem:[#allocation2] sm:$0xff]  ;;  %v2142_v5 = vpop.permute.xlu1 %1474  ;;  %v2146_v21 = vpop.permute.xlu2 %1134  ;;  %v1466_v28 = vunpack.i.l.bf16 %v2134_v47  ;;  %v1467_v62 = vunpack.i.h.bf16 %v2134_v47 }
 0x22f   :  { %1055 = vmatpush.msrb.mxu3 %v988_v16  ;;  %v989_v17 = vld [vmem:[#allocation2 + $0x10] sm:$0xff]  ;;  %v1476_v20 = vunpack.i.l.bf16 %v2142_v5  ;;  %v1477_v43 = vunpack.i.h.bf16 %v2142_v5 }
 0x230   :  { %1075 = vmatpush.msrb.mxu2 %v989_v17  ;;  %1435 = vmatmul.msk.f32.vlgmr.msrb.gmra.mxu3 %vm341_vm9, %v1795_v14 }
 0x231   :  { %1437 = vmatmul.msk.f32.vlgmr.msrb.gmra.mxu2 %vm341_vm9, %v1795_v14 }
 0x235   :  { %v2144_v19 = vpop.permute.xlu0 %1184 }
 0x236   :  { %v2148_v23 = vpop.permute.xlu1 %1159  ;;  %v600_v7 = vpop.permute.xlu2 %599 }
 0x237   :  { %v604_v48 = vsel %vm280_vm5, %v2046_v15, %v600_v7  ;;  %v605_v0 = vsel %vm280_vm5, %v600_v7, %v1466_v28 }
 0x23d   :  { %v2150_v25 = vpop.permute.xlu0 %1109 }
 0x23e   :  { %v575_v36 = vpop.permute.xlu1 %574 }
 0x23f   :  { %v579_v34 = vsel %vm250_vm6, %v2048_v56, %v575_v36  ;;  %v580_v33 = vsel %vm250_vm6, %v575_v36, %v1471_v30 }
 0x245   :  { %v625_v26 = vpop.permute.xlu0 %624 }
 0x246   :  { %v629_v14 = vsel %vm309_vm7, %v2028_v3, %v625_v26  ;;  %v630_v32 = vsel %vm309_vm7, %v625_v26, %v1461_v27 }
 0x247   :  { %702 = vmatpush.msra.mxu0 %v629_v14  ;;  %722 = vmatpush.msrb.mxu1 %v630_v32 }
 0x249   :  { %703 = vmatpush.msra.mxu0 %v604_v48  ;;  %723 = vmatpush.msrb.mxu1 %v605_v0 }
 0x24b   :  { %704 = vmatpush.msra.mxu0 %v579_v34  ;;  %724 = vmatpush.msrb.mxu1 %v580_v33 }
 0x24d   :  { %v550_v3 = vpop.permute.xlu0 %549 }
 0x24e   :  { %v554_v38 = vsel %vm221_vm4, %v2044_v41, %v550_v3  ;;  %v555_v44 = vsel %vm221_vm4, %v550_v3, %v1476_v20 }
 0x24f   :  { %705 = vmatpush.msra.mxu0 %v554_v38  ;;  %725 = vmatpush.msrb.mxu1 %v555_v44 }
 0x251   :  { %706 = vmatpush.msra.mxu0 %v2069_v13  ;;  %726 = vmatpush.msrb.mxu1 %v2073_v52 }
 0x253   :  { %707 = vmatpush.msra.mxu0 %v2083_v49  ;;  %727 = vmatpush.msrb.mxu1 %v2087_v54 }
 0x255   :  { %708 = vmatpush.msra.mxu0 %v2104_v37  ;;  %728 = vmatpush.msrb.mxu1 %v2111_v1 }
 0x257   :  { %709 = vmatpush.msra.mxu0 %v2037_v58  ;;  %729 = vmatpush.msrb.mxu1 %v2034_v12 }
 0x259   :  { %710 = vmatpush.msra.mxu0 %v1866_v2  ;;  %730 = vmatpush.msrb.mxu1 %v1904_v18 }
 0x25a   :  { %1412 = vmatmul.msk.f32.vlgmr.msra.gmra.mxu0 %vm671_vm10, %v2115_v22  ;;  %1413 = vmatmul.msk.f32.vlgmr.msrb.gmra.mxu1 %vm671_vm10, %v2115_v22 }
 0x292   :  { %v1037_v41 = vpop.f32.mrf.mxu2 }
 0x293   :  { %v1038_v15 = vadd.f32 %v1037_v41, %v2130_v60 }
 0x295   :  { %v1080_v56 = vmax.f32 %v1038_v15, 0.0 }
 0x297   :  { %v2185_v13 = vmul.f32 %v1080_v56, %v419_v4 }
 0x299   :  { %1092 = vst [vmem:[#allocation2 + $0xb0] sm:$0xff] %v2185_v13  ;;  %1228 = vrot.lane.b32.xlu2 %v2185_v13, %s1564_s20  ;;  %1253 = vrot.lane.b32.xlu1 %v2185_v13, %s1565_s21 }
 0x29a   :  { %1278 = vrot.lane.b32.xlu0 %v2185_v13, %s1566_s26 }
 0x29f   :  { %v2200_v2 = vpop.f32.mrf.mxu3 }
 0x2a1   :  { %1128 = vrot.lane.b32.xlu2 %v2185_v13, %s1560_s16  ;;  %1178 = vrot.lane.b32.xlu1 %v2185_v13, %s1562_s18 }
 0x2a2   :  { %1203 = vrot.lane.b32.xlu0 %v2185_v13, %s1563_s19 }
 0x2aa   :  { %1153 = vrot.lane.b32.xlu0 %v2185_v13, %s1561_s17 }
 0x2b3   :  { %v1057_v4 = vpop.f32.mrf.mxu3 }
 0x2b4   :  { %v1058_v18 = vadd.f32 %v1057_v4, %v2130_v60  ;;  %v1077_v12 = vpop.f32.mrf.mxu2 }
 0x2b5   :  { %v1078_v58 = vadd.f32 %v1077_v12, %v2130_v60 }
 0x2b6   :  { %v1081_v52 = vmax.f32 %v1058_v18, 0.0 }
 0x2b7   :  { %v1082_v49 = vmax.f32 %v1078_v58, 0.0 }
 0x2b8   :  { %v2208_v54 = vmul.f32 %v1081_v52, %v420_v63 }
 0x2b9   :  { %v2212_v31 = vmul.f32 %v1082_v49, %v421_v40 }
 0x2ba   :  { %1093 = vst [vmem:[#allocation2] sm:$0xff] %v2208_v54 }
 0x2bb   :  { %1094 = vst [vmem:[#allocation2 + $0x10] sm:$0xff] %v2212_v31  ;;  %1282 = vrot.lane.b32.xlu2 %v2212_v31, %s1566_s26  ;;  %1232 = vrot.lane.b32.xlu1 %v2212_v31, %s1564_s20 }
 0x2bc   :  { %1257 = vrot.lane.b32.xlu0 %v2212_v31, %s1565_s21 }
 0x2c3   :  { %1207 = vrot.lane.b32.xlu2 %v2212_v31, %s1563_s19  ;;  %1280 = vrot.lane.b32.xlu1 %v2208_v54, %s1566_s26 }
 0x2c4   :  { %1157 = vrot.lane.b32.xlu0 %v2212_v31, %s1561_s17 }
 0x2cb   :  { %1182 = vrot.lane.b32.xlu2 %v2212_v31, %s1562_s18  ;;  %1132 = vrot.lane.b32.xlu1 %v2212_v31, %s1560_s16 }
 0x2cc   :  { %1230 = vrot.lane.b32.xlu0 %v2208_v54, %s1564_s20 }
 0x2d3   :  { %1255 = vrot.lane.b32.xlu2 %v2208_v54, %s1565_s21  ;;  %1205 = vrot.lane.b32.xlu1 %v2208_v54, %s1563_s19 }
 0x2d4   :  { %1130 = vrot.lane.b32.xlu0 %v2208_v54, %s1560_s16 }
 0x2d7   :  { %v712_v38 = vpop.f32.mrf.mxu0  ;;  %v732_v44 = vpop.f32.mrf.mxu1 }
 0x2db   :  { %1107 = vrot.lane.b32.xlu2 %v2212_v31, %s1559_s15  ;;  %1155 = vrot.lane.b32.xlu1 %v2208_v54, %s1561_s17 }
 0x2dc   :  { %668 = vperm.xlu0 %1478, %v665_v59  }
 0x2e3   :  { %1180 = vrot.lane.b32.xlu2 %v2208_v54, %s1562_s18  ;;  %1103 = vrot.lane.b32.xlu1 %v2185_v13, %s1559_s15 }
 0x2eb   :  { %1105 = vrot.lane.b32.xlu2 %v2208_v54, %s1559_s15  ;;  %1326 = vperm.xlu1 %1479, %v665_v59  }
 0x2f3   :  { %v1229_v63 = vpop.permute.xlu2 %1228 }
 0x2fb   :  { %v2253_v40 = vpop.permute.xlu2 %1128 }
 0x30b   :  { %v1254_v24 = vpop.permute.xlu1 %1253 }
 0x30c   :  { %v1279_v39 = vpop.permute.xlu0 %1278 }
 0x313   :  { %v1179_v29 = vpop.permute.xlu1 %1178 }
 0x314   :  { %v1204_v1 = vpop.permute.xlu0 %1203 }
 0x315   :  { %v1283_v61 = vpop.permute.xlu2 %1282 }
 0x316   :  { %v1288_v37 = vsel %vm309_vm7, %v1283_v61, %v1462_v55 }
 0x317   :  { %1379 = vmatpush.msra.mxu3 %v1288_v37 }
 0x31c   :  { %v2259_v51 = vpop.permute.xlu0 %1153 }
 0x31d   :  { %v1208_v6 = vpop.permute.xlu2 %1207 }
 0x31e   :  { %v1213_v57 = vsel %vm221_vm4, %v1208_v6, %v1477_v43 }
 0x325   :  { %v1183_v46 = vpop.permute.xlu2 %1182 }
 0x326   :  { %v1188_v9 = vsel %vm191_vm2, %v1183_v46, %v2144_v19 }
 0x327   :  { %1194 = vst [vmem:[#allocation2 + $0x8] sm:$0xff] %v1188_v9 }
 0x32d   :  { %v1233_v45 = vpop.permute.xlu1 %1232  ;;  %v1256_v35 = vpop.permute.xlu2 %1255 }
 0x32e   :  { %v1238_v8 = vsel %vm250_vm6, %v1233_v45, %v1472_v42  ;;  %v1258_v10 = vpop.permute.xlu0 %1257  ;;  %v1261_v11 = vsel %vm280_vm5, %v1254_v24, %v1256_v35 }
 0x32f   :  { %v1263_v60 = vsel %vm280_vm5, %v1258_v10, %v1467_v62  ;;  %v1262_v50 = vsel %vm280_vm5, %v1256_v35, %v1258_v10 }
 0x330   :  { %1380 = vmatpush.msra.mxu3 %v1263_v60 }
 0x332   :  { %1381 = vmatpush.msra.mxu3 %v1238_v8 }
 0x334   :  { %1382 = vmatpush.msra.mxu3 %v1213_v57 }
 0x335   :  { %v1108_v16 = vpop.permute.xlu2 %1107  ;;  %v1281_v17 = vpop.permute.xlu1 %1280 }
 0x336   :  { %v1158_v5 = vpop.permute.xlu0 %1157  ;;  %v1113_v47 = vsel %vm103_vm0, %v1108_v16, %v2150_v25  ;;  %v1286_v53 = vsel %vm309_vm7, %v1279_v39, %v1281_v17  ;;  %v1287_v19 = vsel %vm309_vm7, %v1281_v17, %v1283_v61  ;;  %1383 = vmatpush.msra.mxu3 %v1188_v9 }
 0x337   :  { %v1163_v27 = vsel %vm162_vm3, %v1158_v5, %v2148_v23  ;;  %1119 = vst [vmem:[#allocation2 + $0x28] sm:$0xff] %v1113_v47  ;;  %1339 = vmatpush.msrb.mxu0 %v1286_v53  ;;  %1359 = vmatpush.msra.mxu1 %v1287_v19 }
 0x338   :  { %1169 = vst [vmem:[#allocation2 + $0x30] sm:$0xff] %v1163_v27  ;;  %1384 = vmatpush.msra.mxu3 %v1163_v27 }
 0x339   :  { %1340 = vmatpush.msrb.mxu0 %v1261_v11  ;;  %1360 = vmatpush.msra.mxu1 %v1262_v50 }
 0x33d   :  { %v1181_v28 = vpop.permute.xlu2 %1180  ;;  %v1133_v7 = vpop.permute.xlu1 %1132 }
 0x33e   :  { %v1231_v26 = vpop.permute.xlu0 %1230  ;;  %v1186_v25 = vsel %vm191_vm2, %v1179_v29, %v1181_v28  ;;  %v1138_v30 = vsel %vm132_vm1, %v1133_v7, %v2146_v21  ;;  %v1187_v23 = vsel %vm191_vm2, %v1181_v28, %v1183_v46 }
 0x33f   :  { %v1236_v14 = vsel %vm250_vm6, %v1229_v63, %v1231_v26  ;;  %v1237_v32 = vsel %vm250_vm6, %v1231_v26, %v1233_v45  ;;  %1192 = vst [vmem:[#allocation2 + $0x88] sm:$0xff] %v1186_v25  ;;  %1385 = vmatpush.msra.mxu3 %v1138_v30 }
 0x340   :  { %1341 = vmatpush.msrb.mxu0 %v1236_v14  ;;  %1361 = vmatpush.msra.mxu1 %v1237_v32  ;;  %1193 = vst [vmem:[#allocation2 + $0x70] sm:$0xff] %v1187_v23 }
 0x341   :  { %1386 = vmatpush.msra.mxu3 %v1113_v47  ;;  %1144 = vst [vmem:[#allocation2 + $0x80] sm:$0xff] %v1138_v30 }
 0x343   :  { %1387 = vmatpush.msra.mxu3 %v2212_v31 }
 0x344   :  { %1440 = vmatmul.msk.f32.vlgmr.msra.gmra.mxu3 %vm671_vm10, %v2115_v22 }
 0x345   :  { %v1106_v36 = vpop.permute.xlu2 %1105  ;;  %v1206_v21 = vpop.permute.xlu1 %1205 }
 0x346   :  { %v1131_v48 = vpop.permute.xlu0 %1130  ;;  %v1112_v0 = vsel %vm103_vm0, %v1106_v36, %v1108_v16  ;;  %v1211_v20 = vsel %vm221_vm4, %v1204_v1, %v1206_v21  ;;  %v1212_v34 = vsel %vm221_vm4, %v1206_v21, %v1208_v6 }
 0x347   :  { %v1136_v33 = vsel %vm132_vm1, %v2253_v40, %v1131_v48  ;;  %v1137_v3 = vsel %vm132_vm1, %v1131_v48, %v1133_v7  ;;  %1118 = vst [vmem:[#allocation2 + $0x60] sm:$0xff] %v1112_v0  ;;  %1342 = vmatpush.msrb.mxu0 %v1211_v20  ;;  %1362 = vmatpush.msra.mxu1 %v1212_v34 }
 0x348   :  { %1142 = vst [vmem:[#allocation2 + $0x40] sm:$0xff] %v1136_v33 }
 0x349   :  { %1143 = vst [vmem:[#allocation2 + $0x78] sm:$0xff] %v1137_v3  ;;  %1343 = vmatpush.msrb.mxu0 %v1186_v25  ;;  %1363 = vmatpush.msra.mxu1 %v1187_v23 }
 0x34d   :  { %v1156_v41 = vpop.permute.xlu1 %1155 }
 0x34e   :  { %v669_v15 = vpop.permute.xlu0 %668  ;;  %v1161_v56 = vsel %vm162_vm3, %v2259_v51, %v1156_v41  ;;  %v1162_v4 = vsel %vm162_vm3, %v1156_v41, %v1158_v5 }
 0x34f   :  { %v693_v18 = vadd.f32 %v2200_v2, %v669_v15  ;;  %1167 = vst [vmem:[#allocation2 + $0xa8] sm:$0xff] %v1161_v56  ;;  %1344 = vmatpush.msrb.mxu0 %v1161_v56  ;;  %1364 = vmatpush.msra.mxu1 %v1162_v4  ;;  %v713_v12 = vadd.f32 %v712_v38, %v669_v15 }
 0x350   :  { %v733_v58 = vadd.f32 %v732_v44, %v669_v15  ;;  %1168 = vst [vmem:[#allocation2 + $0x50] sm:$0xff] %v1162_v4 }
 0x351   :  { %v735_v52 = vmax.f32 %v693_v18, 0.0  ;;  %1345 = vmatpush.msrb.mxu0 %v1136_v33  ;;  %1365 = vmatpush.msra.mxu1 %v1137_v3  ;;  %v736_v49 = vmax.f32 %v713_v12, 0.0 }
 0x352   :  { %v737_v31 = vmax.f32 %v733_v58, 0.0 }
 0x353   :  { %738 = vst [vmem:[%s2325_s6] sm:$0xff] %v735_v52  ;;  %1366 = vmatpush.msra.mxu1 %v1112_v0 }
 0x354   :  { %739 = vst [vmem:[%s2325_s6 + $0x8] sm:$0xff] %v736_v49 }
 0x355   :  { %v1104_v2 = vpop.permute.xlu1 %1103  ;;  %1367 = vmatpush.msra.mxu1 %v2208_v54  ;;  %740 = vst [vmem:[%s2325_s6 + $0x10] sm:$0xff] %v737_v31 }
 0x356   :  { %v1111_v59 = vsel %vm103_vm0, %v1104_v2, %v1106_v36  ;;  %1439 = vmatmul.msk.f32.vlgmr.msra.gmra.mxu1 %vm671_vm10, %v2115_v22 }
 0x357   :  { %1117 = vst [vmem:[#allocation2 + $0x48] sm:$0xff] %v1111_v59  ;;  %1346 = vmatpush.msrb.mxu0 %v1111_v59 }
 0x359   :  { %1347 = vmatpush.msrb.mxu0 %v2185_v13 }
 0x35a   :  { %1438 = vmatmul.msk.f32.vlgmr.msrb.gmra.mxu0 %vm671_vm10, %v2115_v22 }
 0x35d   :  { %v1327_v63 = vpop.permute.xlu1 %1326 }
 0x3c7   :  { %v1389_v40 = vpop.f32.mrf.mxu3 }
 0x3c8   :  { %v1390_v39 = vadd.f32 %v1389_v40, %v1327_v63 }
 0x3ca   :  { %v1394_v54 = vmax.f32 %v1390_v39, 0.0 }
 0x3cc   :  { %1443 = vst [vmem:[%s2325_s6 + $0x28] sm:$0xff] %v1394_v54 }
 0x3d3   :  { %v1369_v55 = vpop.f32.mrf.mxu1 }
 0x3d4   :  { %v1370_v61 = vadd.f32 %v1369_v55, %v1327_v63 }
 0x3d6   :  { %v1393_v37 = vmax.f32 %v1370_v61, 0.0 }
 0x3d7   :  { %v1349_v24 = vpop.f32.mrf.mxu0 }
 0x3d8   :  { %v1350_v43 = vadd.f32 %v1349_v24, %v1327_v63  ;;  %1442 = vst [vmem:[%s2325_s6 + $0x20] sm:$0xff] %v1393_v37 }
 0x3da   :  { %v1392_v13 = vmax.f32 %v1350_v43, 0.0 }
 0x3dc   :  { %1441 = vst [vmem:[%s2325_s6 + $0x18] sm:$0xff] %v1392_v13 }
 0x3dd   :  { %1403 = vsyncpa [#allocation6], 1 }
 0x3de   :  { %1404 = vsyncpa [#allocation8], 1 }

</bundles_post_ra>
